<compile_context>
chip_gen: v5e
topology: v5e:2x2
jax: 0.10.0
libtpu: 0.0.40
codegen_flags: <defaults>
</compile_context>

<pallas_src>
from functools import partial

import jax
import jax.numpy as jnp
import numpy as np
from jax.experimental import pallas as pl
from jax.experimental.pallas import tpu as pltpu


def _layernorm(x, gamma, beta, n_real, eps=1e-6):
    """LayerNorm over the last axis, counting only the first n_real features.

    Padded lanes of ``x`` are exactly 0 by construction (all padded weight /
    bias columns are 0), so no lane mask is needed.  Single pass:
    var = E[x^2] - mu^2 (the two XLU reductions are independent).
    """
    inv_n = 1.0 / float(n_real)
    s1 = jnp.sum(x, axis=-1, keepdims=True)
    s2 = jnp.sum(x * x, axis=-1, keepdims=True)
    mu = s1 * inv_n
    var = jnp.maximum(s2 * inv_n - mu * mu, 0.0)
    return (x - mu) * jax.lax.rsqrt(var + eps) * gamma + beta


def transformer_layer_kernel(n_head, e_real,
                             x_ref, wpT_ref, posb_ref,
                             g1_ref, be1_ref, winT_ref, bin_ref,
                             woT_ref, bo_ref,
                             g2_ref, be2_ref, w1T_ref, b1_ref, w2T_ref, b2_ref,
                             o_ref):
    """One grid step processes NB batch elements, flattened to NB*T rows."""
    nb, t, cp = x_ref.shape
    rows = nb * t
    ep = wpT_ref.shape[1]                      # padded model dim (multiple of 128)
    dh = e_real // n_head
    f32, bf16 = jnp.float32, jnp.bfloat16

    # ---- input projection + (bias + positional encoding) ----
    x = x_ref[...].reshape(rows, cp)                               # bf16 already
    h = jnp.dot(x, wpT_ref[...], preferred_element_type=f32)       # (R, EP) f32
    # (bp + pos) is (T, EP); broadcast over the NB batch elements for free.
    h = (h.reshape(nb, t, ep) + posb_ref[...]).reshape(rows, ep)

    # ---- self-attention block (pre-norm) ----
    y = _layernorm(h, g1_ref[...], be1_ref[...], e_real).astype(bf16)
    # Single 128-lane packed qkv [q|k|v|pad]; the 1/sqrt(dh) query scale is
    # already folded into winT / b_in on the host.
    qkv = jnp.dot(y, winT_ref[...], preferred_element_type=f32) + bin_ref[...]
    # Only ever consumed as an MXU operand -> keep it bf16 (halves live vregs),
    # and view it as (nb, t, lanes) once (major-dim split, layout preserving).
    qkv = qkv.astype(bf16).reshape(nb, t, -1)

    # Per-head attention (T = dh = 8).  A fully head-batched single einsum
    # would need a (b,t,h,d)->(b,h,t,d) mid-dim transpose which Mosaic does
    # not lower; per-head last-dim slices of the 3D bf16 qkv are the cheap,
    # supported path (no per-head reshapes, no f32 temporaries).
    head_outs = []
    for hi in range(n_head):                   # static unroll
        lo = hi * dh
        qh = qkv[:, :, lo:lo + dh]
        kh = qkv[:, :, e_real + lo:e_real + lo + dh]
        vh = qkv[:, :, 2 * e_real + lo:2 * e_real + lo + dh]
        s = jnp.einsum("bqd,bkd->bqk", qh, kh, preferred_element_type=f32)
        s = s - jnp.max(s, axis=-1, keepdims=True)
        p = jnp.exp(s)
        p = p * pl.reciprocal(jnp.sum(p, axis=-1, keepdims=True), approx=True)
        head_outs.append(jnp.einsum("bqk,bkd->bqd", p.astype(bf16), vh,
                                    preferred_element_type=f32))
    # Pack the head outputs lane-contiguously and run ONE output projection
    # (contraction K = E) instead of n_head MXU-hostile K=dh matmuls.
    attn = jnp.concatenate(head_outs, axis=-1)                     # (nb, t, E)
    attn = jnp.dot(attn.reshape(rows, e_real).astype(bf16), woT_ref[...],
                   preferred_element_type=f32)                     # (R, EP)
    h = h + attn + bo_ref[...]

    # ---- feed-forward block (pre-norm) ----
    y = _layernorm(h, g2_ref[...], be2_ref[...], e_real).astype(bf16)
    f = jnp.dot(y, w1T_ref[...], preferred_element_type=f32) + b1_ref[...]
    f = jnp.maximum(f, 0.0).astype(bf16)
    f = jnp.dot(f, w2T_ref[...], preferred_element_type=f32) + b2_ref[...]
    h = h + f

    o_ref[...] = h.reshape(nb, t, ep).astype(o_ref.dtype)          # bf16 writeback


def _round_up(a, m):
    return (a + m - 1) // m * m


def transformer_layer(x, params, n_head, batch_block=16):
    """Pallas forward pass.

    batch_block (NB) batch elements per grid step (NB*T rows/step).  NB=16,
    T=8 -> 128 rows/step and a 2-step 'parallel' grid (one per v7x TC); on
    single-TC v5e/v6e, NB=32 (one 256-row step) amortizes per-step overhead.
    """
    N, T, C = x.shape
    E = params["wp"].shape[0]
    assert E % n_head == 0
    dh = E // n_head
    EP = _round_up(E, 128)              # lane-dense padded model dim
    CP = _round_up(C, 128)              # lane-dense padded input dim
    QKVP = _round_up(3 * E, 128)        # packed [q|k|v] projection width
    NB = batch_block
    NP = _round_up(max(N, NB), NB)      # pad batch to a multiple of the block

    f32, bf16 = jnp.float32, jnp.bfloat16

    def pad2(a, rows, cols):
        # Zero padding everywhere: padded lanes of the residual stream must
        # stay exactly 0 (LayerNorm statistics rely on it) - keep it that way.
        return jnp.pad(a, ((0, rows - a.shape[0]), (0, cols - a.shape[1])))

    # ---- host-side weight prep: transpose once, zero-pad, cast to bf16 ----
    wpT = pad2(params["wp"].T, CP, EP).astype(bf16)                # (CP, EP)
    w1T = pad2(params["w1"].T, EP, EP).astype(bf16)                # (EP, EP)
    w2T = pad2(params["w2"].T, EP, EP).astype(bf16)                # (EP, EP)
    woT = pad2(params["wo"].T, E, EP).astype(bf16)                 # (E,  EP)

    # In-projection: fold the 1/sqrt(dh) query scale into the q block.
    scale = 1.0 / float(dh) ** 0.5
    qkv_scale = jnp.concatenate(
        [jnp.full((1, E), scale, f32), jnp.ones((1, 2 * E), f32)], axis=1)
    winT = pad2(params["win"].T * qkv_scale, EP, QKVP).astype(bf16)  # (EP, QKVP)
    b_in = pad2(params["bin"] * qkv_scale, 1, QKVP)                  # (1, QKVP) f32

    # Fold input-projection bias + positional encoding into one (T, EP) tensor
    # broadcast inside the kernel (T == 8 sublanes -> free VPU broadcast).
    posb = pad2(params["bp"] + params["pos"], T, EP)               # (T, EP) f32

    bo = pad2(params["bo"], 1, EP)
    b1 = pad2(params["b1"], 1, EP)
    b2 = pad2(params["b2"], 1, EP)
    g1 = pad2(params["g1"], 1, EP)
    be1 = pad2(params["be1"], 1, EP)
    g2 = pad2(params["g2"], 1, EP)
    be2 = pad2(params["be2"], 1, EP)

    # Pre-cast x to bf16 and pad to a lane-dense width (no in-kernel cast or
    # narrow-lane relayout per step).
    xb = jnp.pad(x, ((0, NP - N), (0, 0), (0, CP - C))).astype(bf16)

    def full(shape):
        n = len(shape)
        return pl.BlockSpec(shape, lambda b: (0,) * n)

    # TODO(synk): for much larger E on v7x (64 MiB VMEM/TC), K-tile the FFN
    # weights and reduce weight buffering instead of keeping them fully
    # resident as done here (fine at EP=128).
    out = pl.pallas_call(
        partial(transformer_layer_kernel, n_head, E),
        out_shape=jax.ShapeDtypeStruct((NP, T, EP), bf16),
        grid=(NP // NB,),
        in_specs=[
            pl.BlockSpec((NB, T, CP), lambda b: (b, 0, 0)),  # x (bf16, padded C)
            full((CP, EP)),                                  # Wp^T          (bf16)
            full((T, EP)),                                   # bp + pos      (f32)
            full((1, EP)), full((1, EP)),                    # LN1 gamma/beta
            full((EP, QKVP)), full((1, QKVP)),               # in-proj W^T / b
            full((E, EP)), full((1, EP)),                    # out-proj W^T / b
            full((1, EP)), full((1, EP)),                    # LN2 gamma/beta
            full((EP, EP)), full((1, EP)),                   # FFN linear1 W^T / b
            full((EP, EP)), full((1, EP)),                   # FFN linear2 W^T / b
        ],
        out_specs=pl.BlockSpec((NB, T, EP), lambda b: (b, 0, 0)),
        compiler_params=pltpu.CompilerParams(dimension_semantics=("parallel",)),
    )(xb, wpT, posb, g1, be1, winT, b_in, woT, bo, g2, be2, w1T, b1, w2T, b2)

    return out[:N, :, :E]


# ---------------------------------------------------------------------------
# Pure-JAX reference (f32) matching nn.TransformerEncoderLayer
# (norm_first=True, relu, eval mode, layer_norm_eps=1e-6).
# ---------------------------------------------------------------------------
def _layernorm_ref(x, gamma, beta, eps=1e-6):
    mu = jnp.mean(x, axis=-1, keepdims=True)
    var = jnp.mean((x - mu) ** 2, axis=-1, keepdims=True)
    return (x - mu) * jax.lax.rsqrt(var + eps) * gamma + beta


def reference(x, p, n_head):
    E = p["wp"].shape[0]
    dh = E // n_head
    h = x @ p["wp"].T + p["bp"]
    h = h + p["pos"][None]                 # (1, T, 1) broadcast
    y = _layernorm_ref(h, p["g1"], p["be1"])
    qkv = y @ p["win"].T + p["bin"]
    q, k, v = qkv[..., :E], qkv[..., E:2 * E], qkv[..., 2 * E:]

    def split(a):  # (N, T, E) -> (N, H, T, Dh)
        N, T, _ = a.shape
        return a.reshape(N, T, n_head, dh).transpose(0, 2, 1, 3)

    qh, kh, vh = split(q) / jnp.sqrt(jnp.float32(dh)), split(k), split(v)
    s = jnp.einsum("nhtd,nhsd->nhts", qh, kh)
    pw = jax.nn.softmax(s, axis=-1)
    o = jnp.einsum("nhts,nhsd->nhtd", pw, vh).transpose(0, 2, 1, 3).reshape(
        x.shape[0], x.shape[1], E)
    h = h + (o @ p["wo"].T + p["bo"])
    y = _layernorm_ref(h, p["g2"], p["be2"])
    f = jnp.maximum(y @ p["w1"].T + p["b1"], 0.0) @ p["w2"].T + p["b2"]
    return h + f


def init_params(key, in_features, out_features, num_frames):
    E, C, T = out_features, in_features, num_frames
    ks = jax.random.split(key, 12)
    s = 0.05
    return {
        "wp": jax.random.normal(ks[0], (E, C), jnp.float32) * s,
        "bp": jax.random.normal(ks[1], (1, E), jnp.float32) * s,
        "pos": jax.random.normal(ks[2], (T, 1), jnp.float32) * 0.02,
        "g1": jnp.ones((1, E), jnp.float32),
        "be1": jnp.zeros((1, E), jnp.float32),
        "win": jax.random.normal(ks[3], (3 * E, E), jnp.float32) * s,
        "bin": jax.random.normal(ks[4], (1, 3 * E), jnp.float32) * s,
        "wo": jax.random.normal(ks[5], (E, E), jnp.float32) * s,
        "bo": jax.random.normal(ks[6], (1, E), jnp.float32) * s,
        "g2": jnp.ones((1, E), jnp.float32),
        "be2": jnp.zeros((1, E), jnp.float32),
        "w1": jax.random.normal(ks[7], (E, E), jnp.float32) * s,
        "b1": jax.random.normal(ks[8], (1, E), jnp.float32) * s,
        "w2": jax.random.normal(ks[9], (E, E), jnp.float32) * s,
        "b2": jax.random.normal(ks[10], (1, E), jnp.float32) * s,
    }


if __name__ == "__main__":
    # x is N x C(seq) x D(feature); N=32, batch_block=16 -> grid of 2 parallel
    # steps of 16 batch elements each (16 * T=8 = 128 rows per step).
    N, T, C_in, E, n_head = 32, 8, 16, 32, 4

    key = jax.random.PRNGKey(0)
    kx, kp = jax.random.split(key)
    x = jax.random.normal(kx, (N, T, C_in), jnp.float32)
    params = init_params(kp, C_in, E, T)

    out = jax.block_until_ready(transformer_layer(x, params, n_head))
    ref = jax.block_until_ready(reference(x, params, n_head))
    assert out.shape == (N, T, E)
    # bf16 MXU operands / bf16 writeback with f32 accumulation vs. the pure-f32
    # reference: compare with a correspondingly loosened tolerance.
    np.testing.assert_allclose(np.asarray(out.astype(jnp.float32)),
                               np.asarray(ref), rtol=3e-2, atol=3e-2)

    print("KERNEL_OK")
</pallas_src>

<mosaic_0001>
module attributes {stable_mosaic.version = 11 : i64} {
  func.func @transformer_layer_kernel(%arg0: i32, %arg1: memref<16x8x128xbf16, #tpu.memory_space<vmem>>, %arg2: memref<128x128xbf16, #tpu.memory_space<vmem>>, %arg3: memref<8x128xf32, #tpu.memory_space<vmem>>, %arg4: memref<1x128xf32, #tpu.memory_space<vmem>>, %arg5: memref<1x128xf32, #tpu.memory_space<vmem>>, %arg6: memref<128x128xbf16, #tpu.memory_space<vmem>>, %arg7: memref<1x128xf32, #tpu.memory_space<vmem>>, %arg8: memref<32x128xbf16, #tpu.memory_space<vmem>>, %arg9: memref<1x128xf32, #tpu.memory_space<vmem>>, %arg10: memref<1x128xf32, #tpu.memory_space<vmem>>, %arg11: memref<1x128xf32, #tpu.memory_space<vmem>>, %arg12: memref<128x128xbf16, #tpu.memory_space<vmem>>, %arg13: memref<1x128xf32, #tpu.memory_space<vmem>>, %arg14: memref<128x128xbf16, #tpu.memory_space<vmem>>, %arg15: memref<1x128xf32, #tpu.memory_space<vmem>>, %arg16: memref<16x8x128xbf16, #tpu.memory_space<vmem>>) attributes {dimension_semantics = [#tpu.dimension_semantics<parallel>], iteration_bounds = array<i64: 2>, scalar_prefetch = 0 : i64, scratch_operands = 0 : i64, tpu.core_type = #tpu.core_type<tc>, window_params = [{transform_indices = @transform_0, window_bounds = array<i64: 16, 8, 128>}, {pipeline_mode = #tpu.pipeline_mode<synchronous>, transform_indices = @transform_1, window_bounds = array<i64: 128, 128>}, {pipeline_mode = #tpu.pipeline_mode<synchronous>, transform_indices = @transform_2, window_bounds = array<i64: 8, 128>}, {pipeline_mode = #tpu.pipeline_mode<synchronous>, transform_indices = @transform_3, window_bounds = array<i64: 1, 128>}, {pipeline_mode = #tpu.pipeline_mode<synchronous>, transform_indices = @transform_4, window_bounds = array<i64: 1, 128>}, {pipeline_mode = #tpu.pipeline_mode<synchronous>, transform_indices = @transform_5, window_bounds = array<i64: 128, 128>}, {pipeline_mode = #tpu.pipeline_mode<synchronous>, transform_indices = @transform_6, window_bounds = array<i64: 1, 128>}, {pipeline_mode = #tpu.pipeline_mode<synchronous>, transform_indices = @transform_7, window_bounds = array<i64: 32, 128>}, {pipeline_mode = #tpu.pipeline_mode<synchronous>, transform_indices = @transform_8, window_bounds = array<i64: 1, 128>}, {pipeline_mode = #tpu.pipeline_mode<synchronous>, transform_indices = @transform_9, window_bounds = array<i64: 1, 128>}, {pipeline_mode = #tpu.pipeline_mode<synchronous>, transform_indices = @transform_10, window_bounds = array<i64: 1, 128>}, {pipeline_mode = #tpu.pipeline_mode<synchronous>, transform_indices = @transform_11, window_bounds = array<i64: 128, 128>}, {pipeline_mode = #tpu.pipeline_mode<synchronous>, transform_indices = @transform_12, window_bounds = array<i64: 1, 128>}, {pipeline_mode = #tpu.pipeline_mode<synchronous>, transform_indices = @transform_13, window_bounds = array<i64: 128, 128>}, {pipeline_mode = #tpu.pipeline_mode<synchronous>, transform_indices = @transform_14, window_bounds = array<i64: 1, 128>}, {transform_indices = @transform_15, window_bounds = array<i64: 16, 8, 128>}]} {
    %c0 = arith.constant 0 : index
    %c0_0 = arith.constant 0 : index
    %c0_1 = arith.constant 0 : index
    %0 = vector.load %arg1[%c0, %c0_0, %c0_1] : memref<16x8x128xbf16, #tpu.memory_space<vmem>>, vector<16x8x128xbf16>
    %1 = vector.shape_cast %0 : vector<16x8x128xbf16> to vector<128x128xbf16>
    %c0_2 = arith.constant 0 : index
    %c0_3 = arith.constant 0 : index
    %2 = vector.load %arg2[%c0_2, %c0_3] : memref<128x128xbf16, #tpu.memory_space<vmem>>, vector<128x128xbf16>
    %cst = arith.constant dense<0.000000e+00> : vector<128x128xf32>
    %3 = tpu.matmul %1, %2, %cst {dimension_numbers = #tpu.dot_dimension_numbers<[1], [0], [0], [1], [0, 0, 1, 1], [], []>} : vector<128x128xbf16>, vector<128x128xbf16>, vector<128x128xf32> -> vector<128x128xf32>
    %4 = vector.shape_cast %3 : vector<128x128xf32> to vector<16x8x128xf32>
    %c0_4 = arith.constant 0 : index
    %c0_5 = arith.constant 0 : index
    %5 = vector.load %arg3[%c0_4, %c0_5] : memref<8x128xf32, #tpu.memory_space<vmem>>, vector<8x128xf32>
    %6 = vector.shape_cast %5 : vector<8x128xf32> to vector<1x8x128xf32>
    %7 = vector.broadcast %6 : vector<1x8x128xf32> to vector<16x8x128xf32>
    %8 = arith.addf %4, %7 : vector<16x8x128xf32>
    %9 = vector.shape_cast %8 : vector<16x8x128xf32> to vector<128x128xf32>
    %c0_6 = arith.constant 0 : index
    %c0_7 = arith.constant 0 : index
    %10 = vector.load %arg4[%c0_6, %c0_7] : memref<1x128xf32, #tpu.memory_space<vmem>>, vector<1x128xf32>
    %c0_8 = arith.constant 0 : index
    %c0_9 = arith.constant 0 : index
    %11 = vector.load %arg5[%c0_8, %c0_9] : memref<1x128xf32, #tpu.memory_space<vmem>>, vector<1x128xf32>
    %cst_10 = arith.constant dense<0.000000e+00> : vector<128xf32>
    %12 = vector.multi_reduction <add>, %9, %cst_10 [1] : vector<128x128xf32> to vector<128xf32>
    %13 = vector.shape_cast %12 : vector<128xf32> to vector<128x1xf32>
    %14 = arith.mulf %9, %9 : vector<128x128xf32>
    %cst_11 = arith.constant dense<0.000000e+00> : vector<128xf32>
    %15 = vector.multi_reduction <add>, %14, %cst_11 [1] : vector<128x128xf32> to vector<128xf32>
    %16 = vector.shape_cast %15 : vector<128xf32> to vector<128x1xf32>
    %cst_12 = arith.constant 3.125000e-02 : f32
    %17 = vector.broadcast %cst_12 : f32 to vector<128x1xf32>
    %18 = arith.mulf %13, %17 : vector<128x1xf32>
    %cst_13 = arith.constant 3.125000e-02 : f32
    %19 = vector.broadcast %cst_13 : f32 to vector<128x1xf32>
    %20 = arith.mulf %16, %19 : vector<128x1xf32>
    %21 = arith.mulf %18, %18 : vector<128x1xf32>
    %22 = arith.subf %20, %21 : vector<128x1xf32>
    %cst_14 = arith.constant 0.000000e+00 : f32
    %23 = vector.broadcast %cst_14 : f32 to vector<128x1xf32>
    %24 = arith.maximumf %22, %23 : vector<128x1xf32>
    %25 = vector.broadcast %18 : vector<128x1xf32> to vector<128x128xf32>
    %26 = arith.subf %9, %25 : vector<128x128xf32>
    %cst_15 = arith.constant 9.99999997E-7 : f32
    %27 = vector.broadcast %cst_15 : f32 to vector<128x1xf32>
    %28 = arith.addf %24, %27 : vector<128x1xf32>
    %29 = math.rsqrt %28 : vector<128x1xf32>
    %30 = vector.broadcast %29 : vector<128x1xf32> to vector<128x128xf32>
    %31 = arith.mulf %26, %30 : vector<128x128xf32>
    %32 = vector.broadcast %10 : vector<1x128xf32> to vector<128x128xf32>
    %33 = arith.mulf %31, %32 : vector<128x128xf32>
    %34 = vector.broadcast %11 : vector<1x128xf32> to vector<128x128xf32>
    %35 = arith.addf %33, %34 : vector<128x128xf32>
    %36 = arith.truncf %35 : vector<128x128xf32> to vector<128x128xbf16>
    %c0_16 = arith.constant 0 : index
    %c0_17 = arith.constant 0 : index
    %37 = vector.load %arg6[%c0_16, %c0_17] : memref<128x128xbf16, #tpu.memory_space<vmem>>, vector<128x128xbf16>
    %cst_18 = arith.constant dense<0.000000e+00> : vector<128x128xf32>
    %38 = tpu.matmul %36, %37, %cst_18 {dimension_numbers = #tpu.dot_dimension_numbers<[1], [0], [0], [1], [0, 0, 1, 1], [], []>} : vector<128x128xbf16>, vector<128x128xbf16>, vector<128x128xf32> -> vector<128x128xf32>
    %c0_19 = arith.constant 0 : index
    %c0_20 = arith.constant 0 : index
    %39 = vector.load %arg7[%c0_19, %c0_20] : memref<1x128xf32, #tpu.memory_space<vmem>>, vector<1x128xf32>
    %40 = vector.broadcast %39 : vector<1x128xf32> to vector<128x128xf32>
    %41 = arith.addf %38, %40 : vector<128x128xf32>
    %42 = arith.truncf %41 : vector<128x128xf32> to vector<128x128xbf16>
    %43 = vector.shape_cast %42 : vector<128x128xbf16> to vector<16x8x128xbf16>
    %44 = vector.extract_strided_slice %43 {offsets = [0, 0, 0], sizes = [16, 8, 8], strides = [1, 1, 1]} : vector<16x8x128xbf16> to vector<16x8x8xbf16>
    %45 = vector.extract_strided_slice %43 {offsets = [0, 0, 32], sizes = [16, 8, 8], strides = [1, 1, 1]} : vector<16x8x128xbf16> to vector<16x8x8xbf16>
    %46 = vector.extract_strided_slice %43 {offsets = [0, 0, 64], sizes = [16, 8, 8], strides = [1, 1, 1]} : vector<16x8x128xbf16> to vector<16x8x8xbf16>
    "tpu.trace_start"() <{level = 10 : i32, message = "bqd,bkd->bqk"}> : () -> ()
    %cst_21 = arith.constant dense<0.000000e+00> : vector<16x8x8xf32>
    %47 = tpu.matmul %44, %45, %cst_21 {dimension_numbers = #tpu.dot_dimension_numbers<[2], [2], [1], [1], [0, 0, 0, 1, 1, 1], [0], [0]>} : vector<16x8x8xbf16>, vector<16x8x8xbf16>, vector<16x8x8xf32> -> vector<16x8x8xf32>
    "tpu.trace_stop"() : () -> ()
    %cst_22 = arith.constant dense<0xFF800000> : vector<16x8xf32>
    %48 = vector.multi_reduction <maximumf>, %47, %cst_22 [2] : vector<16x8x8xf32> to vector<16x8xf32>
    %49 = vector.shape_cast %48 : vector<16x8xf32> to vector<16x8x1xf32>
    %50 = vector.broadcast %49 : vector<16x8x1xf32> to vector<16x8x8xf32>
    %51 = arith.subf %47, %50 : vector<16x8x8xf32>
    %52 = math.exp %51 : vector<16x8x8xf32>
    %cst_23 = arith.constant dense<0.000000e+00> : vector<16x8xf32>
    %53 = vector.multi_reduction <add>, %52, %cst_23 [2] : vector<16x8x8xf32> to vector<16x8xf32>
    %54 = vector.shape_cast %53 : vector<16x8xf32> to vector<16x8x1xf32>
    %55 = tpu.reciprocal %54 {approx = true} : vector<16x8x1xf32> -> vector<16x8x1xf32>
    %56 = vector.broadcast %55 : vector<16x8x1xf32> to vector<16x8x8xf32>
    %57 = arith.mulf %52, %56 : vector<16x8x8xf32>
    %58 = arith.truncf %57 : vector<16x8x8xf32> to vector<16x8x8xbf16>
    "tpu.trace_start"() <{level = 10 : i32, message = "bqk,bkd->bqd"}> : () -> ()
    %cst_24 = arith.constant dense<0.000000e+00> : vector<16x8x8xf32>
    %59 = tpu.matmul %58, %46, %cst_24 {dimension_numbers = #tpu.dot_dimension_numbers<[2], [1], [1], [2], [0, 0, 0, 1, 1, 2], [0], [0]>} : vector<16x8x8xbf16>, vector<16x8x8xbf16>, vector<16x8x8xf32> -> vector<16x8x8xf32>
    "tpu.trace_stop"() : () -> ()
    %60 = vector.extract_strided_slice %43 {offsets = [0, 0, 8], sizes = [16, 8, 8], strides = [1, 1, 1]} : vector<16x8x128xbf16> to vector<16x8x8xbf16>
    %61 = vector.extract_strided_slice %43 {offsets = [0, 0, 40], sizes = [16, 8, 8], strides = [1, 1, 1]} : vector<16x8x128xbf16> to vector<16x8x8xbf16>
    %62 = vector.extract_strided_slice %43 {offsets = [0, 0, 72], sizes = [16, 8, 8], strides = [1, 1, 1]} : vector<16x8x128xbf16> to vector<16x8x8xbf16>
    "tpu.trace_start"() <{level = 10 : i32, message = "bqd,bkd->bqk"}> : () -> ()
    %cst_25 = arith.constant dense<0.000000e+00> : vector<16x8x8xf32>
    %63 = tpu.matmul %60, %61, %cst_25 {dimension_numbers = #tpu.dot_dimension_numbers<[2], [2], [1], [1], [0, 0, 0, 1, 1, 1], [0], [0]>} : vector<16x8x8xbf16>, vector<16x8x8xbf16>, vector<16x8x8xf32> -> vector<16x8x8xf32>
    "tpu.trace_stop"() : () -> ()
    %cst_26 = arith.constant dense<0xFF800000> : vector<16x8xf32>
    %64 = vector.multi_reduction <maximumf>, %63, %cst_26 [2] : vector<16x8x8xf32> to vector<16x8xf32>
    %65 = vector.shape_cast %64 : vector<16x8xf32> to vector<16x8x1xf32>
    %66 = vector.broadcast %65 : vector<16x8x1xf32> to vector<16x8x8xf32>
    %67 = arith.subf %63, %66 : vector<16x8x8xf32>
    %68 = math.exp %67 : vector<16x8x8xf32>
    %cst_27 = arith.constant dense<0.000000e+00> : vector<16x8xf32>
    %69 = vector.multi_reduction <add>, %68, %cst_27 [2] : vector<16x8x8xf32> to vector<16x8xf32>
    %70 = vector.shape_cast %69 : vector<16x8xf32> to vector<16x8x1xf32>
    %71 = tpu.reciprocal %70 {approx = true} : vector<16x8x1xf32> -> vector<16x8x1xf32>
    %72 = vector.broadcast %71 : vector<16x8x1xf32> to vector<16x8x8xf32>
    %73 = arith.mulf %68, %72 : vector<16x8x8xf32>
    %74 = arith.truncf %73 : vector<16x8x8xf32> to vector<16x8x8xbf16>
    "tpu.trace_start"() <{level = 10 : i32, message = "bqk,bkd->bqd"}> : () -> ()
    %cst_28 = arith.constant dense<0.000000e+00> : vector<16x8x8xf32>
    %75 = tpu.matmul %74, %62, %cst_28 {dimension_numbers = #tpu.dot_dimension_numbers<[2], [1], [1], [2], [0, 0, 0, 1, 1, 2], [0], [0]>} : vector<16x8x8xbf16>, vector<16x8x8xbf16>, vector<16x8x8xf32> -> vector<16x8x8xf32>
    "tpu.trace_stop"() : () -> ()
    %76 = vector.extract_strided_slice %43 {offsets = [0, 0, 16], sizes = [16, 8, 8], strides = [1, 1, 1]} : vector<16x8x128xbf16> to vector<16x8x8xbf16>
    %77 = vector.extract_strided_slice %43 {offsets = [0, 0, 48], sizes = [16, 8, 8], strides = [1, 1, 1]} : vector<16x8x128xbf16> to vector<16x8x8xbf16>
    %78 = vector.extract_strided_slice %43 {offsets = [0, 0, 80], sizes = [16, 8, 8], strides = [1, 1, 1]} : vector<16x8x128xbf16> to vector<16x8x8xbf16>
    "tpu.trace_start"() <{level = 10 : i32, message = "bqd,bkd->bqk"}> : () -> ()
    %cst_29 = arith.constant dense<0.000000e+00> : vector<16x8x8xf32>
    %79 = tpu.matmul %76, %77, %cst_29 {dimension_numbers = #tpu.dot_dimension_numbers<[2], [2], [1], [1], [0, 0, 0, 1, 1, 1], [0], [0]>} : vector<16x8x8xbf16>, vector<16x8x8xbf16>, vector<16x8x8xf32> -> vector<16x8x8xf32>
    "tpu.trace_stop"() : () -> ()
    %cst_30 = arith.constant dense<0xFF800000> : vector<16x8xf32>
    %80 = vector.multi_reduction <maximumf>, %79, %cst_30 [2] : vector<16x8x8xf32> to vector<16x8xf32>
    %81 = vector.shape_cast %80 : vector<16x8xf32> to vector<16x8x1xf32>
    %82 = vector.broadcast %81 : vector<16x8x1xf32> to vector<16x8x8xf32>
    %83 = arith.subf %79, %82 : vector<16x8x8xf32>
    %84 = math.exp %83 : vector<16x8x8xf32>
    %cst_31 = arith.constant dense<0.000000e+00> : vector<16x8xf32>
    %85 = vector.multi_reduction <add>, %84, %cst_31 [2] : vector<16x8x8xf32> to vector<16x8xf32>
    %86 = vector.shape_cast %85 : vector<16x8xf32> to vector<16x8x1xf32>
    %87 = tpu.reciprocal %86 {approx = true} : vector<16x8x1xf32> -> vector<16x8x1xf32>
    %88 = vector.broadcast %87 : vector<16x8x1xf32> to vector<16x8x8xf32>
    %89 = arith.mulf %84, %88 : vector<16x8x8xf32>
    %90 = arith.truncf %89 : vector<16x8x8xf32> to vector<16x8x8xbf16>
    "tpu.trace_start"() <{level = 10 : i32, message = "bqk,bkd->bqd"}> : () -> ()
    %cst_32 = arith.constant dense<0.000000e+00> : vector<16x8x8xf32>
    %91 = tpu.matmul %90, %78, %cst_32 {dimension_numbers = #tpu.dot_dimension_numbers<[2], [1], [1], [2], [0, 0, 0, 1, 1, 2], [0], [0]>} : vector<16x8x8xbf16>, vector<16x8x8xbf16>, vector<16x8x8xf32> -> vector<16x8x8xf32>
    "tpu.trace_stop"() : () -> ()
    %92 = vector.extract_strided_slice %43 {offsets = [0, 0, 24], sizes = [16, 8, 8], strides = [1, 1, 1]} : vector<16x8x128xbf16> to vector<16x8x8xbf16>
    %93 = vector.extract_strided_slice %43 {offsets = [0, 0, 56], sizes = [16, 8, 8], strides = [1, 1, 1]} : vector<16x8x128xbf16> to vector<16x8x8xbf16>
    %94 = vector.extract_strided_slice %43 {offsets = [0, 0, 88], sizes = [16, 8, 8], strides = [1, 1, 1]} : vector<16x8x128xbf16> to vector<16x8x8xbf16>
    "tpu.trace_start"() <{level = 10 : i32, message = "bqd,bkd->bqk"}> : () -> ()
    %cst_33 = arith.constant dense<0.000000e+00> : vector<16x8x8xf32>
    %95 = tpu.matmul %92, %93, %cst_33 {dimension_numbers = #tpu.dot_dimension_numbers<[2], [2], [1], [1], [0, 0, 0, 1, 1, 1], [0], [0]>} : vector<16x8x8xbf16>, vector<16x8x8xbf16>, vector<16x8x8xf32> -> vector<16x8x8xf32>
    "tpu.trace_stop"() : () -> ()
    %cst_34 = arith.constant dense<0xFF800000> : vector<16x8xf32>
    %96 = vector.multi_reduction <maximumf>, %95, %cst_34 [2] : vector<16x8x8xf32> to vector<16x8xf32>
    %97 = vector.shape_cast %96 : vector<16x8xf32> to vector<16x8x1xf32>
    %98 = vector.broadcast %97 : vector<16x8x1xf32> to vector<16x8x8xf32>
    %99 = arith.subf %95, %98 : vector<16x8x8xf32>
    %100 = math.exp %99 : vector<16x8x8xf32>
    %cst_35 = arith.constant dense<0.000000e+00> : vector<16x8xf32>
    %101 = vector.multi_reduction <add>, %100, %cst_35 [2] : vector<16x8x8xf32> to vector<16x8xf32>
    %102 = vector.shape_cast %101 : vector<16x8xf32> to vector<16x8x1xf32>
    %103 = tpu.reciprocal %102 {approx = true} : vector<16x8x1xf32> -> vector<16x8x1xf32>
    %104 = vector.broadcast %103 : vector<16x8x1xf32> to vector<16x8x8xf32>
    %105 = arith.mulf %100, %104 : vector<16x8x8xf32>
    %106 = arith.truncf %105 : vector<16x8x8xf32> to vector<16x8x8xbf16>
    "tpu.trace_start"() <{level = 10 : i32, message = "bqk,bkd->bqd"}> : () -> ()
    %cst_36 = arith.constant dense<0.000000e+00> : vector<16x8x8xf32>
    %107 = tpu.matmul %106, %94, %cst_36 {dimension_numbers = #tpu.dot_dimension_numbers<[2], [1], [1], [2], [0, 0, 0, 1, 1, 2], [0], [0]>} : vector<16x8x8xbf16>, vector<16x8x8xbf16>, vector<16x8x8xf32> -> vector<16x8x8xf32>
    "tpu.trace_stop"() : () -> ()
    %108 = tpu.concatenate %59, %75, %91, %107 in 2 : vector<16x8x8xf32>, vector<16x8x8xf32>, vector<16x8x8xf32>, vector<16x8x8xf32> -> vector<16x8x32xf32>
    %109 = vector.shape_cast %108 : vector<16x8x32xf32> to vector<128x32xf32>
    %110 = arith.truncf %109 : vector<128x32xf32> to vector<128x32xbf16>
    %c0_37 = arith.constant 0 : index
    %c0_38 = arith.constant 0 : index
    %111 = vector.load %arg8[%c0_37, %c0_38] : memref<32x128xbf16, #tpu.memory_space<vmem>>, vector<32x128xbf16>
    %cst_39 = arith.constant dense<0.000000e+00> : vector<128x128xf32>
    %112 = tpu.matmul %110, %111, %cst_39 {dimension_numbers = #tpu.dot_dimension_numbers<[1], [0], [0], [1], [0, 0, 1, 1], [], []>} : vector<128x32xbf16>, vector<32x128xbf16>, vector<128x128xf32> -> vector<128x128xf32>
    %113 = arith.addf %9, %112 : vector<128x128xf32>
    %c0_40 = arith.constant 0 : index
    %c0_41 = arith.constant 0 : index
    %114 = vector.load %arg9[%c0_40, %c0_41] : memref<1x128xf32, #tpu.memory_space<vmem>>, vector<1x128xf32>
    %115 = vector.broadcast %114 : vector<1x128xf32> to vector<128x128xf32>
    %116 = arith.addf %113, %115 : vector<128x128xf32>
    %c0_42 = arith.constant 0 : index
    %c0_43 = arith.constant 0 : index
    %117 = vector.load %arg10[%c0_42, %c0_43] : memref<1x128xf32, #tpu.memory_space<vmem>>, vector<1x128xf32>
    %c0_44 = arith.constant 0 : index
    %c0_45 = arith.constant 0 : index
    %118 = vector.load %arg11[%c0_44, %c0_45] : memref<1x128xf32, #tpu.memory_space<vmem>>, vector<1x128xf32>
    %cst_46 = arith.constant dense<0.000000e+00> : vector<128xf32>
    %119 = vector.multi_reduction <add>, %116, %cst_46 [1] : vector<128x128xf32> to vector<128xf32>
    %120 = vector.shape_cast %119 : vector<128xf32> to vector<128x1xf32>
    %121 = arith.mulf %116, %116 : vector<128x128xf32>
    %cst_47 = arith.constant dense<0.000000e+00> : vector<128xf32>
    %122 = vector.multi_reduction <add>, %121, %cst_47 [1] : vector<128x128xf32> to vector<128xf32>
    %123 = vector.shape_cast %122 : vector<128xf32> to vector<128x1xf32>
    %cst_48 = arith.constant 3.125000e-02 : f32
    %124 = vector.broadcast %cst_48 : f32 to vector<128x1xf32>
    %125 = arith.mulf %120, %124 : vector<128x1xf32>
    %cst_49 = arith.constant 3.125000e-02 : f32
    %126 = vector.broadcast %cst_49 : f32 to vector<128x1xf32>
    %127 = arith.mulf %123, %126 : vector<128x1xf32>
    %128 = arith.mulf %125, %125 : vector<128x1xf32>
    %129 = arith.subf %127, %128 : vector<128x1xf32>
    %cst_50 = arith.constant 0.000000e+00 : f32
    %130 = vector.broadcast %cst_50 : f32 to vector<128x1xf32>
    %131 = arith.maximumf %129, %130 : vector<128x1xf32>
    %132 = vector.broadcast %125 : vector<128x1xf32> to vector<128x128xf32>
    %133 = arith.subf %116, %132 : vector<128x128xf32>
    %cst_51 = arith.constant 9.99999997E-7 : f32
    %134 = vector.broadcast %cst_51 : f32 to vector<128x1xf32>
    %135 = arith.addf %131, %134 : vector<128x1xf32>
    %136 = math.rsqrt %135 : vector<128x1xf32>
    %137 = vector.broadcast %136 : vector<128x1xf32> to vector<128x128xf32>
    %138 = arith.mulf %133, %137 : vector<128x128xf32>
    %139 = vector.broadcast %117 : vector<1x128xf32> to vector<128x128xf32>
    %140 = arith.mulf %138, %139 : vector<128x128xf32>
    %141 = vector.broadcast %118 : vector<1x128xf32> to vector<128x128xf32>
    %142 = arith.addf %140, %141 : vector<128x128xf32>
    %143 = arith.truncf %142 : vector<128x128xf32> to vector<128x128xbf16>
    %c0_52 = arith.constant 0 : index
    %c0_53 = arith.constant 0 : index
    %144 = vector.load %arg12[%c0_52, %c0_53] : memref<128x128xbf16, #tpu.memory_space<vmem>>, vector<128x128xbf16>
    %cst_54 = arith.constant dense<0.000000e+00> : vector<128x128xf32>
    %145 = tpu.matmul %143, %144, %cst_54 {dimension_numbers = #tpu.dot_dimension_numbers<[1], [0], [0], [1], [0, 0, 1, 1], [], []>} : vector<128x128xbf16>, vector<128x128xbf16>, vector<128x128xf32> -> vector<128x128xf32>
    %c0_55 = arith.constant 0 : index
    %c0_56 = arith.constant 0 : index
    %146 = vector.load %arg13[%c0_55, %c0_56] : memref<1x128xf32, #tpu.memory_space<vmem>>, vector<1x128xf32>
    %147 = vector.broadcast %146 : vector<1x128xf32> to vector<128x128xf32>
    %148 = arith.addf %145, %147 : vector<128x128xf32>
    %cst_57 = arith.constant 0.000000e+00 : f32
    %149 = vector.broadcast %cst_57 : f32 to vector<128x128xf32>
    %150 = arith.maximumf %148, %149 : vector<128x128xf32>
    %151 = arith.truncf %150 : vector<128x128xf32> to vector<128x128xbf16>
    %c0_58 = arith.constant 0 : index
    %c0_59 = arith.constant 0 : index
    %152 = vector.load %arg14[%c0_58, %c0_59] : memref<128x128xbf16, #tpu.memory_space<vmem>>, vector<128x128xbf16>
    %cst_60 = arith.constant dense<0.000000e+00> : vector<128x128xf32>
    %153 = tpu.matmul %151, %152, %cst_60 {dimension_numbers = #tpu.dot_dimension_numbers<[1], [0], [0], [1], [0, 0, 1, 1], [], []>} : vector<128x128xbf16>, vector<128x128xbf16>, vector<128x128xf32> -> vector<128x128xf32>
    %c0_61 = arith.constant 0 : index
    %c0_62 = arith.constant 0 : index
    %154 = vector.load %arg15[%c0_61, %c0_62] : memref<1x128xf32, #tpu.memory_space<vmem>>, vector<1x128xf32>
    %155 = vector.broadcast %154 : vector<1x128xf32> to vector<128x128xf32>
    %156 = arith.addf %153, %155 : vector<128x128xf32>
    %157 = arith.addf %116, %156 : vector<128x128xf32>
    %158 = vector.shape_cast %157 : vector<128x128xf32> to vector<16x8x128xf32>
    %159 = arith.truncf %158 : vector<16x8x128xf32> to vector<16x8x128xbf16>
    %c0_63 = arith.constant 0 : index
    %c0_64 = arith.constant 0 : index
    %c0_65 = arith.constant 0 : index
    %160 = vector.load %arg16[%c0_63, %c0_64, %c0_65] : memref<16x8x128xbf16, #tpu.memory_space<vmem>>, vector<16x8x128xbf16>
    tpu.vector_store %arg16[%c0_63, %c0_64, %c0_65], %159 {strides = array<i32>} : memref<16x8x128xbf16, #tpu.memory_space<vmem>>, vector<16x8x128xbf16>,
    return
  }
  func.func @transform_0(%arg0: i32) -> (i32, i32, i32) {
    %c0_i32 = arith.constant 0 : i32
    %c0_i32_0 = arith.constant 0 : i32
    %c0_i32_1 = arith.constant 0 : i32
    return %arg0, %c0_i32, %c0_i32_0 : i32, i32, i32
  }
  func.func @transform_1(%arg0: i32) -> (i32, i32) {
    %c0_i32 = arith.constant 0 : i32
    %c0_i32_0 = arith.constant 0 : i32
    %c0_i32_1 = arith.constant 0 : i32
    return %c0_i32, %c0_i32_0 : i32, i32
  }
  func.func @transform_2(%arg0: i32) -> (i32, i32) {
    %c0_i32 = arith.constant 0 : i32
    %c0_i32_0 = arith.constant 0 : i32
    %c0_i32_1 = arith.constant 0 : i32
    return %c0_i32, %c0_i32_0 : i32, i32
  }
  func.func @transform_3(%arg0: i32) -> (i32, i32) {
    %c0_i32 = arith.constant 0 : i32
    %c0_i32_0 = arith.constant 0 : i32
    %c0_i32_1 = arith.constant 0 : i32
    return %c0_i32, %c0_i32_0 : i32, i32
  }
  func.func @transform_4(%arg0: i32) -> (i32, i32) {
    %c0_i32 = arith.constant 0 : i32
    %c0_i32_0 = arith.constant 0 : i32
    %c0_i32_1 = arith.constant 0 : i32
    return %c0_i32, %c0_i32_0 : i32, i32
  }
  func.func @transform_5(%arg0: i32) -> (i32, i32) {
    %c0_i32 = arith.constant 0 : i32
    %c0_i32_0 = arith.constant 0 : i32
    %c0_i32_1 = arith.constant 0 : i32
    return %c0_i32, %c0_i32_0 : i32, i32
  }
  func.func @transform_6(%arg0: i32) -> (i32, i32) {
    %c0_i32 = arith.constant 0 : i32
    %c0_i32_0 = arith.constant 0 : i32
    %c0_i32_1 = arith.constant 0 : i32
    return %c0_i32, %c0_i32_0 : i32, i32
  }
  func.func @transform_7(%arg0: i32) -> (i32, i32) {
    %c0_i32 = arith.constant 0 : i32
    %c0_i32_0 = arith.constant 0 : i32
    %c0_i32_1 = arith.constant 0 : i32
    return %c0_i32, %c0_i32_0 : i32, i32
  }
  func.func @transform_8(%arg0: i32) -> (i32, i32) {
    %c0_i32 = arith.constant 0 : i32
    %c0_i32_0 = arith.constant 0 : i32
    %c0_i32_1 = arith.constant 0 : i32
    return %c0_i32, %c0_i32_0 : i32, i32
  }
  func.func @transform_9(%arg0: i32) -> (i32, i32) {
    %c0_i32 = arith.constant 0 : i32
    %c0_i32_0 = arith.constant 0 : i32
    %c0_i32_1 = arith.constant 0 : i32
    return %c0_i32, %c0_i32_0 : i32, i32
  }
  func.func @transform_10(%arg0: i32) -> (i32, i32) {
    %c0_i32 = arith.constant 0 : i32
    %c0_i32_0 = arith.constant 0 : i32
    %c0_i32_1 = arith.constant 0 : i32
    return %c0_i32, %c0_i32_0 : i32, i32
  }
  func.func @transform_11(%arg0: i32) -> (i32, i32) {
    %c0_i32 = arith.constant 0 : i32
    %c0_i32_0 = arith.constant 0 : i32
    %c0_i32_1 = arith.constant 0 : i32
    return %c0_i32, %c0_i32_0 : i32, i32
  }
  func.func @transform_12(%arg0: i32) -> (i32, i32) {
    %c0_i32 = arith.constant 0 : i32
    %c0_i32_0 = arith.constant 0 : i32
    %c0_i32_1 = arith.constant 0 : i32
    return %c0_i32, %c0_i32_0 : i32, i32
  }
  func.func @transform_13(%arg0: i32) -> (i32, i32) {
    %c0_i32 = arith.constant 0 : i32
    %c0_i32_0 = arith.constant 0 : i32
    %c0_i32_1 = arith.constant 0 : i32
    return %c0_i32, %c0_i32_0 : i32, i32
  }
  func.func @transform_14(%arg0: i32) -> (i32, i32) {
    %c0_i32 = arith.constant 0 : i32
    %c0_i32_0 = arith.constant 0 : i32
    %c0_i32_1 = arith.constant 0 : i32
    return %c0_i32, %c0_i32_0 : i32, i32
  }
  func.func @transform_15(%arg0: i32) -> (i32, i32, i32) {
    %c0_i32 = arith.constant 0 : i32
    %c0_i32_0 = arith.constant 0 : i32
    %c0_i32_1 = arith.constant 0 : i32
    return %arg0, %c0_i32, %c0_i32_0 : i32, i32, i32
  }
}

</mosaic_0001>

<bundles_post_ra>
// kernel: tpu_custom_call.1
= control target key start
LH: loop header
LB: loop body
LE: loop exit
PB: predicated region body
PF: predicated region fallthrough
CT: control target
= control target key end

     0   :  { %s10313_s0 = inlined_call_operand.hbm [shape: bf16[32,8,128], index: 0, kind: input, shape index: {}]   ;;  %s10314_s1 = inlined_call_operand.hbm [shape: bf16[128,128], index: 1, kind: input, shape index: {}]   ;;  %s10315_s2 = inlined_call_operand.hbm [shape: f32[8,128], index: 2, kind: input, shape index: {}]   ;;  %s10316_s3 = inlined_call_operand.vmem [shape: f32[1,128], index: 3, kind: input, shape index: {}]   ;;  %s10317_s4 = inlined_call_operand.vmem [shape: f32[1,128], index: 4, kind: input, shape index: {}]   ;;  %s10318_s5 = inlined_call_operand.hbm [shape: bf16[128,128], index: 5, kind: input, shape index: {}]   ;;  %s10319_s6 = inlined_call_operand.vmem [shape: f32[1,128], index: 6, kind: input, shape index: {}]   ;;  %s10320_s7 = inlined_call_operand.hbm [shape: bf16[32,128], index: 7, kind: input, shape index: {}]   ;;  %s10321_s8 = inlined_call_operand.vmem [shape: f32[1,128], index: 8, kind: input, shape index: {}]   ;;  %s10322_s9 = inlined_call_operand.vmem [shape: f32[1,128], index: 9, kind: input, shape index: {}]   ;;  %s10323_s10 = inlined_call_operand.vmem [shape: f32[1,128], index: 10, kind: input, shape index: {}]   ;;  %s10324_s11 = inlined_call_operand.hbm [shape: bf16[128,128], index: 11, kind: input, shape index: {}]   ;;  %s10325_s12 = inlined_call_operand.vmem [shape: f32[1,128], index: 12, kind: input, shape index: {}]   ;;  %s10326_s13 = inlined_call_operand.hbm [shape: bf16[128,128], index: 13, kind: input, shape index: {}]   ;;  %s10327_s14 = inlined_call_operand.vmem [shape: f32[1,128], index: 14, kind: input, shape index: {}]   ;;  %s10328_s15 = inlined_call_operand.hbm [shape: bf16[32,8,128], index: 15, kind: output, shape index: {}]  }
   0x1   :  { %10355 = sst [smem:[#allocation60_spill]] %s10314_s1 }
   0x2   :  { %10356 = sst [smem:[#allocation61_spill]] %s10315_s2 }
   0x3   :  { %10357 = sst [smem:[#allocation62_spill]] %s10318_s5 }
   0x4   :  { %10358 = sst [smem:[#allocation63_spill]] %s10320_s7 }
   0x5   :  { %10359 = sst [smem:[#allocation64_spill]] %s10324_s11 }
   0x6   :  { %10360 = sst [smem:[#allocation65_spill]] %s10325_s12 }
   0x7   :  { %10361 = sst [smem:[#allocation66_spill]] %s10326_s13 }
   0x8   :  { %10362 = sst [smem:[#allocation67_spill]] %s10327_s14 }
   0x9   :  { %10363 = sst [smem:[#allocation68_spill]] %s10328_s15 }
   0xa   :  { %20 = vsyncpa [#allocation3], 0 }
   0xb   :  { %22 = vsyncpa [#allocation3 + $0x1], 0 }
   0xc   :  { %23 = vsyncpa [#allocation6], 0 }
   0xd   :  { %24 = vsyncpa [#allocation9], 0 }
   0xe   :  { %25 = vsyncpa [#allocation12], 0 }
   0xf   :  { %26 = vsyncpa [#allocation4], 0 }
  0x10   :  { %28 = vsyncpa [#allocation4 + $0x1], 0  ;;  %s7606_s18 = smov 0   ;;  %s7608_s19 = smov 0  }
  0x11   :  { %s7610_s20 = smov 0   ;;  %s7612_s21 = smov 0  }
  0x12 LB: > { %s10364_s1 = sld [smem:[#allocation60_spill]]  ;;  %s7630_s25 = sadd.s32 4294967295, %s7501_s21   ;;  %s7501_s21 = sphi %s7612_s21, %s10493_s21   ;;  %s7497_s20 = sphi %s7610_s20, %s10492_s20   ;;  %s7493_s19 = sphi %s7608_s19, %s10491_s19   ;;  %s7489_s18 = sphi %s7606_s18, %s10490_s18  }
  0x13   : > { %p6205_p0 = scmp.ge.s32.totalorder %s7501_s21, 1  ;;  %p55_p1 = scmp.eq.s32.totalorder %s7630_s25, 0 }
  0x14   : > { %p385_p2 = scmp.lt.s32.totalorder %s7501_s21, 3  ;;  %s7503_s27 = smov [#allocation5]  }
  0x15   : > { %s398_s28 = sshll.u32 %s7503_s27, 4  ;;  %s10366_s5 = sld [smem:[#allocation62_spill]]  ;;  %s399_s28 = int_to_ptr.vmem [resolvable:$true] %s398_s28 }
  0x16   : > { %p7635_p3 = pnand %p6205_p0, %p385_p2  ;;  %s10368_s11 = sld [smem:[#allocation64_spill]] }
  0x17   : > { %s10330_s14 = smov 64   ;;  %s10331_s12 = smov 4  }
  0x18   : > { %s396_s24 = sshll.u32 %s10364_s1, 4  ;;  %p6669_p4 = pneg %p7635_p3  ;;  %s397_s24 = int_to_ptr.hbm [resolvable:$true] %s396_s24 }
  0x19   : > { %s7504_s1 = smov [#allocation8]   ;;  %s10369_s2 = sld [smem:[#allocation61_spill]] }
  0x1a   : > { %p7647_p6 = pnand %p6669_p4, %p55_p1  ;;  %s430_s15 = sshll.u32 %s7504_s1, 4  ;;  %s431_s15 = int_to_ptr.vmem [resolvable:$true] %s430_s15 }
  0x1b   : > { %s428_s16 = sshll.u32 %s10366_s5, 4  ;;  %s7507_s1 = smov [#allocation11]   ;;  %s429_s16 = int_to_ptr.hbm [resolvable:$true] %s428_s16 }
  0x1c   : > { %s468_s27 = sshll.u32 %s10368_s11, 4  ;;  %s470_s23 = sshll.u32 %s7507_s1, 4  ;;  %s469_s27 = int_to_ptr.hbm [resolvable:$true] %s468_s27  ;;  %s471_s23 = int_to_ptr.vmem [resolvable:$true] %s470_s23 }
  0x1d   : > { %6672 = dma.hbm_to_vmem [thread:$0]  (!%p7647_p6), %s397_s24, 1024, %s399_s28, [#allocation6], %s10330_s14, %s10330_s14, %s10331_s12  }
  0x1e   : > { %6678 = dma.hbm_to_vmem [thread:$0]  (!%p7647_p6), %s429_s16, 1024, %s431_s15, [#allocation9], %s10330_s14, %s10330_s14, %s10331_s12  }
  0x1f   : > { %s411_s22 = sshll.u32 %s10369_s2, 4  ;;  %s7508_s24 = smov [#allocation7]   ;;  %s412_s22 = int_to_ptr.hbm [resolvable:$true] %s411_s22 }
  0x20   : > { %6684 = dma.hbm_to_vmem [thread:$0]  (!%p7647_p6), %s469_s27, 1024, %s471_s23, [#allocation12], %s10330_s14, %s10330_s14, %s10331_s12  }
  0x21   : > { %s413_s28 = sshll.u32 %s7508_s24, 4  ;;  %s10370_s7 = sld [smem:[#allocation63_spill]]  ;;  %s414_s28 = int_to_ptr.vmem [resolvable:$true] %s413_s28 }
  0x22   : > { %6675 = dma.hbm_to_vmem [thread:$0]  (!%p7647_p6), %s412_s22, 128, %s414_s28, [#allocation6]  }
  0x23   : > { %s10371_s13 = sld [smem:[#allocation66_spill]]  ;;  %s7509_s1 = smov [#allocation10]  }
  0x24   : > { %s447_s23 = sshll.u32 %s7509_s1, 4  ;;  %s7510_s5 = smov [#allocation13]   ;;  %s448_s23 = int_to_ptr.vmem [resolvable:$true] %s447_s23 }
  0x25   : > { %s487_s22 = sshll.u32 %s7510_s5, 4  ;;  %s6204_s24 = sadd.s32 4294967294, %s7501_s21   ;;  %s488_s22 = int_to_ptr.vmem [resolvable:$true] %s487_s22 }
  0x26   : > { %s7692_s28 = sadd.s32 1, %s7501_s21   ;;  %s41_s29 = sadd.s32 1, %s7497_s20 }
  0x27   : > { %s445_s16 = sshll.u32 %s10370_s7, 4  ;;  %s38_s15 = ssub.s32 %s7501_s21, %s7692_s28  ;;  %s446_s16 = int_to_ptr.hbm [resolvable:$true] %s445_s16 }
  0x28   : > { %6681 = dma.hbm_to_vmem [thread:$0]  (!%p7647_p6), %s446_s16, 256, %s448_s23, [#allocation9], %s10330_s14, %s10330_s14, %s10331_s12  }
  0x29   : > { %s485_s27 = sshll.u32 %s10371_s13, 4  ;;  %p39_p7 = scmp.eq.s32.totalorder %s38_s15, 0  ;;  %s486_s27 = int_to_ptr.hbm [resolvable:$true] %s485_s27 }
  0x2a   : > { %6687 = dma.hbm_to_vmem [thread:$0]  (!%p7647_p6), %s486_s27, 1024, %s488_s22, [#allocation12], %s10330_s14, %s10330_s14, %s10331_s12  }
  0x2b   : > { %p48_p8 = scmp.ne.s32.totalorder %s7497_s20, %s7493_s19  ;;  %p49_p9 = scmp.eq.s32.totalorder %s7501_s21, 0 }
  0x2c   : > { %p54_p10 = scmp.ne.s32.totalorder %s7493_s19, %s7489_s18  ;;  %p372_p13 = scmp.eq.s32.totalorder %s7630_s25, 1 }
  0x2d   : > { %s7703_s16 = scalar_select %p39_p7, %s7497_s20, %s41_s29  }
  0x2e   : > { %p7705_p11 = por %p49_p9, %p48_p8  ;;  %p7711_p12 = por %p55_p1, %p54_p10 }
  0x2f   : > { %10372 = sst [smem:[#allocation20_spill]] %s7703_s16  ;;  %p378_p0 = scmp.eq.s32.totalorder %s6204_s24, 1 }
  0x30   : > { %p6702_p2 = scmp.lt.s32.totalorder %s7501_s21, 2  ;;  %s504_s27 = sand.u32 1, %s7497_s20  }
  0x31   : > { %p7718_p4 = por %p372_p13, %p48_p8  ;;  %p7722_p6 = por %p378_p0, %p54_p10 }
  0x32   : > { %s6213_s5 = sshll.u32 %s504_s27, 6  ;;  %s6534_s22 = sshll.u32 %s7501_s21, 6 }
  0x33   : > { %s513_s14 = scalar_lea.hbm %s10313_s0, %s6534_s22  ;;  %s508_s12 = scalar_lea.vmem [#allocation2], %s6213_s5 }
  0x34   : > { %s516_s2 = sshll.u32 %s508_s12, 4  ;;  %s514_s7 = sshll.u32 %s513_s14, 4  ;;  %s517_s2 = int_to_ptr.vmem [resolvable:$true] %s516_s2  ;;  %s515_s7 = int_to_ptr.hbm [resolvable:$true] %s514_s7 }
  0x35   : > { %p7732_p7 = pnand %p6702_p2, %p7705_p11  ;;  %s505_s11 = scalar_lea.sflag [#allocation3], %s504_s27 }
  0x36   : > { %s7393_s13 = sshra.s32 %s515_s7, 4  ;;  %s7400_s14 = scalar_lea.hbm %s10313_s0, 128  ;;  %s7394_s13 = int_to_ptr.hbm [resolvable:$true] %s7393_s13 }
  0x37   : > { %s7395_s16 = scalar_lea.hbm %s7394_s13, 64  ;;  %p7397_p9 = pneg %p7732_p7 }
  0x38   : > { %p7396_p8 = scmp.ne.s32.totalorder %s7394_s13, %s7395_s16  ;;  %p7401_p11 = scmp.lt.s32.totalorder %s7394_s13, %s10313_s0 }
  0x39   : > { %p7402_p0 = scmp.lt.s32.totalorder %s7400_s14, %s7395_s16 }
  0x3a   : > { %p7398_p10 = pnand %p7397_p9, %p7396_p8 }
  0x3b   : > { %p7403_p2 = por %p7402_p0, %p7401_p11 }
  0x3c   : > { %p7399_p13 = pneg %p7398_p10 }
  0x3e   : > { %p7404_p5 = pnand %p7403_p2, %p7399_p13 }
  0x40   : > { %7407 = shalt.err (!%p7404_p5)
}
  0x41   : > { %s10378_s27 = smov 4   ;;  %s10379_s15 = smov 64  }
  0x42   : > { %6691 = dma.hbm_to_vmem [thread:$0]  (!%p7732_p7), %s515_s7, 1024, %s517_s2, %s505_s11, %s10379_s15, %s10379_s15, %s10378_s27  }
  0x43   : > { %528 = sbr.rel (%p7635_p3) target bundleno = 3793 (0xed1), region = 80 }
  0x48   : > { %s7752_s29 = sand.u32 1, %s7493_s19  }
  0x49   : > { %s6217_s13 = sshll.u32 %s7752_s29, 6  ;;  %s531_s16 = scalar_lea.sflag [#allocation3], %s7752_s29 }
  0x4a   : > { %s7758_s5 = scalar_lea.vmem [#allocation2], %s6217_s13 }
  0x4b   : > { %7468 = dma.done.wait (%p7711_p12), %s531_s16, 1024  }
  0x4c   : > { %7470 = vsyncadd (%p7711_p12), %s531_s16, 4294966272 }
  0x4d   : > { %7472 = dma.done.wait (%p55_p1), [#allocation6], 1152  }
  0x4e   : > { %7474 = vsyncadd (%p55_p1), [#allocation6], 4294966144 }
  0x4f   : > { %7476 = dma.done.wait (%p55_p1), [#allocation9], 1280  }
  0x50   : > { %7478 = vsyncadd (%p55_p1), [#allocation9], 4294966016 }
  0x51   : > { %7480 = dma.done.wait (%p55_p1), [#allocation12], 2048  }
  0x52   : > { %7482 = vsyncadd (%p55_p1), [#allocation12], 4294965248  ;;  %v6550_v0 = vld [vmem:[#allocation5 + $0x38] sm:$0xff]  ;;  %v6549_v1 = vld [vmem:[#allocation5 + $0x30] sm:$0xff]  ;;  %s7511_s12 = smov 96   ;;  %s7512_s14 = smov 64  }
  0x53   : > { %743 = vmatpush.bf16.msra.mxu0 %v6550_v0  ;;  %v6548_v2 = vld [vmem:[#allocation5 + $0x28] sm:$0xff]  ;;  %v6547_v3 = vld [vmem:[#allocation5 + $0x20] sm:$0xff]  ;;  %v6546_v4 = vld [vmem:[#allocation5 + $0x18] sm:$0xff]  ;;  %s7513_s22 = smov 120   ;;  %s7514_s17 = smov 88  }
  0x54   : > { %v6545_v5 = vld [vmem:[#allocation5 + $0x10] sm:$0xff]  ;;  %v6544_v6 = vld [vmem:[#allocation5 + $0x8] sm:$0xff]  ;;  %v6543_v7 = vld [vmem:[#allocation5] sm:$0xff]  ;;  %s7515_s27 = smov 56   ;;  %s7516_s15 = smov 80  }
  0x55   : > { %v6535_v8 = vld [vmem:[%s7758_s5] sm:$0xff]  ;;  %v6536_v9 = vld [vmem:[%s7758_s5 + $0x8] sm:$0xff]  ;;  %v6537_v10 = vld [vmem:[%s7758_s5 + $0x10] sm:$0xff]  ;;  %s7517_s16 = smov 112   ;;  %s7519_s2 = smov 72  }
  0x56   : > { %v6538_v11 = vld [vmem:[%s7758_s5 + $0x18] sm:$0xff]  ;;  %v6539_v12 = vld [vmem:[%s7758_s5 + $0x20] sm:$0xff]  ;;  %v6540_v13 = vld [vmem:[%s7758_s5 + $0x28] sm:$0xff]  ;;  %s7520_s7 = smov 104   ;;  %s7521_s11 = smov 40  }
  0x57   : > { %744 = vmatpush.bf16.msra.mxu0 %v6549_v1  ;;  %v6541_v14 = vld [vmem:[%s7758_s5 + $0x30] sm:$0xff]  ;;  %v6542_v15 = vld [vmem:[%s7758_s5 + $0x38] sm:$0xff]  ;;  %v7784_v16 = vld [vmem:[#allocation7] sm:$0xff]  ;;  %s7518_s5 = smov 48   ;;  %s7522_s26 = smov 8  }
  0x58   : > { %v6558_v56 = vld [vmem:[#allocation8 + $0x38] sm:$0xff]  ;;  %v6557_v57 = vld [vmem:[#allocation8 + $0x30] sm:$0xff]  ;;  %v6556_v61 = vld [vmem:[#allocation8 + $0x28] sm:$0xff]  ;;  %s7523_s30 = smov 16   ;;  %s7524_s24 = smov 24  }
  0x59   : > { %1293 = vmatpush.bf16.msra.mxu1 %v6558_v56  ;;  %v6555_v62 = vld [vmem:[#allocation8 + $0x20] sm:$0xff] }
  0x5b   : > { %745 = vmatpush.bf16.msra.mxu0 %v6548_v2  ;;  %v6554_v2 = vld [vmem:[#allocation8 + $0x18] sm:$0xff] }
  0x5d   : > { %1294 = vmatpush.bf16.msra.mxu1 %v6557_v57 }
  0x5f   : > { %746 = vmatpush.bf16.msra.mxu0 %v6547_v3 }
  0x61   : > { %1295 = vmatpush.bf16.msra.mxu1 %v6556_v61 }
  0x63   : > { %747 = vmatpush.bf16.msra.mxu0 %v6546_v4 }
  0x65   : > { %1296 = vmatpush.bf16.msra.mxu1 %v6555_v62 }
  0x67   : > { %748 = vmatpush.bf16.msra.mxu0 %v6545_v5  ;;  %v6553_v5 = vld [vmem:[#allocation8 + $0x10] sm:$0xff] }
  0x69   : > { %1297 = vmatpush.bf16.msra.mxu1 %v6554_v2 }
  0x6b   : > { %749 = vmatpush.bf16.msra.mxu0 %v6544_v6 }
  0x6d   : > { %1298 = vmatpush.bf16.msra.mxu1 %v6553_v5 }
  0x6f   : > { %750 = vmatpush.bf16.msra.mxu0 %v6543_v7 }
  0x72   : > { %751 = vmatmul.bf16.vlgmr.msra.gmra.mxu0 %v6535_v8 }
  0x82   : > { %756 = vmatmul.bf16.gmra.mxu0 %v6536_v9 }
  0x92   : > { %761 = vmatmul.bf16.gmra.mxu0 %v6537_v10 }
  0xa2   : > { %766 = vmatmul.bf16.gmra.mxu0 %v6538_v11 }
  0xb2   : > { %771 = vmatmul.bf16.gmra.mxu0 %v6539_v12 }
  0xc2   : > { %776 = vmatmul.bf16.gmra.mxu0 %v6540_v13  ;;  %v6552_v13 = vld [vmem:[#allocation8 + $0x8] sm:$0xff] }
  0xc3   : > { %1299 = vmatpush.bf16.msra.mxu1 %v6552_v13  ;;  %v7905_v13 = vld [vmem:[%s10316_s3] ss:$0 sm:$0xff] }
  0xd2   : > { %781 = vmatmul.bf16.gmra.mxu0 %v6541_v14 }
  0xe2   : > { %786 = vmatmul.bf16.gmra.mxu0 %v6542_v15 }
  0xef   : > { %v752_v17 = vpop.f32.mrf.mxu0 }
  0xf0   : > { %v7787_v18 = vadd.f32 %v7784_v16, %v752_v17 }
  0xf2   : > { %10380 = vst [vmem:[#allocation21_spill] sm:$0xff] %v7787_v18  ;;  %811 = vadd.xlane.f32.xlu0 %v7787_v18  ;;  %v843_v19 = vmul.f32 %v7787_v18, %v7787_v18 }
  0xf4   : > { %859 = vadd.xlane.f32.xlu1 %v843_v19 }
  0xf7   : > { %v754_v20 = vpop.f32.mrf.mxu0 }
  0xf8   : > { %v7793_v21 = vadd.f32 %v7784_v16, %v754_v20  ;;  %v6551_v20 = vld [vmem:[#allocation8] sm:$0xff] }
  0xf9   : > { %1300 = vmatpush.bf16.msra.mxu1 %v6551_v20 }
  0xfa   : > { %10381 = vst [vmem:[#allocation22_spill] sm:$0xff] %v7793_v21  ;;  %813 = vadd.xlane.f32.xlu0 %v7793_v21  ;;  %v844_v22 = vmul.f32 %v7793_v21, %v7793_v21 }
  0xfc   : > { %861 = vadd.xlane.f32.xlu1 %v844_v22 }
  0xff   : > { %v757_v23 = vpop.f32.mrf.mxu0 }
 0x100   : > { %v7799_v24 = vadd.f32 %v7784_v16, %v757_v23 }
 0x102   : > { %10382 = vst [vmem:[#allocation23_spill] sm:$0xff] %v7799_v24  ;;  %815 = vadd.xlane.f32.xlu2 %v7799_v24  ;;  %v845_v25 = vmul.f32 %v7799_v24, %v7799_v24 }
 0x104   : > { %863 = vadd.xlane.f32.xlu0 %v845_v25 }
 0x107   : > { %v759_v26 = vpop.f32.mrf.mxu0 }
 0x108   : > { %v7805_v27 = vadd.f32 %v7784_v16, %v759_v26 }
 0x10a   : > { %10383 = vst [vmem:[#allocation24_spill] sm:$0xff] %v7805_v27  ;;  %817 = vadd.xlane.f32.xlu2 %v7805_v27  ;;  %v846_v28 = vmul.f32 %v7805_v27, %v7805_v27 }
 0x10c   : > { %865 = vadd.xlane.f32.xlu1 %v846_v28 }
 0x10f   : > { %v762_v29 = vpop.f32.mrf.mxu0 }
 0x110   : > { %v7811_v30 = vadd.f32 %v7784_v16, %v762_v29 }
 0x112   : > { %10384 = vst [vmem:[#allocation25_spill] sm:$0xff] %v7811_v30  ;;  %819 = vadd.xlane.f32.xlu2 %v7811_v30  ;;  %v847_v31 = vmul.f32 %v7811_v30, %v7811_v30 }
 0x114   : > { %867 = vadd.xlane.f32.xlu1 %v847_v31 }
 0x117   : > { %v764_v32 = vpop.f32.mrf.mxu0 }
 0x118   : > { %v7817_v33 = vadd.f32 %v7784_v16, %v764_v32 }
 0x11a   : > { %10385 = vst [vmem:[#allocation26_spill] sm:$0xff] %v7817_v33  ;;  %821 = vadd.xlane.f32.xlu0 %v7817_v33  ;;  %v848_v34 = vmul.f32 %v7817_v33, %v7817_v33 }
 0x11c   : > { %869 = vadd.xlane.f32.xlu2 %v848_v34 }
 0x11f   : > { %v767_v35 = vpop.f32.mrf.mxu0 }
 0x120   : > { %v7823_v36 = vadd.f32 %v7784_v16, %v767_v35 }
 0x122   : > { %10386 = vst [vmem:[#allocation27_spill] sm:$0xff] %v7823_v36  ;;  %823 = vadd.xlane.f32.xlu0 %v7823_v36  ;;  %v849_v37 = vmul.f32 %v7823_v36, %v7823_v36 }
 0x124   : > { %871 = vadd.xlane.f32.xlu2 %v849_v37 }
 0x127   : > { %v769_v38 = vpop.f32.mrf.mxu0 }
 0x128   : > { %v7829_v39 = vadd.f32 %v7784_v16, %v769_v38 }
 0x12a   : > { %10387 = vst [vmem:[#allocation28_spill] sm:$0xff] %v7829_v39  ;;  %825 = vadd.xlane.f32.xlu1 %v7829_v39  ;;  %v850_v40 = vmul.f32 %v7829_v39, %v7829_v39 }
 0x12c   : > { %873 = vadd.xlane.f32.xlu0 %v850_v40 }
 0x12f   : > { %v772_v41 = vpop.f32.mrf.mxu0 }
 0x130   : > { %v7835_v42 = vadd.f32 %v7784_v16, %v772_v41 }
 0x132   : > { %10388 = vst [vmem:[#allocation29_spill] sm:$0xff] %v7835_v42  ;;  %827 = vadd.xlane.f32.xlu1 %v7835_v42  ;;  %v851_v43 = vmul.f32 %v7835_v42, %v7835_v42 }
 0x134   : > { %875 = vadd.xlane.f32.xlu0 %v851_v43 }
 0x137   : > { %v774_v44 = vpop.f32.mrf.mxu0 }
 0x138   : > { %v7841_v45 = vadd.f32 %v7784_v16, %v774_v44 }
 0x13a   : > { %10389 = vst [vmem:[#allocation30_spill] sm:$0xff] %v7841_v45  ;;  %829 = vadd.xlane.f32.xlu2 %v7841_v45  ;;  %v852_v46 = vmul.f32 %v7841_v45, %v7841_v45 }
 0x13c   : > { %877 = vadd.xlane.f32.xlu1 %v852_v46 }
 0x13f   : > { %v777_v47 = vpop.f32.mrf.mxu0 }
 0x140   : > { %v7847_v48 = vadd.f32 %v7784_v16, %v777_v47 }
 0x142   : > { %10390 = vst [vmem:[#allocation31_spill] sm:$0xff] %v7847_v48  ;;  %831 = vadd.xlane.f32.xlu2 %v7847_v48  ;;  %v853_v49 = vmul.f32 %v7847_v48, %v7847_v48 }
 0x144   : > { %879 = vadd.xlane.f32.xlu1 %v853_v49 }
 0x147   : > { %v779_v50 = vpop.f32.mrf.mxu0 }
 0x148   : > { %v7853_v51 = vadd.f32 %v7784_v16, %v779_v50 }
 0x14a   : > { %10391 = vst [vmem:[#allocation32_spill] sm:$0xff] %v7853_v51  ;;  %833 = vadd.xlane.f32.xlu0 %v7853_v51  ;;  %v854_v52 = vmul.f32 %v7853_v51, %v7853_v51 }
 0x14c   : > { %881 = vadd.xlane.f32.xlu2 %v854_v52 }
 0x14f   : > { %v782_v53 = vpop.f32.mrf.mxu0 }
 0x150   : > { %v7859_v54 = vadd.f32 %v7784_v16, %v782_v53 }
 0x152   : > { %10392 = vst [vmem:[#allocation33_spill] sm:$0xff] %v7859_v54  ;;  %835 = vadd.xlane.f32.xlu0 %v7859_v54  ;;  %v855_v55 = vmul.f32 %v7859_v54, %v7859_v54 }
 0x154   : > { %883 = vadd.xlane.f32.xlu2 %v855_v55 }
 0x157   : > { %v784_v58 = vpop.f32.mrf.mxu0 }
 0x158   : > { %v7865_v59 = vadd.f32 %v7784_v16, %v784_v58 }
 0x15a   : > { %10393 = vst [vmem:[#allocation34_spill] sm:$0xff] %v7865_v59  ;;  %837 = vadd.xlane.f32.xlu1 %v7865_v59  ;;  %v856_v60 = vmul.f32 %v7865_v59, %v7865_v59 }
 0x15c   : > { %885 = vadd.xlane.f32.xlu0 %v856_v60 }
 0x15f   : > { %v787_v63 = vpop.f32.mrf.mxu0 }
 0x160   : > { %v7871_v0 = vadd.f32 %v7784_v16, %v787_v63 }
 0x162   : > { %10394 = vst [vmem:[#allocation35_spill] sm:$0xff] %v7871_v0  ;;  %839 = vadd.xlane.f32.xlu1 %v7871_v0  ;;  %v857_v1 = vmul.f32 %v7871_v0, %v7871_v0 }
 0x164   : > { %887 = vadd.xlane.f32.xlu0 %v857_v1 }
 0x165   : > { %v812_v3 = vpop.xlane.xlu0 %811 }
 0x166   : > { %v7876_v4 = vmul.f32 0.03125, %v812_v3 }
 0x167   : > { %v860_v6 = vpop.xlane.xlu1 %859  ;;  %v789_v7 = vpop.f32.mrf.mxu0 }
 0x168   : > { %v923_v8 = vmul.f32 %v7876_v4, %v7876_v4  ;;  %v907_v9 = vmul.f32 0.03125, %v860_v6  ;;  %v7881_v10 = vadd.f32 %v7784_v16, %v789_v7  ;;  %v971_v1 = vsub.f32 %v7787_v18, %v7876_v4 }
 0x16a   : > { %10395 = vst [vmem:[#allocation36_spill] sm:$0xff] %v7881_v10  ;;  %v939_v11 = vsub.f32 %v907_v9, %v923_v8  ;;  %841 = vadd.xlane.f32.xlu2 %v7881_v10  ;;  %v858_v12 = vmul.f32 %v7881_v10, %v7881_v10 }
 0x16c   : > { %v955_v14 = vmax.f32 %v939_v11, 0.0  ;;  %889 = vadd.xlane.f32.xlu1 %v858_v12 }
 0x16d   : > { %v814_v15 = vpop.xlane.xlu0 %813 }
 0x16e   : > { %v987_v17 = vadd.f32 1e-06, %v955_v14  ;;  %v7886_v19 = vmul.f32 0.03125, %v814_v15 }
 0x16f   : > { %v862_v22 = vpop.xlane.xlu1 %861 }
 0x170   : > { %6893 = vrsqrt.f32 %v987_v17  ;;  %v924_v16 = vmul.f32 %v7886_v19, %v7886_v19  ;;  %v908_v23 = vmul.f32 0.03125, %v862_v22  ;;  %vm1009_vm1 = vweird.f32 %v987_v17 }
 0x172   : > { %v940_v25 = vsub.f32 %v908_v23, %v924_v16 }
 0x174   : > { %v956_v26 = vmax.f32 %v940_v25, 0.0 }
 0x175   : > { %v816_v28 = vpop.xlane.xlu2 %815 }
 0x176   : > { %v6894_v29 = vpop.eup %6893  ;;  %v7890_v31 = vmul.f32 0.03125, %v816_v28  ;;  %v988_v34 = vadd.f32 1e-06, %v956_v26  ;;  %v7915_v28 = vld [vmem:[%s10317_s4] ss:$0 sm:$0xff] }
 0x177   : > { %v1004_v32 = vmul.f32 %v6894_v29, %v987_v17  ;;  %v864_v35 = vpop.xlane.xlu0 %863  ;;  %vm1010_vm0 = vweird.f32 %v6894_v29  ;;  %v972_v17 = vsub.f32 %v7793_v21, %v7886_v19 }
 0x178   : > { %v925_v37 = vmul.f32 %v7890_v31, %v7890_v31  ;;  %v909_v38 = vmul.f32 0.03125, %v864_v35  ;;  %6895 = vrsqrt.f32 %v988_v34  ;;  %vm1011_vm2 = vmor %vm1009_vm1, %vm1010_vm0  ;;  %vm1019_vm4 = vweird.f32 %v988_v34 }
 0x179   : > { %v1005_v40 = vmul.f32 %v6894_v29, %v1004_v32 }
 0x17a   : > { %v941_v41 = vsub.f32 %v909_v38, %v925_v37 }
 0x17b   : > { %v1006_v43 = vmul.f32 0.5, %v1005_v40 }
 0x17c   : > { %v957_v44 = vmax.f32 %v941_v41, 0.0 }
 0x17d   : > { %v1007_v46 = vsub.f32 1.5, %v1006_v43  ;;  %v818_v47 = vpop.xlane.xlu2 %817 }
 0x17e   : > { %v989_v49 = vadd.f32 1e-06, %v957_v44  ;;  %v7894_v50 = vmul.f32 0.03125, %v818_v47  ;;  %v6896_v52 = vpop.eup %6895 }
 0x17f   : > { %v866_v53 = vpop.xlane.xlu1 %865  ;;  %v1014_v55 = vmul.f32 %v6896_v52, %v988_v34  ;;  %v1008_v56 = vmul.f32 %v6894_v29, %v1007_v46  ;;  %vm1020_vm3 = vweird.f32 %v6896_v52 }
 0x180   : > { %6897 = vrsqrt.f32 %v989_v49  ;;  %v926_v57 = vmul.f32 %v7894_v50, %v7894_v50  ;;  %v910_v58 = vmul.f32 0.03125, %v866_v53  ;;  %vm1021_vm5 = vmor %vm1019_vm4, %vm1020_vm3  ;;  %vm1029_vm7 = vweird.f32 %v989_v49 }
 0x181   : > { %v1015_v60 = vmul.f32 %v6896_v52, %v1014_v55  ;;  %v1012_v63 = vsel %vm1011_vm2, %v6894_v29, %v1008_v56 }
 0x182   : > { %v942_v61 = vsub.f32 %v910_v58, %v926_v57  ;;  %v1163_v12 = vmul.f32 %v1012_v63, %v971_v1 }
 0x183   : > { %v1016_v62 = vmul.f32 0.5, %v1015_v60  ;;  %v973_v60 = vsub.f32 %v7799_v24, %v7890_v31  ;;  %v974_v31 = vsub.f32 %v7805_v27, %v7894_v50 }
 0x184   : > { %v958_v2 = vmax.f32 %v942_v61, 0.0  ;;  %v1182_v26 = vmul.f32 %v7905_v13, %v1163_v12 }
 0x185   : > { %v820_v3 = vpop.xlane.xlu2 %819  ;;  %v1017_v6 = vsub.f32 1.5, %v1016_v62 }
 0x186   : > { %v6898_v5 = vpop.eup %6897  ;;  %v7900_v7 = vmul.f32 0.03125, %v820_v3  ;;  %v990_v9 = vadd.f32 1e-06, %v958_v2  ;;  %v1201_v41 = vadd.f32 %v7915_v28, %v1182_v26 }
 0x187   : > { %v1024_v8 = vmul.f32 %v6898_v5, %v989_v49  ;;  %v868_v11 = vpop.xlane.xlu1 %867  ;;  %v1018_v15 = vmul.f32 %v6896_v52, %v1017_v6  ;;  %vm1030_vm6 = vweird.f32 %v6898_v5 }
 0x188   : > { %v927_v4 = vmul.f32 %v7900_v7, %v7900_v7  ;;  %v911_v14 = vmul.f32 0.03125, %v868_v11  ;;  %6899 = vrsqrt.f32 %v990_v9  ;;  %vm1031_vm8 = vmor %vm1029_vm7, %vm1030_vm6  ;;  %vm1039_vm10 = vweird.f32 %v990_v9 }
 0x189   : > { %v1025_v20 = vmul.f32 %v6898_v5, %v1024_v8  ;;  %v1022_v16 = vsel %vm1021_vm5, %v6896_v52, %v1018_v15 }
 0x18a   : > { %v943_v22 = vsub.f32 %v911_v14, %v927_v4  ;;  %v1164_v25 = vmul.f32 %v1022_v16, %v972_v17 }
 0x18b   : > { %v1026_v23 = vmul.f32 0.5, %v1025_v20 }
 0x18c   : > { %v959_v29 = vmax.f32 %v943_v22, 0.0  ;;  %v1183_v35 = vmul.f32 %v7905_v13, %v1164_v25 }
 0x18d   : > { %v1027_v32 = vsub.f32 1.5, %v1026_v23  ;;  %v822_v34 = vpop.xlane.xlu0 %821 }
 0x18e   : > { %v7918_v19 = vadd.f32 1e-06, %v959_v29  ;;  %v7920_v37 = vmul.f32 0.03125, %v822_v34  ;;  %v6900_v38 = vpop.eup %6899  ;;  %v1202_v43 = vadd.f32 %v7915_v28, %v1183_v35 }
 0x18f   : > { %v870_v40 = vpop.xlane.xlu2 %869  ;;  %v1034_v44 = vmul.f32 %v6900_v38, %v990_v9  ;;  %v1028_v46 = vmul.f32 %v6898_v5, %v1027_v32  ;;  %vm1040_vm9 = vweird.f32 %v6900_v38 }
 0x190   : > { %6901 = vrsqrt.f32 %v7918_v19  ;;  %v928_v47 = vmul.f32 %v7920_v37, %v7920_v37  ;;  %v912_v52 = vmul.f32 0.03125, %v870_v40  ;;  %v1217_v53 = vpack.c.bf16 %v1202_v43, %v1201_v41  ;;  %vm1041_vm11 = vmor %vm1039_vm10, %vm1040_vm9 }
 0x191   : > { %v1035_v55 = vmul.f32 %v6900_v38, %v1034_v44  ;;  %v1032_v58 = vsel %vm1031_vm8, %v6898_v5, %v1028_v46  ;;  %vm1049_vm13 = vweird.f32 %v7918_v19 }
 0x192   : > { %v944_v56 = vsub.f32 %v912_v52, %v928_v47  ;;  %1301 = vmatmul.bf16.vlgmr.msra.gmra.mxu1 %v1217_v53  ;;  %v1165_v8 = vmul.f32 %v1032_v58, %v973_v60 }
 0x193   : > { %v1036_v57 = vmul.f32 0.5, %v1035_v55  ;;  %v975_v55 = vsub.f32 %v7811_v30, %v7900_v7  ;;  %v976_v7 = vsub.f32 %v7817_v33, %v7920_v37 }
 0x194   : > { %v960_v61 = vmax.f32 %v944_v56, 0.0  ;;  %v1184_v22 = vmul.f32 %v7905_v13, %v1165_v8 }
 0x195   : > { %v824_v62 = vpop.xlane.xlu0 %823  ;;  %v1037_v1 = vsub.f32 1.5, %v1036_v57 }
 0x196   : > { %v6902_v63 = vpop.eup %6901  ;;  %v7929_v2 = vmul.f32 0.03125, %v824_v62  ;;  %v992_v6 = vadd.f32 1e-06, %v960_v61  ;;  %v1203_v34 = vadd.f32 %v7915_v28, %v1184_v22 }
 0x197   : > { %v1044_v3 = vmul.f32 %v6902_v63, %v7918_v19  ;;  %v872_v49 = vpop.xlane.xlu2 %871  ;;  %v1038_v12 = vmul.f32 %v6900_v38, %v1037_v1  ;;  %vm1050_vm12 = vweird.f32 %v6902_v63 }
 0x198   : > { %v929_v11 = vmul.f32 %v7929_v2, %v7929_v2  ;;  %v913_v5 = vmul.f32 0.03125, %v872_v49  ;;  %6903 = vrsqrt.f32 %v992_v6  ;;  %vm1051_vm14 = vmor %vm1049_vm13, %vm1050_vm12  ;;  %vm1059_vm0 = vweird.f32 %v992_v6 }
 0x199   : > { %v1045_v4 = vmul.f32 %v6902_v63, %v1044_v3  ;;  %v1042_v15 = vsel %vm1041_vm11, %v6900_v38, %v1038_v12 }
 0x19a   : > { %v945_v14 = vsub.f32 %v913_v5, %v929_v11  ;;  %v1166_v20 = vmul.f32 %v1042_v15, %v974_v31 }
 0x19b   : > { %v1046_v17 = vmul.f32 0.5, %v1045_v4 }
 0x19c   : > { %v961_v16 = vmax.f32 %v945_v14, 0.0  ;;  %v1185_v25 = vmul.f32 %v7905_v13, %v1166_v20 }
 0x19d   : > { %v1047_v23 = vsub.f32 1.5, %v1046_v17  ;;  %v826_v9 = vpop.xlane.xlu1 %825 }
 0x19e   : > { %v7938_v26 = vadd.f32 1e-06, %v961_v16  ;;  %v7940_v29 = vmul.f32 0.03125, %v826_v9  ;;  %v6904_v32 = vpop.eup %6903  ;;  %v1204_v35 = vadd.f32 %v7915_v28, %v1185_v25 }
 0x19f   : > { %v874_v50 = vpop.xlane.xlu0 %873  ;;  %v1054_v38 = vmul.f32 %v6904_v32, %v992_v6  ;;  %v1048_v40 = vmul.f32 %v6902_v63, %v1047_v23  ;;  %vm1060_vm15 = vweird.f32 %v6904_v32 }
 0x1a0   : > { %6905 = vrsqrt.f32 %v7938_v26  ;;  %v930_v41 = vmul.f32 %v7940_v29, %v7940_v29  ;;  %v914_v43 = vmul.f32 0.03125, %v874_v50  ;;  %v1218_v44 = vpack.c.bf16 %v1204_v35, %v1203_v34  ;;  %vm1061_vm1 = vmor %vm1059_vm0, %vm1060_vm15 }
 0x1a1   : > { %v1055_v46 = vmul.f32 %v6904_v32, %v1054_v38  ;;  %v1052_v53 = vsel %vm1051_vm14, %v6902_v63, %v1048_v40  ;;  %vm1069_vm3 = vweird.f32 %v7938_v26 }
 0x1a2   : > { %v946_v47 = vsub.f32 %v914_v43, %v930_v41  ;;  %1306 = vmatmul.bf16.gmra.mxu1 %v1218_v44  ;;  %v1167_v3 = vmul.f32 %v1052_v53, %v975_v55 }
 0x1a3   : > { %v1056_v52 = vmul.f32 0.5, %v1055_v46  ;;  %v977_v46 = vsub.f32 %v7823_v36, %v7929_v2  ;;  %v978_v2 = vsub.f32 %v7829_v39, %v7940_v29 }
 0x1a4   : > { %v962_v56 = vmax.f32 %v946_v47, 0.0  ;;  %v1186_v14 = vmul.f32 %v7905_v13, %v1167_v3 }
 0x1a5   : > { %v828_v57 = vpop.xlane.xlu1 %827  ;;  %v1057_v60 = vsub.f32 1.5, %v1056_v52 }
 0x1a6   : > { %v6906_v58 = vpop.eup %6905  ;;  %v7950_v61 = vmul.f32 0.03125, %v828_v57  ;;  %v994_v1 = vadd.f32 1e-06, %v962_v56  ;;  %v1205_v9 = vadd.f32 %v7915_v28, %v1186_v14 }
 0x1a7   : > { %v1064_v62 = vmul.f32 %v6906_v58, %v7938_v26  ;;  %v876_v19 = vpop.xlane.xlu0 %875  ;;  %v1058_v8 = vmul.f32 %v6904_v32, %v1057_v60  ;;  %vm1070_vm2 = vweird.f32 %v6906_v58 }
 0x1a8   : > { %v931_v49 = vmul.f32 %v7950_v61, %v7950_v61  ;;  %v915_v63 = vmul.f32 0.03125, %v876_v19  ;;  %6907 = vrsqrt.f32 %v994_v1  ;;  %vm1071_vm4 = vmor %vm1069_vm3, %vm1070_vm2  ;;  %vm1079_vm6 = vweird.f32 %v994_v1 }
 0x1a9   : > { %v1065_v11 = vmul.f32 %v6906_v58, %v1064_v62  ;;  %v1062_v12 = vsel %vm1061_vm1, %v6904_v32, %v1058_v8 }
 0x1aa   : > { %v947_v5 = vsub.f32 %v915_v63, %v931_v49  ;;  %v1168_v4 = vmul.f32 %v1062_v12, %v976_v7 }
 0x1ab   : > { %v1066_v31 = vmul.f32 0.5, %v1065_v11 }
 0x1ac   : > { %v963_v15 = vmax.f32 %v947_v5, 0.0  ;;  %v1187_v20 = vmul.f32 %v7905_v13, %v1168_v4 }
 0x1ad   : > { %v1067_v17 = vsub.f32 1.5, %v1066_v31  ;;  %v830_v6 = vpop.xlane.xlu2 %829 }
 0x1ae   : > { %v7959_v22 = vadd.f32 1e-06, %v963_v15  ;;  %v7961_v16 = vmul.f32 0.03125, %v830_v6  ;;  %v6908_v23 = vpop.eup %6907  ;;  %v1206_v25 = vadd.f32 %v7915_v28, %v1187_v20 }
 0x1af   : > { %v878_v37 = vpop.xlane.xlu1 %877  ;;  %v1074_v32 = vmul.f32 %v6908_v23, %v994_v1  ;;  %v1068_v50 = vmul.f32 %v6906_v58, %v1067_v17  ;;  %vm1080_vm5 = vweird.f32 %v6908_v23 }
 0x1b0   : > { %6909 = vrsqrt.f32 %v7959_v22  ;;  %v932_v34 = vmul.f32 %v7961_v16, %v7961_v16  ;;  %v916_v35 = vmul.f32 0.03125, %v878_v37  ;;  %v1219_v38 = vpack.c.bf16 %v1206_v25, %v1205_v9  ;;  %vm1081_vm7 = vmor %vm1079_vm6, %vm1080_vm5 }
 0x1b1   : > { %v1075_v40 = vmul.f32 %v6908_v23, %v1074_v32  ;;  %v1072_v44 = vsel %vm1071_vm4, %v6906_v58, %v1068_v50  ;;  %vm1089_vm9 = vweird.f32 %v7959_v22 }
 0x1b2   : > { %v948_v41 = vsub.f32 %v916_v35, %v932_v34  ;;  %1311 = vmatmul.bf16.gmra.mxu1 %v1219_v38  ;;  %v1169_v62 = vmul.f32 %v1072_v44, %v977_v46 }
 0x1b3   : > { %v1076_v43 = vmul.f32 0.5, %v1075_v40  ;;  %v979_v40 = vsub.f32 %v7835_v42, %v7950_v61  ;;  %v980_v61 = vsub.f32 %v7841_v45, %v7961_v16 }
 0x1b4   : > { %v964_v47 = vmax.f32 %v948_v41, 0.0  ;;  %v1188_v5 = vmul.f32 %v7905_v13, %v1169_v62 }
 0x1b5   : > { %v832_v52 = vpop.xlane.xlu2 %831  ;;  %v1077_v55 = vsub.f32 1.5, %v1076_v43 }
 0x1b6   : > { %v6910_v53 = vpop.eup %6909  ;;  %v7971_v56 = vmul.f32 0.03125, %v832_v52  ;;  %v996_v60 = vadd.f32 1e-06, %v964_v47  ;;  %v1207_v6 = vadd.f32 %v7915_v28, %v1188_v5 }
 0x1b7   : > { %v1084_v57 = vmul.f32 %v6910_v53, %v7959_v22  ;;  %v880_v26 = vpop.xlane.xlu1 %879  ;;  %v1078_v3 = vmul.f32 %v6908_v23, %v1077_v55  ;;  %vm1090_vm8 = vweird.f32 %v6910_v53 }
 0x1b8   : > { %v933_v19 = vmul.f32 %v7971_v56, %v7971_v56  ;;  %v917_v58 = vmul.f32 0.03125, %v880_v26  ;;  %6911 = vrsqrt.f32 %v996_v60  ;;  %vm1091_vm10 = vmor %vm1089_vm9, %vm1090_vm8  ;;  %vm1099_vm12 = vweird.f32 %v996_v60 }
 0x1b9   : > { %v1085_v49 = vmul.f32 %v6910_v53, %v1084_v57  ;;  %v1082_v8 = vsel %vm1081_vm7, %v6908_v23, %v1078_v3 }
 0x1ba   : > { %v949_v63 = vsub.f32 %v917_v58, %v933_v19  ;;  %v1170_v11 = vmul.f32 %v1082_v8, %v978_v2 }
 0x1bb   : > { %v1086_v7 = vmul.f32 0.5, %v1085_v49 }
 0x1bc   : > { %v965_v12 = vmax.f32 %v949_v63, 0.0  ;;  %v1189_v4 = vmul.f32 %v7905_v13, %v1170_v11 }
 0x1bd   : > { %v1087_v31 = vsub.f32 1.5, %v1086_v7  ;;  %v834_v1 = vpop.xlane.xlu0 %833 }
 0x1be   : > { %v7980_v14 = vadd.f32 1e-06, %v965_v12  ;;  %v7982_v15 = vmul.f32 0.03125, %v834_v1  ;;  %v6912_v17 = vpop.eup %6911  ;;  %v1208_v20 = vadd.f32 %v7915_v28, %v1189_v4 }
 0x1bf   : > { %v882_v29 = vpop.xlane.xlu2 %881  ;;  %v1094_v23 = vmul.f32 %v6912_v17, %v996_v60  ;;  %v1088_v37 = vmul.f32 %v6910_v53, %v1087_v31  ;;  %vm1100_vm11 = vweird.f32 %v6912_v17 }
 0x1c0   : > { %6913 = vrsqrt.f32 %v7980_v14  ;;  %v934_v9 = vmul.f32 %v7982_v15, %v7982_v15  ;;  %v918_v25 = vmul.f32 0.03125, %v882_v29  ;;  %v1220_v32 = vpack.c.bf16 %v1208_v20, %v1207_v6  ;;  %vm1101_vm13 = vmor %vm1099_vm12, %vm1100_vm11 }
 0x1c1   : > { %v1095_v50 = vmul.f32 %v6912_v17, %v1094_v23  ;;  %v1092_v38 = vsel %vm1091_vm10, %v6910_v53, %v1088_v37  ;;  %vm1109_vm15 = vweird.f32 %v7980_v14 }
 0x1c2   : > { %v950_v34 = vsub.f32 %v918_v25, %v934_v9  ;;  %1316 = vmatmul.bf16.gmra.mxu1 %v1220_v32  ;;  %v1171_v57 = vmul.f32 %v1092_v38, %v979_v40 }
 0x1c3   : > { %v1096_v35 = vmul.f32 0.5, %v1095_v50  ;;  %v981_v50 = vsub.f32 %v7847_v48, %v7971_v56  ;;  %v982_v56 = vsub.f32 %v7853_v51, %v7982_v15 }
 0x1c4   : > { %v966_v41 = vmax.f32 %v950_v34, 0.0  ;;  %v1190_v63 = vmul.f32 %v7905_v13, %v1171_v57 }
 0x1c5   : > { %v836_v43 = vpop.xlane.xlu0 %835  ;;  %v1097_v46 = vsub.f32 1.5, %v1096_v35 }
 0x1c6   : > { %v6914_v44 = vpop.eup %6913  ;;  %v7992_v47 = vmul.f32 0.03125, %v836_v43  ;;  %v998_v55 = vadd.f32 1e-06, %v966_v41  ;;  %v1209_v1 = vadd.f32 %v7915_v28, %v1190_v63 }
 0x1c7   : > { %v1104_v52 = vmul.f32 %v6914_v44, %v7980_v14  ;;  %v884_v22 = vpop.xlane.xlu2 %883  ;;  %v1098_v62 = vmul.f32 %v6912_v17, %v1097_v46  ;;  %vm1110_vm14 = vweird.f32 %v6914_v44 }
 0x1c8   : > { %v935_v26 = vmul.f32 %v7992_v47, %v7992_v47  ;;  %v919_v53 = vmul.f32 0.03125, %v884_v22  ;;  %6915 = vrsqrt.f32 %v998_v55  ;;  %vm1111_vm0 = vmor %vm1109_vm15, %vm1110_vm14  ;;  %vm1119_vm2 = vweird.f32 %v998_v55 }
 0x1c9   : > { %v1105_v19 = vmul.f32 %v6914_v44, %v1104_v52  ;;  %v1102_v3 = vsel %vm1101_vm13, %v6912_v17, %v1098_v62 }
 0x1ca   : > { %v951_v58 = vsub.f32 %v919_v53, %v935_v26  ;;  %v1172_v49 = vmul.f32 %v1102_v3, %v980_v61 }
 0x1cb   : > { %v1106_v2 = vmul.f32 0.5, %v1105_v19 }
 0x1cc   : > { %v967_v8 = vmax.f32 %v951_v58, 0.0  ;;  %v1191_v11 = vmul.f32 %v7905_v13, %v1172_v49 }
 0x1cd   : > { %v1107_v7 = vsub.f32 1.5, %v1106_v2  ;;  %v838_v60 = vpop.xlane.xlu1 %837 }
 0x1ce   : > { %v8001_v5 = vadd.f32 1e-06, %v967_v8  ;;  %v8003_v12 = vmul.f32 0.03125, %v838_v60  ;;  %v6916_v31 = vpop.eup %6915  ;;  %v1210_v4 = vadd.f32 %v7915_v28, %v1191_v11 }
 0x1cf   : > { %v886_v16 = vpop.xlane.xlu0 %885  ;;  %v1114_v17 = vmul.f32 %v6916_v31, %v998_v55  ;;  %v1108_v29 = vmul.f32 %v6914_v44, %v1107_v7  ;;  %vm1120_vm1 = vweird.f32 %v6916_v31 }
 0x1d0   : > { %6917 = vrsqrt.f32 %v8001_v5  ;;  %v936_v6 = vmul.f32 %v8003_v12, %v8003_v12  ;;  %v920_v20 = vmul.f32 0.03125, %v886_v16  ;;  %v1221_v23 = vpack.c.bf16 %v1210_v4, %v1209_v1  ;;  %vm1121_vm3 = vmor %vm1119_vm2, %vm1120_vm1 }
 0x1d1   : > { %v1115_v37 = vmul.f32 %v6916_v31, %v1114_v17  ;;  %v1112_v32 = vsel %vm1111_vm0, %v6914_v44, %v1108_v29  ;;  %vm1129_vm4 = vweird.f32 %v8001_v5  ;;  %vm1363_vm0 = vcmask 64512  }
 0x1d2   : > { %v952_v9 = vsub.f32 %v920_v20, %v936_v6  ;;  %1321 = vmatmul.bf16.gmra.mxu1 %v1221_v23  ;;  %v1173_v52 = vmul.f32 %v1112_v32, %v981_v50  ;;  %vm1940_vm1 = vcmask 1043456   ;;  %vm5168_vm2 = vcmask 130048  }
 0x1d3   : > { %v1116_v25 = vmul.f32 0.5, %v1115_v37 }
 0x1d4   : > { %v968_v34 = vmax.f32 %v952_v9, 0.0  ;;  %v1192_v58 = vmul.f32 %v7905_v13, %v1173_v52 }
 0x1d5   : > { %v840_v35 = vpop.xlane.xlu1 %839  ;;  %v1117_v40 = vsub.f32 1.5, %v1116_v25 }
 0x1d6   : > { %v6918_v38 = vpop.eup %6917  ;;  %v8013_v41 = vmul.f32 0.03125, %v840_v35  ;;  %v1000_v46 = vadd.f32 1e-06, %v968_v34  ;;  %v1211_v60 = vadd.f32 %v7915_v28, %v1192_v58 }
 0x1d7   : > { %v1124_v43 = vmul.f32 %v6918_v38, %v8001_v5  ;;  %v888_v14 = vpop.xlane.xlu0 %887  ;;  %v1118_v57 = vmul.f32 %v6916_v31, %v1117_v40  ;;  %vm1130_vm5 = vweird.f32 %v6918_v38  ;;  %v983_v5 = vsub.f32 %v7859_v54, %v7992_v47 }
 0x1d8   : > { %v937_v22 = vmul.f32 %v8013_v41, %v8013_v41  ;;  %v921_v44 = vmul.f32 0.03125, %v888_v14  ;;  %6919 = vrsqrt.f32 %v1000_v46  ;;  %vm1131_vm6 = vmor %vm1129_vm4, %vm1130_vm5  ;;  %vm1139_vm8 = vweird.f32 %v1000_v46 }
 0x1d9   : > { %v1125_v26 = vmul.f32 %v6918_v38, %v1124_v43  ;;  %v1122_v62 = vsel %vm1121_vm3, %v6916_v31, %v1118_v57  ;;  %v984_v40 = vsub.f32 %v7865_v59, %v8003_v12  ;;  %v985_v58 = vsub.f32 %v7871_v0, %v8013_v41  ;;  %v8043_v41 = vld [vmem:[%s10319_s6] ss:$0 sm:$0xff] }
 0x1da   : > { %v953_v53 = vsub.f32 %v921_v44, %v937_v22  ;;  %v1174_v19 = vmul.f32 %v1122_v62, %v982_v56  ;;  %vm5185_vm3 = vcmask 195584   ;;  %vm5226_vm4 = vcmask 261120  }
 0x1db   : > { %v1126_v61 = vmul.f32 0.5, %v1125_v26 }
 0x1dc   : > { %v969_v3 = vmax.f32 %v953_v53, 0.0  ;;  %v1193_v49 = vmul.f32 %v7905_v13, %v1174_v19 }
 0x1dd   : > { %v1127_v2 = vsub.f32 1.5, %v1126_v61  ;;  %v842_v55 = vpop.xlane.xlu2 %841 }
 0x1de   : > { %v1001_v63 = vadd.f32 1e-06, %v969_v3  ;;  %v906_v8 = vmul.f32 0.03125, %v842_v55  ;;  %v6920_v7 = vpop.eup %6919  ;;  %v1212_v11 = vadd.f32 %v7915_v28, %v1193_v49 }
 0x1df   : > { %v890_v15 = vpop.xlane.xlu1 %889  ;;  %v1134_v31 = vmul.f32 %v6920_v7, %v1000_v46  ;;  %v1128_v16 = vmul.f32 %v6918_v38, %v1127_v2  ;;  %vm1140_vm7 = vweird.f32 %v6920_v7 }
 0x1e0   : > { %6921 = vrsqrt.f32 %v1001_v63  ;;  %v938_v1 = vmul.f32 %v906_v8, %v906_v8  ;;  %v922_v4 = vmul.f32 0.03125, %v890_v15  ;;  %v1222_v17 = vpack.c.bf16 %v1212_v11, %v1211_v60  ;;  %vm1141_vm9 = vmor %vm1139_vm8, %vm1140_vm7 }
 0x1e1   : > { %v1135_v29 = vmul.f32 %v6920_v7, %v1134_v31  ;;  %v1132_v23 = vsel %vm1131_vm6, %v6918_v38, %v1128_v16  ;;  %vm1149_vm10 = vweird.f32 %v1001_v63  ;;  %v986_v49 = vsub.f32 %v7881_v10, %v906_v8 }
 0x1e2   : > { %v954_v6 = vsub.f32 %v922_v4, %v938_v1  ;;  %1326 = vmatmul.bf16.gmra.mxu1 %v1222_v17  ;;  %v1175_v34 = vmul.f32 %v1132_v23, %v983_v5 }
 0x1e3   : > { %v1136_v20 = vmul.f32 0.5, %v1135_v29 }
 0x1e4   : > { %v970_v37 = vmax.f32 %v954_v6, 0.0  ;;  %v1194_v47 = vmul.f32 %v7905_v13, %v1175_v34 }
 0x1e5   : > { %v1137_v25 = vsub.f32 1.5, %v1136_v20 }
 0x1e6   : > { %v6922_v9 = vpop.eup %6921  ;;  %v1002_v50 = vadd.f32 1e-06, %v970_v37  ;;  %v1213_v46 = vadd.f32 %v7915_v28, %v1194_v47 }
 0x1e7   : > { %v1144_v32 = vmul.f32 %v6922_v9, %v1001_v63  ;;  %v1138_v35 = vmul.f32 %v6920_v7, %v1137_v25  ;;  %vm1150_vm11 = vweird.f32 %v6922_v9 }
 0x1e8   : > { %6923 = vrsqrt.f32 %v1002_v50  ;;  %vm1151_vm12 = vmor %vm1149_vm10, %vm1150_vm11  ;;  %vm1159_vm13 = vweird.f32 %v1002_v50 }
 0x1e9   : > { %v1145_v43 = vmul.f32 %v6922_v9, %v1144_v32  ;;  %v1142_v14 = vsel %vm1141_vm9, %v6920_v7, %v1138_v35 }
 0x1ea   : > { %v1176_v52 = vmul.f32 %v1142_v14, %v984_v40 }
 0x1eb   : > { %v1146_v38 = vmul.f32 0.5, %v1145_v43 }
 0x1ec   : > { %v1195_v44 = vmul.f32 %v7905_v13, %v1176_v52 }
 0x1ed   : > { %v1147_v22 = vsub.f32 1.5, %v1146_v38 }
 0x1ee   : > { %v6924_v57 = vpop.eup %6923  ;;  %v1214_v56 = vadd.f32 %v7915_v28, %v1195_v44 }
 0x1ef   : > { %v1154_v26 = vmul.f32 %v6924_v57, %v1002_v50  ;;  %v1148_v12 = vmul.f32 %v6922_v9, %v1147_v22  ;;  %vm1160_vm14 = vweird.f32 %v6924_v57 }
 0x1f0   : > { %v1223_v53 = vpack.c.bf16 %v1214_v56, %v1213_v46  ;;  %vm1161_vm15 = vmor %vm1159_vm13, %vm1160_vm14 }
 0x1f1   : > { %v1155_v62 = vmul.f32 %v6924_v57, %v1154_v26  ;;  %v1152_v19 = vsel %vm1151_vm12, %v6922_v9, %v1148_v12 }
 0x1f2   : > { %1331 = vmatmul.bf16.gmra.mxu1 %v1223_v53  ;;  %v1177_v2 = vmul.f32 %v1152_v19, %v985_v58 }
 0x1f3   : > { %v1156_v61 = vmul.f32 0.5, %v1155_v62 }
 0x1f4   : > { %v1196_v15 = vmul.f32 %v7905_v13, %v1177_v2 }
 0x1f5   : > { %v1157_v3 = vsub.f32 1.5, %v1156_v61 }
 0x1f6   : > { %v1215_v11 = vadd.f32 %v7915_v28, %v1196_v15 }
 0x1f7   : > { %v1158_v55 = vmul.f32 %v6924_v57, %v1157_v3 }
 0x1f9   : > { %v1162_v63 = vsel %vm1161_vm15, %v6924_v57, %v1158_v55 }
 0x1fa   : > { %v1178_v7 = vmul.f32 %v1162_v63, %v986_v49 }
 0x1fc   : > { %v1197_v60 = vmul.f32 %v7905_v13, %v1178_v7 }
 0x1fe   : > { %v1216_v31 = vadd.f32 %v7915_v28, %v1197_v60 }
 0x200   : > { %v1224_v16 = vpack.c.bf16 %v1216_v31, %v1215_v11 }
 0x202   : > { %1336 = vmatmul.bf16.gmra.mxu1 %v1224_v16 }
 0x20f   : > { %v1302_v1 = vpop.f32.mrf.mxu1 }
 0x210   : > { %v1303_v8 = vadd.f32 %v8043_v41, %v1302_v1 }
 0x212   : > { %v8046_v4 = vpack.c.bf16 %v1303_v8, %v1303_v8 }
 0x214   : > { %v1359_v17 = vunpack.c.l.b16 %v8046_v4 }
 0x216   : > { %v8049_v29 = vpack.c.b16 %v1359_v17, %v1359_v17 }
 0x217   : > { %v1304_v13 = vpop.f32.mrf.mxu1 }
 0x218   : > { %v1305_v6 = vadd.f32 %v8043_v41, %v1304_v13  ;;  %1361 = vrot.lane.b32.xlu2 %v8049_v29, %s7511_s12 }
 0x21a   : > { %v8054_v28 = vpack.c.bf16 %v1305_v6, %v1305_v6 }
 0x21c   : > { %v1384_v20 = vunpack.c.l.b16 %v8054_v28 }
 0x21e   : > { %v8057_v23 = vpack.c.b16 %v1384_v20, %v1384_v20 }
 0x21f   : > { %v1307_v5 = vpop.f32.mrf.mxu1 }
 0x220   : > { %v1308_v37 = vadd.f32 %v8043_v41, %v1307_v5  ;;  %1386 = vrot.lane.b32.xlu0 %v8057_v23, %s7511_s12 }
 0x222   : > { %v8062_v9 = vpack.c.bf16 %v1308_v37, %v1308_v37 }
 0x224   : > { %v1408_v25 = vunpack.c.l.b16 %v8062_v9 }
 0x226   : > { %v8065_v32 = vpack.c.b16 %v1408_v25, %v1408_v25 }
 0x227   : > { %v1309_v50 = vpop.f32.mrf.mxu1 }
 0x228   : > { %v1310_v34 = vadd.f32 %v8043_v41, %v1309_v50  ;;  %1410 = vrot.lane.b32.xlu1 %v8065_v32, %s7511_s12 }
 0x22a   : > { %v8070_v35 = vpack.c.bf16 %v1310_v34, %v1310_v34 }
 0x22c   : > { %v1432_v40 = vunpack.c.l.b16 %v8070_v35 }
 0x22e   : > { %v8073_v43 = vpack.c.b16 %v1432_v40, %v1432_v40 }
 0x22f   : > { %v1312_v14 = vpop.f32.mrf.mxu1 }
 0x230   : > { %v1313_v38 = vadd.f32 %v8043_v41, %v1312_v14  ;;  %1434 = vrot.lane.b32.xlu2 %v8073_v43, %s7511_s12  ;;  %1935 = vrot.lane.b32.xlu1 %v8049_v29, %s7512_s14 }
 0x232   : > { %v8080_v52 = vpack.c.bf16 %v1313_v38, %v1313_v38 }
 0x234   : > { %v1456_v47 = vunpack.c.l.b16 %v8080_v52 }
 0x236   : > { %v8083_v22 = vpack.c.b16 %v1456_v47, %v1456_v47 }
 0x237   : > { %v1314_v44 = vpop.f32.mrf.mxu1 }
 0x238   : > { %v1315_v57 = vadd.f32 %v8043_v41, %v1314_v44  ;;  %1458 = vrot.lane.b32.xlu0 %v8083_v22, %s7511_s12  ;;  %1978 = vrot.lane.b32.xlu1 %v8065_v32, %s7512_s14 }
 0x23a   : > { %v8090_v46 = vpack.c.bf16 %v1315_v57, %v1315_v57 }
 0x23c   : > { %v1480_v56 = vunpack.c.l.b16 %v8090_v46 }
 0x23e   : > { %v8093_v26 = vpack.c.b16 %v1480_v56, %v1480_v56 }
 0x23f   : > { %v1317_v12 = vpop.f32.mrf.mxu1 }
 0x240   : > { %v1318_v53 = vadd.f32 %v8043_v41, %v1317_v12  ;;  %1957 = vrot.lane.b32.xlu0 %v8057_v23, %s7512_s14  ;;  %1482 = vrot.lane.b32.xlu2 %v8093_v26, %s7511_s12 }
 0x242   : > { %v8100_v62 = vpack.c.bf16 %v1318_v53, %v1318_v53 }
 0x244   : > { %v1504_v61 = vunpack.c.l.b16 %v8100_v62 }
 0x246   : > { %v8103_v19 = vpack.c.b16 %v1504_v61, %v1504_v61 }
 0x247   : > { %v1319_v58 = vpop.f32.mrf.mxu1 }
 0x248   : > { %v1320_v3 = vadd.f32 %v8043_v41, %v1319_v58  ;;  %1999 = vrot.lane.b32.xlu2 %v8073_v43, %s7512_s14  ;;  %1506 = vrot.lane.b32.xlu1 %v8103_v19, %s7511_s12 }
 0x24a   : > { %v8110_v2 = vpack.c.bf16 %v1320_v3, %v1320_v3 }
 0x24c   : > { %v1528_v55 = vunpack.c.l.b16 %v8110_v2 }
 0x24e   : > { %v8113_v49 = vpack.c.b16 %v1528_v55, %v1528_v55 }
 0x24f   : > { %v1322_v63 = vpop.f32.mrf.mxu1 }
 0x250   : > { %v1323_v7 = vadd.f32 %v8043_v41, %v1322_v63  ;;  %1530 = vrot.lane.b32.xlu0 %v8113_v49, %s7511_s12  ;;  %2062 = vrot.lane.b32.xlu1 %v8103_v19, %s7512_s14 }
 0x252   : > { %v8120_v15 = vpack.c.bf16 %v1323_v7, %v1323_v7 }
 0x254   : > { %v1552_v60 = vunpack.c.l.b16 %v8120_v15 }
 0x256   : > { %v8123_v11 = vpack.c.b16 %v1552_v60, %v1552_v60 }
 0x257   : > { %v1324_v31 = vpop.f32.mrf.mxu1 }
 0x258   : > { %v1325_v16 = vadd.f32 %v8043_v41, %v1324_v31  ;;  %1554 = vrot.lane.b32.xlu2 %v8123_v11, %s7511_s12 }
 0x25a   : > { %v8128_v1 = vpack.c.bf16 %v1325_v16, %v1325_v16 }
 0x25c   : > { %v1576_v8 = vunpack.c.l.b16 %v8128_v1 }
 0x25e   : > { %v8131_v17 = vpack.c.b16 %v1576_v8, %v1576_v8 }
 0x25f   : > { %v1327_v13 = vpop.f32.mrf.mxu1 }
 0x260   : > { %v1328_v6 = vadd.f32 %v8043_v41, %v1327_v13  ;;  %2020 = vrot.lane.b32.xlu2 %v8083_v22, %s7512_s14  ;;  %1578 = vrot.lane.b32.xlu1 %v8131_v17, %s7511_s12 }
 0x262   : > { %v8138_v20 = vpack.c.bf16 %v1328_v6, %v1328_v6 }
 0x264   : > { %v1600_v5 = vunpack.c.l.b16 %v8138_v20 }
 0x266   : > { %v8141_v37 = vpack.c.b16 %v1600_v5, %v1600_v5 }
 0x267   : > { %v1329_v25 = vpop.f32.mrf.mxu1 }
 0x268   : > { %v1330_v50 = vadd.f32 %v8043_v41, %v1329_v25  ;;  %1602 = vrot.lane.b32.xlu0 %v8141_v37, %s7511_s12  ;;  %2104 = vrot.lane.b32.xlu1 %v8123_v11, %s7512_s14 }
 0x26a   : > { %v8148_v34 = vpack.c.bf16 %v1330_v50, %v1330_v50 }
 0x26c   : > { %v1624_v40 = vunpack.c.l.b16 %v8148_v34 }
 0x26e   : > { %v8151_v14 = vpack.c.b16 %v1624_v40, %v1624_v40 }
 0x26f   : > { %v1332_v38 = vpop.f32.mrf.mxu1 }
 0x270   : > { %v1333_v47 = vadd.f32 %v8043_v41, %v1332_v38  ;;  %2146 = vrot.lane.b32.xlu0 %v8141_v37, %s7512_s14  ;;  %1626 = vrot.lane.b32.xlu2 %v8151_v14, %s7511_s12 }
 0x272   : > { %v8158_v44 = vpack.c.bf16 %v1333_v47, %v1333_v47  ;;  %v1362_v57 = vpop.permute.xlu2 %1361 }
 0x273   : > { %v1368_v56 = vsel %vm1363_vm0, %v1362_v57, 0 }
 0x274   : > { %v1648_v12 = vunpack.c.l.b16 %v8158_v44  ;;  %1377 = vmatpush.bf16.xpose.msra.mxu2 %v1368_v56 }
 0x276   : > { %v8162_v53 = vpack.c.b16 %v1648_v12, %v1648_v12 }
 0x277   : > { %v1334_v61 = vpop.f32.mrf.mxu1 }
 0x278   : > { %v1335_v58 = vadd.f32 %v8043_v41, %v1334_v61  ;;  %2167 = vrot.lane.b32.xlu0 %v8151_v14, %s7512_s14  ;;  %2083 = vrot.lane.b32.xlu2 %v8113_v49, %s7512_s14 }
 0x279   : > { %1650 = vrot.lane.b32.xlu1 %v8162_v53, %s7511_s12 }
 0x27a   : > { %v8171_v3 = vpack.c.bf16 %v1335_v58, %v1335_v58 }
 0x27b   : > { %6321 = vmatmul.msk.bf16.vlgmr.msra.gmra.mxu2 %vm1363_vm0, %v8046_v4 }
 0x27c   : > { %v1672_v55 = vunpack.c.l.b16 %v8171_v3 }
 0x27e   : > { %v8176_v63 = vpack.c.b16 %v1672_v55, %v1672_v55 }
 0x27f   : > { %v1337_v7 = vpop.f32.mrf.mxu1 }
 0x280   : > { %2188 = vrot.lane.b32.xlu0 %v8162_v53, %s7512_s14  ;;  %2041 = vrot.lane.b32.xlu2 %v8093_v26, %s7512_s14  ;;  %v1338_v60 = vadd.f32 %v8043_v41, %v1337_v7 }
 0x281   : > { %2209 = vrot.lane.b32.xlu1 %v8176_v63, %s7512_s14 }
 0x282   : > { %v8185_v31 = vpack.c.bf16 %v1338_v60, %v1338_v60 }
 0x284   : > { %v1696_v4 = vunpack.c.l.b16 %v8185_v31 }
 0x286   : > { %v8194_v16 = vpack.c.b16 %v1696_v4, %v1696_v4 }
 0x287   : > { %v1339_v25 = vpop.f32.mrf.mxu1 }
 0x288   : > { %1674 = vrot.lane.b32.xlu0 %v8176_v63, %s7511_s12  ;;  %2125 = vrot.lane.b32.xlu2 %v8131_v17, %s7512_s14  ;;  %v1340_v38 = vadd.f32 %v8043_v41, %v1339_v25 }
 0x289   : > { %2341 = vrot.lane.b32.xlu1 %v8073_v43, %s7513_s22 }
 0x28a   : > { %v1435_v8 = vpop.permute.xlu2 %1434  ;;  %v8215_v56 = vpack.c.bf16 %v1340_v38, %v1340_v38 }
 0x28b   : > { %v1440_v5 = vsel %vm1363_vm0, %v1435_v8, 0 }
 0x28c   : > { %v1720_v41 = vunpack.c.l.b16 %v8215_v56 }
 0x290   : > { %2343 = vrot.lane.b32.xlu0 %v8073_v43, %s7514_s17  ;;  %1698 = vrot.lane.b32.xlu2 %v8194_v16, %s7511_s12 }
 0x291   : > { %2412 = vrot.lane.b32.xlu1 %v8103_v19, %s7514_s17 }
 0x292   : > { %v1387_v13 = vpop.permute.xlu0 %1386 }
 0x293   : > { %v1392_v6 = vsel %vm1363_vm0, %v1387_v13, 0 }
 0x294   : > { %1401 = vmatpush.bf16.xpose.msra.mxu3 %v1392_v6 }
 0x298   : > { %2274 = vrot.lane.b32.xlu0 %v8049_v29, %s7514_s17  ;;  %2320 = vrot.lane.b32.xlu2 %v8065_v32, %s7514_s17 }
 0x299   : > { %2389 = vrot.lane.b32.xlu1 %v8093_v26, %s7514_s17 }
 0x29a   : > { %v1483_v50 = vpop.permute.xlu2 %1482  ;;  %v1411_v40 = vpop.permute.xlu1 %1410 }
 0x29b   : > { %v1488_v47 = vsel %vm1363_vm0, %v1483_v50, 0  ;;  %6322 = vmatmul.msk.bf16.vlgmr.msra.gmra.mxu3 %vm1363_vm0, %v8054_v28  ;;  %v1416_v57 = vsel %vm1363_vm0, %v1411_v40, 0  ;;  %v8226_v28 = vpack.c.b16 %v1720_v41, %v1720_v41 }
 0x29c   : > { %1449 = vmatpush.bf16.xpose.msrb.mxu3 %v1440_v5  ;;  %1425 = vmatpush.bf16.xpose.msrb.mxu2 %v1416_v57 }
 0x2a0   : > { %2297 = vrot.lane.b32.xlu0 %v8057_v23, %s7514_s17  ;;  %2318 = vrot.lane.b32.xlu2 %v8065_v32, %s7513_s22 }
 0x2a1   : > { %2364 = vrot.lane.b32.xlu1 %v8083_v22, %s7513_s22 }
 0x2a2   : > { %v8228_v12 = vpop.permute.xlu1 %1935 }
 0x2a3   : > { %6323 = vmatmul.msk.bf16.vlgmr.msrb.gmra.mxu2 %vm1363_vm0, %v8062_v9  ;;  %v8239_v9 = vpop.permute.xlu2 %1999 }
 0x2a4   : > { %1497 = vmatpush.bf16.xpose.msra.mxu3 %v1488_v47 }
 0x2a8   : > { %2272 = vrot.lane.b32.xlu0 %v8049_v29, %s7513_s22  ;;  %2295 = vrot.lane.b32.xlu2 %v8057_v23, %s7513_s22 }
 0x2a9   : > { %1722 = vrot.lane.b32.xlu1 %v8226_v28, %s7511_s12 }
 0x2aa   : > { %v1459_v61 = vpop.permute.xlu0 %1458  ;;  %v8245_v55 = vpop.permute.xlu1 %1978 }
 0x2ab   : > { %v1464_v58 = vsel %vm1363_vm0, %v1459_v61, 0  ;;  %6324 = vmatmul.msk.bf16.vlgmr.msrb.gmra.mxu3 %vm1363_vm0, %v8070_v35 }
 0x2ac   : > { %1473 = vmatpush.bf16.xpose.msra.mxu2 %v1464_v58 }
 0x2b0   : > { %2435 = vrot.lane.b32.xlu0 %v8113_v49, %s7514_s17  ;;  %2366 = vrot.lane.b32.xlu2 %v8083_v22, %s7514_s17 }
 0x2b2   : > { %v1555_v7 = vpop.permute.xlu2 %1554  ;;  %v8253_v35 = vpop.permute.xlu0 %1957 }
 0x2b3   : > { %6325 = vmatmul.msk.bf16.vlgmr.msra.gmra.mxu2 %vm1363_vm0, %v8080_v52  ;;  %v1560_v8 = vsel %vm1363_vm0, %v1555_v7, 0 }
 0x2b8   : > { %2410 = vrot.lane.b32.xlu0 %v8103_v19, %s7513_s22  ;;  %2433 = vrot.lane.b32.xlu2 %v8113_v49, %s7513_s22 }
 0x2ba   : > { %v1507_v60 = vpop.permute.xlu1 %1506  ;;  %v8261_v52 = vpop.permute.xlu2 %2020 }
 0x2bb   : > { %v1512_v4 = vsel %vm1363_vm0, %v1507_v60, 0  ;;  %6326 = vmatmul.msk.bf16.vlgmr.msra.gmra.mxu3 %vm1363_vm0, %v8090_v46 }
 0x2bc   : > { %1521 = vmatpush.bf16.xpose.msrb.mxu2 %v1512_v4 }
 0x2c0   : > { %2387 = vrot.lane.b32.xlu0 %v8093_v26, %s7513_s22 }
 0x2c2   : > { %v1531_v13 = vpop.permute.xlu0 %1530  ;;  %v8268_v46 = vpop.permute.xlu1 %2062 }
 0x2c3   : > { %v1536_v6 = vsel %vm1363_vm0, %v1531_v13, 0  ;;  %6327 = vmatmul.msk.bf16.vlgmr.msrb.gmra.mxu2 %vm1363_vm0, %v8100_v62 }
 0x2c4   : > { %1569 = vmatpush.bf16.xpose.msra.mxu2 %v1560_v8  ;;  %1545 = vmatpush.bf16.xpose.msrb.mxu3 %v1536_v6 }
 0x2c8   : > { %2230 = vrot.lane.b32.xlu0 %v8194_v16, %s7512_s14 }
 0x2ca   : > { %v1627_v5 = vpop.permute.xlu2 %1626 }
 0x2cb   : > { %6328 = vmatmul.msk.bf16.vlgmr.msrb.gmra.mxu3 %vm1363_vm0, %v8110_v2  ;;  %v1632_v62 = vsel %vm1363_vm0, %v1627_v5, 0 }
 0x2d0   : > { %2251 = vrot.lane.b32.xlu0 %v8226_v28, %s7512_s14 }
 0x2d2   : > { %v8274_v25 = vpop.permute.xlu2 %2083  ;;  %v1579_v50 = vpop.permute.xlu1 %1578 }
 0x2d3   : > { %v1584_v40 = vsel %vm1363_vm0, %v1579_v50, 0  ;;  %6329 = vmatmul.msk.bf16.vlgmr.msra.gmra.mxu2 %vm1363_vm0, %v8120_v15 }
 0x2d4   : > { %1593 = vmatpush.bf16.xpose.msra.mxu3 %v1584_v40 }
 0x2da   : > { %v1603_v38 = vpop.permute.xlu0 %1602  ;;  %v2042_v47 = vpop.permute.xlu2 %2041 }
 0x2db   : > { %v1608_v2 = vsel %vm1363_vm0, %v1603_v38, 0  ;;  %v2105_v57 = vpop.permute.xlu1 %2104  ;;  %6330 = vmatmul.msk.bf16.vlgmr.msra.gmra.mxu3 %vm1363_vm0, %v8128_v1  ;;  %v2047_v41 = vsel %vm1940_vm1, %v2042_v47, 0 }
 0x2dc   : > { %1641 = vmatpush.bf16.xpose.msrb.mxu3 %v1632_v62  ;;  %1617 = vmatpush.bf16.xpose.msrb.mxu2 %v1608_v2  ;;  %v2110_v61 = vsel %vm1940_vm1, %v2105_v57, 0 }
 0x2dd   : > { %2056 = vmatpush.bf16.msrb.mxu1 %v2047_v41  ;;  %2119 = vmatpush.bf16.msrb.mxu0 %v2110_v61 }
 0x2e2   : > { %v8285_v15 = vpop.permute.xlu0 %2146  ;;  %v2126_v58 = vpop.permute.xlu2 %2125 }
 0x2e3   : > { %v2131_v7 = vsel %vm1940_vm1, %v2126_v58, 0  ;;  %6331 = vmatmul.msk.bf16.vlgmr.msrb.gmra.mxu2 %vm1363_vm0, %v8138_v20  ;;  %v1942_v20 = vsel %vm1940_vm1, %v8228_v12, 0 }
 0x2e4   : > { %2140 = vmatpush.bf16.msra.mxu1 %v2131_v7  ;;  %v1963_v7 = vsel %vm1940_vm1, %v8253_v35, 0 }
 0x2ea   : > { %v8290_v60 = vpop.permute.xlu0 %2167  ;;  %v1699_v4 = vpop.permute.xlu2 %1698 }
 0x2eb   : > { %v1704_v1 = vsel %vm1363_vm0, %v1699_v4, 0  ;;  %v1651_v8 = vpop.permute.xlu1 %1650  ;;  %6332 = vmatmul.msk.bf16.vlgmr.msrb.gmra.mxu3 %vm1363_vm0, %v8148_v34 }
 0x2ec   : > { %v1656_v13 = vsel %vm1363_vm0, %v1651_v8, 0 }
 0x2ed   : > { %1665 = vmatpush.bf16.xpose.msra.mxu2 %v1656_v13 }
 0x2f2   : > { %v2189_v6 = vpop.permute.xlu0 %2188 }
 0x2f3   : > { %v2194_v5 = vsel %vm1940_vm1, %v2189_v6, 0  ;;  %v8297_v50 = vpop.permute.xlu1 %2209 }
 0x2f4   : > { %6333 = vmatmul.msk.bf16.vlgmr.msra.gmra.mxu2 %vm1363_vm0, %v8158_v44  ;;  %2203 = vmatpush.bf16.msra.mxu0 %v2194_v5  ;;  %v1984_v44 = vsel %vm1940_vm1, %v8245_v55, 0 }
 0x2f5   : > { %1713 = vmatpush.bf16.xpose.msrb.mxu2 %v1704_v1 }
 0x2fa   : > { %v1675_v40 = vpop.permute.xlu0 %1674 }
 0x2fb   : > { %v1680_v34 = vsel %vm1363_vm0, %v1675_v40, 0  ;;  %v8304_v62 = vpop.permute.xlu1 %2341 }
 0x2fc   : > { %10396 = vst [vmem:[#allocation37_spill] sm:$0xff] %v8304_v62  ;;  %1689 = vmatpush.bf16.xpose.msra.mxu3 %v1680_v34 }
 0x2fd   : > { %1951 = vmatpush.bf16.msra.mxu2 %v1942_v20 }
 0x2fe   : > { %v8306_v38 = vpop.f32.mrf.mxu2 }
 0x2ff   : > { %v1743_v47 = vsel %vm1363_vm0, %v8306_v38, -inf }
 0x300   : > { %1744 = vmax.xlane.f32.xlu2 %v1743_v47 }
 0x303   : > { %v8310_v2 = vpop.permute.xlu1 %2412  ;;  %6334 = vmatmul.msk.bf16.vlgmr.msra.gmra.mxu3 %vm1363_vm0, %v8171_v3 }
 0x304   : > { %6335 = vmatmul.msk.bf16.vlgmr.msrb.gmra.mxu2 %vm1363_vm0, %v8185_v31  ;;  %v2005_v31 = vsel %vm1940_vm1, %v8239_v9, 0 }
 0x305   : > { %1993 = vmatpush.bf16.msrb.mxu2 %v1984_v44 }
 0x306   : > { %v1381_v12 = vpop.f32.mrf.mxu2 }
 0x30b   : > { %v8318_v57 = vpop.permute.xlu1 %2389 }
 0x313   : > { %v8320_v41 = vpop.permute.xlu1 %2364 }
 0x31b   : > { %v1723_v61 = vpop.permute.xlu1 %1722 }
 0x31c   : > { %v1728_v58 = vsel %vm1363_vm0, %v1723_v61, 0  ;;  %v8353_v61 = vpop.permute.xlu0 %2343 }
 0x31d   : > { %1737 = vmatpush.bf16.xpose.msrb.mxu3 %v1728_v58 }
 0x31e   : > { %v8325_v3 = vpop.f32.mrf.mxu3 }
 0x31f   : > { %v1746_v55 = vsel %vm1363_vm0, %v8325_v3, -inf }
 0x320   : > { %1747 = vmax.xlane.f32.xlu0 %v1746_v55 }
 0x324   : > { %6336 = vmatmul.msk.bf16.vlgmr.msrb.gmra.mxu3 %vm1363_vm0, %v8215_v56 }
 0x325   : > { %1972 = vmatpush.bf16.msra.mxu3 %v1963_v7 }
 0x326   : > { %v1405_v4 = vpop.f32.mrf.mxu3  ;;  %v8333_v1 = vpop.f32.mrf.mxu2 }
 0x327   : > { %v1749_v35 = vsel %vm1363_vm0, %v8333_v1, -inf }
 0x328   : > { %1750 = vmax.xlane.f32.xlu0 %v1749_v35 }
 0x329   : > { %2014 = vmatpush.bf16.msrb.mxu3 %v2005_v31  ;;  %v8359_v31 = vpop.permute.xlu0 %2274 }
 0x32e   : > { %v1429_v8 = vpop.f32.mrf.mxu2  ;;  %v8337_v13 = vpop.f32.mrf.mxu3 }
 0x32f   : > { %v1752_v6 = vsel %vm1363_vm0, %v8337_v13, -inf }
 0x330   : > { %1753 = vmax.xlane.f32.xlu1 %v1752_v6 }
 0x336   : > { %v1453_v5 = vpop.f32.mrf.mxu3  ;;  %v8341_v9 = vpop.f32.mrf.mxu2 }
 0x337   : > { %v1755_v56 = vsel %vm1363_vm0, %v8341_v9, -inf }
 0x338   : > { %1756 = vmax.xlane.f32.xlu2 %v1755_v56 }
 0x33e   : > { %v1477_v20 = vpop.f32.mrf.mxu2  ;;  %v8345_v40 = vpop.f32.mrf.mxu3 }
 0x33f   : > { %v1758_v34 = vsel %vm1363_vm0, %v8345_v40, -inf  ;;  %v8369_v20 = vpop.permute.xlu0 %2297 }
 0x340   : > { %1759 = vmax.xlane.f32.xlu1 %v1758_v34 }
 0x346   : > { %v1501_v47 = vpop.f32.mrf.mxu3  ;;  %v8349_v44 = vpop.f32.mrf.mxu2 }
 0x347   : > { %v1761_v12 = vsel %vm1363_vm0, %v8349_v44, -inf }
 0x348   : > { %1762 = vmax.xlane.f32.xlu1 %v1761_v12 }
 0x34e   : > { %v1525_v58 = vpop.f32.mrf.mxu2  ;;  %v8355_v7 = vpop.f32.mrf.mxu3 }
 0x34f   : > { %v1764_v55 = vsel %vm1363_vm0, %v8355_v7, -inf  ;;  %v8375_v58 = vpop.permute.xlu0 %2272 }
 0x350   : > { %1765 = vmax.xlane.f32.xlu0 %v1764_v55  ;;  %v8377_v55 = vpop.permute.xlu2 %2320 }
 0x356   : > { %v1549_v4 = vpop.f32.mrf.mxu3  ;;  %v8361_v35 = vpop.f32.mrf.mxu2 }
 0x357   : > { %v1767_v8 = vsel %vm1363_vm0, %v8361_v35, -inf  ;;  %v8383_v51 = vpop.permute.xlu0 %2435 }
 0x358   : > { %1768 = vmax.xlane.f32.xlu2 %v1767_v8 }
 0x35e   : > { %v1573_v6 = vpop.f32.mrf.mxu2  ;;  %v8365_v5 = vpop.f32.mrf.mxu3 }
 0x35f   : > { %v1770_v56 = vsel %vm1363_vm0, %v8365_v5, -inf  ;;  %v8391_v0 = vpop.permute.xlu0 %2410 }
 0x360   : > { %1771 = vmax.xlane.f32.xlu0 %v1770_v56  ;;  %v8385_v56 = vpop.permute.xlu2 %2318  ;;  %10398 = vst [vmem:[#allocation39_spill] sm:$0xff] %v8391_v0 }
 0x361   : > { %10397 = vst [vmem:[#allocation38_spill] sm:$0xff] %v8385_v56 }
 0x366   : > { %v1597_v34 = vpop.f32.mrf.mxu3  ;;  %v8371_v47 = vpop.f32.mrf.mxu2 }
 0x367   : > { %v1773_v12 = vsel %vm1363_vm0, %v8371_v47, -inf  ;;  %v8401_v45 = vpop.permute.xlu0 %2387 }
 0x368   : > { %1774 = vmax.xlane.f32.xlu2 %v1773_v12  ;;  %v8393_v48 = vpop.permute.xlu2 %2295 }
 0x36e   : > { %v1621_v4 = vpop.f32.mrf.mxu2  ;;  %v8379_v8 = vpop.f32.mrf.mxu3 }
 0x36f   : > { %v1776_v6 = vsel %vm1363_vm0, %v8379_v8, -inf  ;;  %v8407_v39 = vpop.permute.xlu0 %2230 }
 0x370   : > { %1777 = vmax.xlane.f32.xlu1 %v1776_v6 }
 0x376   : > { %v1645_v34 = vpop.f32.mrf.mxu3 }
 0x377   : > { %v8387_v10 = vpop.f32.mrf.mxu2  ;;  %v8411_v33 = vpop.permute.xlu0 %2251 }
 0x378   : > { %v1779_v12 = vsel %vm1363_vm0, %v8387_v10, -inf }
 0x379   : > { %1780 = vmax.xlane.f32.xlu0 %v1779_v12  ;;  %v8405_v12 = vpop.permute.xlu2 %2366 }
 0x37f   : > { %v1669_v4 = vpop.f32.mrf.mxu2 }
 0x381   : > { %v8409_v36 = vpop.permute.xlu2 %2433 }
 0x382   : > { %10399 = vst [vmem:[#allocation40_spill] sm:$0xff] %v8409_v36 }
 0x386   : > { %v8395_v59 = vpop.f32.mrf.mxu3 }
 0x387   : > { %v8397_v54 = vpop.f32.mrf.mxu2  ;;  %v1782_v6 = vsel %vm1363_vm0, %v8395_v59, -inf }
 0x388   : > { %1783 = vmax.xlane.f32.xlu0 %v1782_v6  ;;  %v1785_v34 = vsel %vm1363_vm0, %v8397_v54, -inf }
 0x389   : > { %1786 = vmax.xlane.f32.xlu1 %v1785_v34  ;;  %v1745_v30 = vpop.xlane.xlu2 %1744 }
 0x38a   : > { %v1791_v6 = vsub.f32 %v8306_v38, %v1745_v30 }
 0x38c   : > { %v1807_v34 = vmul.f32 1.442695, %v1791_v6 }
 0x38e   : > { %v1693_v42 = vpop.f32.mrf.mxu3  ;;  %6925 = vpow2.f32 %v1807_v34 }
 0x38f   : > { %v1717_v4 = vpop.f32.mrf.mxu2 }
 0x393   : > { %v1748_v27 = vpop.xlane.xlu0 %1747 }
 0x394   : > { %v1792_v42 = vsub.f32 %v8325_v3, %v1748_v27  ;;  %v8423_v18 = vpop.eup %6925 }
 0x395   : > { %v1839_v30 = vsel %vm1363_vm0, %v8423_v18, 0.0 }
 0x396   : > { %v1809_v21 = vmul.f32 1.442695, %v1792_v42 }
 0x398   : > { %6927 = vpow2.f32 %v1809_v21 }
 0x39b   : > { %v1751_v38 = vpop.xlane.xlu0 %1750 }
 0x39c   : > { %2458 = vrot.lane.b32.xlu0 %v8123_v11, %s7514_s17  ;;  %v1793_v6 = vsub.f32 %v8333_v1, %v1751_v38 }
 0x39e   : > { %v8428_v34 = vpop.eup %6927  ;;  %v1811_v3 = vmul.f32 1.442695, %v1793_v6 }
 0x39f   : > { %v1842_v0 = vsel %vm1363_vm0, %v8428_v34, 0.0 }
 0x3a0   : > { %6929 = vpow2.f32 %v1811_v3 }
 0x3a2   : > { %2527 = vrot.lane.b32.xlu1 %v8151_v14, %s7514_s17 }
 0x3a3   : > { %v1754_v27 = vpop.xlane.xlu1 %1753 }
 0x3a4   : > { %v1794_v42 = vsub.f32 %v8337_v13, %v1754_v27 }
 0x3a7   : > { %v8419_v4 = vpop.f32.mrf.mxu3 }
 0x3a8   : > { %v1788_v24 = vsel %vm1363_vm0, %v8419_v4, -inf }
 0x3a9   : > { %1789 = vmax.xlane.f32.xlu2 %v1788_v24 }
 0x3ab   : > { %v1757_v24 = vpop.xlane.xlu2 %1756 }
 0x3ac   : > { %v1795_v21 = vsub.f32 %v8341_v9, %v1757_v24 }
 0x3ae   : > { %v1815_v56 = vmul.f32 1.442695, %v1795_v21 }
 0x3af   : > { %v1741_v36 = vpop.f32.mrf.mxu3 }
 0x3b0   : > { %v1813_v36 = vmul.f32 1.442695, %v1794_v42 }
 0x3b1   : > { %1840 = vadd.xlane.f32.xlu2 %v1839_v30  ;;  %v8434_v30 = vpop.eup %6929 }
 0x3b2   : > { %6931 = vpow2.f32 %v1813_v36  ;;  %v1845_v38 = vsel %vm1363_vm0, %v8434_v30, 0.0 }
 0x3b3   : > { %v1760_v62 = vpop.xlane.xlu1 %1759  ;;  %6933 = vpow2.f32 %v1815_v56 }
 0x3b4   : > { %v1796_v1 = vsub.f32 %v8345_v40, %v1760_v62 }
 0x3b8   : > { %v8439_v6 = vpop.eup %6931 }
 0x3b9   : > { %1843 = vadd.xlane.f32.xlu2 %v1842_v0  ;;  %v1817_v0 = vmul.f32 1.442695, %v1796_v1  ;;  %v8441_v27 = vpop.eup %6933  ;;  %v1848_v9 = vsel %vm1363_vm0, %v8439_v6, 0.0 }
 0x3ba   : > { %v1851_v62 = vsel %vm1363_vm0, %v8441_v27, 0.0 }
 0x3bb   : > { %v1763_v13 = vpop.xlane.xlu1 %1762  ;;  %6935 = vpow2.f32 %v1817_v0 }
 0x3bc   : > { %v1797_v3 = vsub.f32 %v8349_v44, %v1763_v13 }
 0x3be   : > { %v1819_v40 = vmul.f32 1.442695, %v1797_v3 }
 0x3c0   : > { %6937 = vpow2.f32 %v1819_v40 }
 0x3c1   : > { %v8450_v24 = vpop.eup %6935 }
 0x3c2   : > { %v1854_v21 = vsel %vm1363_vm0, %v8450_v24, 0.0 }
 0x3c3   : > { %v1766_v56 = vpop.xlane.xlu0 %1765 }
 0x3c4   : > { %v1798_v42 = vsub.f32 %v8355_v7, %v1766_v56 }
 0x3c6   : > { %1846 = vadd.xlane.f32.xlu0 %v1845_v38  ;;  %v1821_v44 = vmul.f32 1.442695, %v1798_v42  ;;  %v8455_v1 = vpop.eup %6937 }
 0x3c7   : > { %v1857_v0 = vsel %vm1363_vm0, %v8455_v1, 0.0 }
 0x3c8   : > { %6939 = vpow2.f32 %v1821_v44 }
 0x3cb   : > { %v1769_v36 = vpop.xlane.xlu2 %1768 }
 0x3cc   : > { %1849 = vadd.xlane.f32.xlu1 %v1848_v9  ;;  %v1799_v38 = vsub.f32 %v8361_v35, %v1769_v36 }
 0x3ce   : > { %1852 = vadd.xlane.f32.xlu0 %v1851_v62  ;;  %v1823_v13 = vmul.f32 1.442695, %v1799_v38  ;;  %v8460_v9 = vpop.eup %6939 }
 0x3cf   : > { %v1860_v3 = vsel %vm1363_vm0, %v8460_v9, 0.0 }
 0x3d0   : > { %6941 = vpow2.f32 %v1823_v13 }
 0x3d1   : > { %2504 = vrot.lane.b32.xlu2 %v8141_v37, %s7514_s17 }
 0x3d3   : > { %v1772_v7 = vpop.xlane.xlu0 %1771 }
 0x3d4   : > { %v1800_v62 = vsub.f32 %v8365_v5, %v1772_v7 }
 0x3d6   : > { %1855 = vadd.xlane.f32.xlu0 %v1854_v21  ;;  %v8467_v40 = vpop.eup %6941  ;;  %v1825_v35 = vmul.f32 1.442695, %v1800_v62 }
 0x3d7   : > { %v1863_v56 = vsel %vm1363_vm0, %v8467_v40, 0.0 }
 0x3d8   : > { %6943 = vpow2.f32 %v1825_v35 }
 0x3db   : > { %v1775_v62 = vpop.xlane.xlu2 %1774 }
 0x3de   : > { %1858 = vadd.xlane.f32.xlu0 %v1857_v0  ;;  %v8471_v42 = vpop.eup %6943 }
 0x3df   : > { %v1866_v21 = vsel %vm1363_vm0, %v8471_v42, 0.0 }
 0x3e3   : > { %v1778_v44 = vpop.xlane.xlu1 %1777 }
 0x3e4   : > { %v1802_v36 = vsub.f32 %v8379_v8, %v1778_v44 }
 0x3e5   : > { %2502 = vrot.lane.b32.xlu1 %v8141_v37, %s7513_s22 }
 0x3e6   : > { %1861 = vadd.xlane.f32.xlu0 %v1860_v3  ;;  %v1829_v38 = vmul.f32 1.442695, %v1802_v36 }
 0x3e8   : > { %6945 = vpow2.f32 %v1829_v38 }
 0x3ec   : > { %v1781_v0 = vpop.xlane.xlu0 %1780 }
 0x3ed   : > { %v1803_v5 = vsub.f32 %v8387_v10, %v1781_v0  ;;  %v1801_v10 = vsub.f32 %v8371_v47, %v1775_v62 }
 0x3ee   : > { %1864 = vadd.xlane.f32.xlu0 %v1863_v56  ;;  %v8479_v7 = vpop.eup %6945 }
 0x3ef   : > { %v1831_v13 = vmul.f32 1.442695, %v1803_v5  ;;  %v1872_v3 = vsel %vm1363_vm0, %v8479_v7, 0.0 }
 0x3f1   : > { %6947 = vpow2.f32 %v1831_v13 }
 0x3f7   : > { %v8485_v8 = vpop.eup %6947 }
 0x3f8   : > { %v1875_v35 = vsel %vm1363_vm0, %v8485_v8, 0.0 }
 0x3fa   : > { %1867 = vadd.xlane.f32.xlu2 %v1866_v21  ;;  %v1827_v21 = vmul.f32 1.442695, %v1801_v10 }
 0x3fb   : > { %v1784_v36 = vpop.xlane.xlu0 %1783 }
 0x3fc   : > { %6949 = vpow2.f32 %v1827_v21  ;;  %v1804_v0 = vsub.f32 %v8395_v59, %v1784_v36  ;;  %v8498_v10 = vpop.xlane.xlu1 %1786  ;;  %v2068_v21 = vsel %vm1940_vm1, %v8268_v46, 0  ;;  %v2026_v46 = vsel %vm1940_vm1, %v8261_v52, 0 }
 0x3fe   : > { %v1833_v47 = vmul.f32 1.442695, %v1804_v0 }
 0x402   : > { %2525 = vrot.lane.b32.xlu0 %v8151_v14, %s7513_s22  ;;  %v8492_v38 = vpop.eup %6949 }
 0x403   : > { %v1869_v13 = vsel %vm1363_vm0, %v8492_v38, 0.0 }
 0x40e   : > { %v8505_v59 = vpop.permute.xlu0 %2458 }
 0x40f   : > { %1873 = vadd.xlane.f32.xlu1 %v1872_v3 }
 0x412   : > { %2481 = vrot.lane.b32.xlu2 %v8131_v17, %s7514_s17 }
 0x417   : > { %1876 = vadd.xlane.f32.xlu1 %v1875_v35 }
 0x41c   : > { %v8490_v56 = vpop.xlane.xlu2 %1789 }
 0x424   : > { %v1841_v44 = vpop.xlane.xlu2 %1840 }
 0x425   : > { %6951 = vrcp.f32 %v1841_v44 }
 0x42b   : > { %v6952_v5 = vpop.eup %6951 }
 0x42c   : > { %v1903_v3 = vmul.f32 %v6952_v5, %v8423_v18  ;;  %v1844_v35 = vpop.xlane.xlu2 %1843  ;;  %1870 = vadd.xlane.f32.xlu0 %v1869_v13  ;;  %v8510_v5 = vpop.permute.xlu1 %2527 }
 0x42d   : > { %6953 = vrcp.f32 %v1844_v35 }
 0x42e   : > { %v1919_v62 = vpack.c.bf16 %v1903_v3, %v1903_v3  ;;  %6955 = vpow2.f32 %v1833_v47 }
 0x430   : > { %6337 = vmatmul.msk.bf16.vlgmr.msra.gmra.mxu2 %vm1363_vm0, %v1919_v62  ;;  %2479 = vrot.lane.b32.xlu1 %v8131_v17, %s7513_s22 }
 0x431   : > { %2077 = vmatpush.bf16.msra.mxu2 %v2068_v21  ;;  %v2152_v21 = vsel %vm1940_vm1, %v8285_v15, 0 }
 0x433   : > { %v6954_v18 = vpop.eup %6953 }
 0x434   : > { %v1904_v44 = vmul.f32 %v6954_v18, %v8428_v34  ;;  %v8508_v0 = vpop.eup %6955 }
 0x435   : > { %v1878_v3 = vsel %vm1363_vm0, %v8508_v0, 0.0 }
 0x436   : > { %v1920_v36 = vpack.c.bf16 %v1904_v44, %v1904_v44 }
 0x438   : > { %6338 = vmatmul.msk.bf16.vlgmr.msra.gmra.mxu3 %vm1363_vm0, %v1920_v36  ;;  %2550 = vrot.lane.b32.xlu1 %v8162_v53, %s7514_s17 }
 0x439   : > { %2035 = vmatpush.bf16.msra.mxu3 %v2026_v46  ;;  %v1847_v13 = vpop.xlane.xlu0 %1846  ;;  %v2089_v46 = vsel %vm1940_vm1, %v8274_v25, 0 }
 0x43a   : > { %6957 = vrcp.f32 %v1847_v13 }
 0x43b   : > { %1879 = vadd.xlane.f32.xlu2 %v1878_v3 }
 0x43f   : > { %v1850_v34 = vpop.xlane.xlu1 %1849 }
 0x440   : > { %v6958_v35 = vpop.eup %6957  ;;  %6959 = vrcp.f32 %v1850_v34  ;;  %2617 = vrot.lane.b32.xlu1 %v8226_v28, %s7513_s22  ;;  %2596 = vrot.lane.b32.xlu0 %v8194_v16, %s7514_s17  ;;  %v2215_v34 = vsel %vm1940_vm1, %v8297_v50, 0 }
 0x441   : > { %v1905_v52 = vmul.f32 %v6958_v35, %v8434_v30  ;;  %v1853_v47 = vpop.xlane.xlu0 %1852 }
 0x443   : > { %v1921_v62 = vpack.c.bf16 %v1905_v52, %v1905_v52 }
 0x445   : > { %6339 = vmatmul.msk.bf16.vlgmr.msrb.gmra.mxu2 %vm1363_vm0, %v1921_v62 }
 0x446   : > { %v6960_v18 = vpop.eup %6959  ;;  %2161 = vmatpush.bf16.msrb.mxu2 %v2152_v21  ;;  %v2173_v21 = vsel %vm1940_vm1, %v8290_v60, 0 }
 0x447   : > { %v1906_v44 = vmul.f32 %v6960_v18, %v8439_v6  ;;  %v8565_v18 = vpop.permute.xlu2 %2504 }
 0x448   : > { %2895 = vrot.lane.b32.xlu1 %v8073_v43, %s7515_s27  ;;  %2573 = vrot.lane.b32.xlu0 %v8176_v63, %s7514_s17 }
 0x449   : > { %v1922_v36 = vpack.c.bf16 %v1906_v44, %v1906_v44  ;;  %v1856_v30 = vpop.xlane.xlu0 %1855 }
 0x44a   : > { %6961 = vrcp.f32 %v1856_v30 }
 0x44b   : > { %6340 = vmatmul.msk.bf16.vlgmr.msrb.gmra.mxu3 %vm1363_vm0, %v1922_v36  ;;  %6963 = vrcp.f32 %v1853_v47 }
 0x44c   : > { %2098 = vmatpush.bf16.msrb.mxu3 %v2089_v46  ;;  %v2257_v46 = vsel %vm1940_vm1, %v8411_v33, 0 }
 0x450   : > { %v6962_v15 = vpop.eup %6961  ;;  %2958 = vrot.lane.b32.xlu1 %v8103_v19, %s7515_s27  ;;  %2548 = vrot.lane.b32.xlu0 %v8162_v53, %s7513_s22 }
 0x451   : > { %v1859_v6 = vpop.xlane.xlu0 %1858  ;;  %v1908_v13 = vmul.f32 %v6962_v15, %v8450_v24  ;;  %v6964_v3 = vpop.eup %6963 }
 0x452   : > { %6965 = vrcp.f32 %v1859_v6  ;;  %v1907_v35 = vmul.f32 %v6964_v3, %v8441_v27  ;;  %v2236_v27 = vsel %vm1940_vm1, %v8407_v39, 0  ;;  %v1805_v3 = vsub.f32 %v8397_v54, %v8498_v10 }
 0x453   : > { %2456 = vrot.lane.b32.xlu2 %v8123_v11, %s7513_s22  ;;  %v1924_v25 = vpack.c.bf16 %v1908_v13, %v1908_v13 }
 0x454   : > { %v1923_v24 = vpack.c.bf16 %v1907_v35, %v1907_v35 }
 0x455   : > { %6342 = vmatmul.msk.bf16.vlgmr.msrb.gmra.mxu1 %vm1363_vm0, %v1924_v25  ;;  %v2303_v25 = vsel %vm1363_vm0, %v8369_v20, 0 }
 0x456   : > { %2224 = vmatpush.bf16.msrb.mxu1 %v2215_v34  ;;  %v1835_v34 = vmul.f32 1.442695, %v1805_v3 }
 0x458   : > { %v6966_v52 = vpop.eup %6965  ;;  %3000 = vrot.lane.b32.xlu1 %v8123_v11, %s7515_s27  ;;  %2832 = vrot.lane.b32.xlu0 %v8049_v29, %s7515_s27 }
 0x459   : > { %v1909_v47 = vmul.f32 %v6966_v52, %v8455_v1  ;;  %v1862_v62 = vpop.xlane.xlu0 %1861 }
 0x45a   : > { %6967 = vrcp.f32 %v1862_v62  ;;  %v2349_v62 = vsel %vm1363_vm0, %v8353_v61, 0 }
 0x45b   : > { %v1925_v50 = vpack.c.bf16 %v1909_v47, %v1909_v47  ;;  %2619 = vrot.lane.b32.xlu2 %v8226_v28, %s7514_s17  ;;  %6341 = vmatmul.msk.bf16.vlgmr.msra.gmra.mxu3 %vm1363_vm0, %v1923_v24  ;;  %s10487_s17 = sld [smem:[#allocation68_spill]] }
 0x45c   : > { %2182 = vmatpush.bf16.msra.mxu3 %v2173_v21 }
 0x45d   : > { %6343 = vmatmul.msk.bf16.vlgmr.msra.gmra.mxu2 %vm1363_vm0, %v1925_v50 }
 0x45e   : > { %2245 = vmatpush.bf16.msra.mxu2 %v2236_v27 }
 0x460   : > { %3126 = vrot.lane.b32.xlu1 %v8194_v16, %s7515_s27  ;;  %2853 = vrot.lane.b32.xlu0 %v8057_v23, %s7515_s27  ;;  %v6968_v1 = vpop.eup %6967 }
 0x461   : > { %v1865_v60 = vpop.xlane.xlu0 %1864  ;;  %v1910_v44 = vmul.f32 %v6968_v1, %v8460_v9  ;;  %v2280_v9 = vsel %vm1363_vm0, %v8359_v31, 0  ;;  %v8587_v31 = vpop.permute.xlu1 %2502 }
 0x462   : > { %6969 = vrcp.f32 %v1865_v60  ;;  %v2372_v60 = vsel %vm1363_vm0, %v8405_v12, 0  ;;  %v2464_v12 = vsel %vm1363_vm0, %v8505_v59, 0 }
 0x463   : > { %2594 = vrot.lane.b32.xlu2 %v8194_v16, %s7513_s22  ;;  %v1926_v36 = vpack.c.bf16 %v1910_v44, %v1910_v44 }
 0x468   : > { %v6970_v39 = vpop.eup %6969  ;;  %3239 = vrot.lane.b32.xlu1 %v8073_v43, %s7516_s15 }
 0x469   : > { %v1911_v30 = vmul.f32 %v6970_v39, %v8467_v40 }
 0x46b   : > { %2571 = vrot.lane.b32.xlu2 %v8176_v63, %s7513_s22  ;;  %6344 = vmatmul.msk.bf16.vlgmr.msrb.gmra.mxu3 %vm1363_vm0, %v1926_v36  ;;  %v1927_v15 = vpack.c.bf16 %v1911_v30, %v1911_v30 }
 0x46c   : > { %2266 = vmatpush.bf16.msrb.mxu3 %v2257_v46  ;;  %v2326_v46 = vsel %vm1363_vm0, %v8377_v55, 0 }
 0x46d   : > { %v1868_v6 = vpop.xlane.xlu2 %1867  ;;  %6345 = vmatmul.msk.bf16.vlgmr.msrb.gmra.mxu0 %vm1363_vm0, %v1927_v15 }
 0x46e   : > { %6971 = vrcp.f32 %v1868_v6  ;;  %2289 = vmatpush.bf16.xpose.msrb.mxu0 %v2280_v9 }
 0x46f   : > { %6973 = vpow2.f32 %v1835_v34 }
 0x473   : > { %2874 = vrot.lane.b32.xlu2 %v8065_v32, %s7515_s27 }
 0x474   : > { %v6972_v40 = vpop.eup %6971  ;;  %v8615_v61 = vpop.permute.xlu0 %2525 }
 0x475   : > { %v1912_v33 = vmul.f32 %v6972_v40, %v8471_v42  ;;  %v1806_v42 = vsub.f32 %v8419_v4, %v8490_v56  ;;  %v8595_v20 = vpop.eup %6973  ;;  %v2482_v44 = vpop.permute.xlu2 %2481 }
 0x476   : > { %v1881_v52 = vsel %vm1363_vm0, %v8595_v20, 0.0 }
 0x477   : > { %v1928_v13 = vpack.c.bf16 %v1912_v33, %v1912_v33  ;;  %v1837_v54 = vmul.f32 1.442695, %v1806_v42 }
 0x479   : > { %6346 = vmatmul.msk.bf16.vlgmr.msra.gmra.mxu1 %vm1363_vm0, %v1928_v13  ;;  %v2395_v13 = vsel %vm1363_vm0, %v8318_v57, 0 }
 0x47a   : > { %2312 = vmatpush.bf16.xpose.msra.mxu1 %v2303_v25 }
 0x47b   : > { %2916 = vrot.lane.b32.xlu2 %v8083_v22, %s7515_s27 }
 0x482   : > { %v1874_v35 = vpop.xlane.xlu1 %1873 }
 0x483   : > { %6975 = vrcp.f32 %v1874_v35  ;;  %3042 = vrot.lane.b32.xlu2 %v8141_v37, %s7515_s27 }
 0x484   : > { %6977 = vpow2.f32 %v1837_v54  ;;  %v2487_v54 = vsel %vm1363_vm0, %v2482_v44, 0 }
 0x489   : > { %v6976_v10 = vpop.eup %6975 }
 0x48a   : > { %v1914_v24 = vmul.f32 %v6976_v10, %v8479_v7  ;;  %v1877_v47 = vpop.xlane.xlu1 %1876  ;;  %1882 = vadd.xlane.f32.xlu0 %v1881_v52  ;;  %v8602_v56 = vpop.eup %6977 }
 0x48b   : > { %6979 = vrcp.f32 %v1877_v47  ;;  %3021 = vrot.lane.b32.xlu2 %v8131_v17, %s7515_s27  ;;  %v1884_v50 = vsel %vm1363_vm0, %v8602_v56, 0.0 }
 0x48c   : > { %v1930_v4 = vpack.c.bf16 %v1914_v24, %v1914_v24 }
 0x48e   : > { %6348 = vmatmul.msk.bf16.vlgmr.msra.gmra.mxu3 %vm1363_vm0, %v1930_v4 }
 0x48f   : > { %2358 = vmatpush.bf16.xpose.msra.mxu3 %v2349_v62 }
 0x491   : > { %v6980_v21 = vpop.eup %6979 }
 0x492   : > { %v1915_v7 = vmul.f32 %v6980_v21, %v8485_v8  ;;  %1885 = vadd.xlane.f32.xlu1 %v1884_v50 }
 0x493   : > { %3147 = vrot.lane.b32.xlu2 %v8226_v28, %s7515_s27 }
 0x494   : > { %v1931_v27 = vpack.c.bf16 %v1915_v7, %v1915_v7 }
 0x496   : > { %6349 = vmatmul.msk.bf16.vlgmr.msra.gmra.mxu0 %vm1363_vm0, %v1931_v27 }
 0x497   : > { %2381 = vmatpush.bf16.xpose.msra.mxu0 %v2372_v60 }
 0x49b   : > { %3216 = vrot.lane.b32.xlu2 %v8065_v32, %s7516_s15 }
 0x49e   : > { %2979 = vrot.lane.b32.xlu0 %v8113_v49, %s7515_s27 }
 0x49f   : > { %v1871_v8 = vpop.xlane.xlu0 %1870 }
 0x4a0   : > { %6981 = vrcp.f32 %v1871_v8 }
 0x4a2   : > { %v8630_v30 = vpop.permute.xlu1 %2479 }
 0x4a3   : > { %3193 = vrot.lane.b32.xlu2 %v8057_v23, %s7516_s15 }
 0x4a6   : > { %v6982_v1 = vpop.eup %6981  ;;  %6353 = vmatmul.msk.bf16.vlgmr.msrb.gmra.mxu0 %vm1363_vm0, %v8375_v58  ;;  %2937 = vrot.lane.b32.xlu0 %v8093_v26, %s7515_s27 }
 0x4a7   : > { %v1913_v39 = vmul.f32 %v6982_v1, %v8492_v38  ;;  %2473 = vmatpush.bf16.xpose.msrb.mxu0 %v2464_v12 }
 0x4a9   : > { %v1929_v36 = vpack.c.bf16 %v1913_v39, %v1913_v39 }
 0x4aa   : > { %v2551_v59 = vpop.permute.xlu1 %2550 }
 0x4ab   : > { %3214 = vrot.lane.b32.xlu1 %v8065_v32, %s7517_s16  ;;  %6347 = vmatmul.msk.bf16.vlgmr.msrb.gmra.mxu2 %vm1363_vm0, %v1929_v36  ;;  %v2556_v55 = vsel %vm1363_vm0, %v2551_v59, 0 }
 0x4ac   : > { %2335 = vmatpush.bf16.xpose.msrb.mxu2 %v2326_v46 }
 0x4ae   : > { %v1880_v58 = vpop.xlane.xlu2 %1879  ;;  %3063 = vrot.lane.b32.xlu0 %v8151_v14, %s7515_s27 }
 0x4af   : > { %6983 = vrcp.f32 %v1880_v58 }
 0x4b2   : > { %v8639_v38 = vpop.permute.xlu0 %2596  ;;  %v8668_v52 = vpop.permute.xlu1 %2617 }
 0x4b3   : > { %v8641_v15 = vpop.f32.mrf.mxu2 }
 0x4b4   : > { %10400 = vst [vmem:[#allocation41_spill] sm:$0xff] %v8641_v15 }
 0x4b5   : > { %v6984_v9 = vpop.eup %6983 }
 0x4b6   : > { %v1916_v6 = vmul.f32 %v6984_v9, %v8508_v0  ;;  %v2457_v40 = vpop.permute.xlu2 %2456  ;;  %6357 = vmatmul.msk.bf16.vlgmr.msra.gmra.mxu0 %vm1363_vm0, %v8320_v41  ;;  %3084 = vrot.lane.b32.xlu0 %v8162_v53, %s7515_s27 }
 0x4b7   : > { %2565 = vmatpush.bf16.xpose.msra.mxu0 %v2556_v55 }
 0x4b8   : > { %v1932_v33 = vpack.c.bf16 %v1916_v6, %v1916_v6 }
 0x4ba   : > { %6350 = vmatmul.msk.bf16.vlgmr.msrb.gmra.mxu1 %vm1363_vm0, %v1932_v33  ;;  %v2574_v3 = vpop.permute.xlu0 %2573  ;;  %v8677_v50 = vpop.permute.xlu1 %2895 }
 0x4bb   : > { %2404 = vmatpush.bf16.xpose.msrb.mxu1 %v2395_v13  ;;  %v1955_v25 = vpop.f32.mrf.mxu2  ;;  %v8652_v34 = vpop.f32.mrf.mxu3  ;;  %v2579_v27 = vsel %vm1363_vm0, %v2574_v3, 0 }
 0x4bc   : > { %10401 = vst [vmem:[#allocation42_spill] sm:$0xff] %v8652_v34 }
 0x4be   : > { %v8654_v0 = vpop.permute.xlu2 %2619  ;;  %3105 = vrot.lane.b32.xlu0 %v8176_v63, %s7515_s27 }
 0x4c2   : > { %v2549_v41 = vpop.permute.xlu0 %2548  ;;  %v8687_v12 = vpop.permute.xlu1 %2958 }
 0x4c3   : > { %v1976_v42 = vpop.f32.mrf.mxu3 }
 0x4c6   : > { %v8658_v35 = vpop.permute.xlu2 %2594  ;;  %6361 = vmatmul.msk.bf16.vlgmr.msrb.gmra.mxu0 %vm1363_vm0, %v2457_v40  ;;  %3170 = vrot.lane.b32.xlu0 %v8049_v29, %s7516_s15 }
 0x4c8   : > { %v8663_v57 = vpop.f32.mrf.mxu2 }
 0x4c9   : > { %10402 = vst [vmem:[#allocation43_spill] sm:$0xff] %v8663_v57 }
 0x4ca   : > { %6354 = vmatmul.msk.bf16.vlgmr.msra.gmra.mxu1 %vm1363_vm0, %v8393_v48  ;;  %v2833_v10 = vpop.permute.xlu0 %2832  ;;  %v8692_v59 = vpop.permute.xlu1 %3000 }
 0x4cb   : > { %2496 = vmatpush.bf16.xpose.msra.mxu1 %v2487_v54  ;;  %v2838_v24 = vsel %vm1940_vm1, %v2833_v10, 0 }
 0x4cc   : > { %2847 = vmatpush.bf16.msrb.mxu0 %v2838_v24  ;;  %v2418_v24 = vsel %vm1363_vm0, %v8310_v2, 0  ;;  %v2510_v2 = vsel %vm1363_vm0, %v8565_v18, 0 }
 0x4ce   : > { %v2572_v47 = vpop.permute.xlu2 %2571  ;;  %v8671_v4 = vpop.f32.mrf.mxu3  ;;  %3237 = vrot.lane.b32.xlu0 %v8073_v43, %s7517_s16 }
 0x4cf   : > { %10403 = vst [vmem:[#allocation44_spill] sm:$0xff] %v8671_v4 }
 0x4d0   : > { %v1997_v62 = vpop.f32.mrf.mxu2 }
 0x4d2   : > { %v8675_v21 = vpop.f32.mrf.mxu1  ;;  %v2854_v46 = vpop.permute.xlu0 %2853 }
 0x4d3   : > { %10404 = vst [vmem:[#allocation45_spill] sm:$0xff] %v8675_v21  ;;  %v2859_v9 = vsel %vm1940_vm1, %v2854_v46, 0  ;;  %v8701_v40 = vpop.permute.xlu1 %3126 }
 0x4d6   : > { %v8679_v7 = vpop.permute.xlu2 %2874  ;;  %v2018_v48 = vpop.f32.mrf.mxu3  ;;  %6365 = vmatmul.msk.bf16.vlgmr.msra.gmra.mxu0 %vm1363_vm0, %v2549_v41 }
 0x4da   : > { %6358 = vmatmul.msk.bf16.vlgmr.msrb.gmra.mxu1 %vm1363_vm0, %v8401_v45  ;;  %v2060_v60 = vpop.f32.mrf.mxu1 }
 0x4db   : > { %2588 = vmatpush.bf16.xpose.msrb.mxu1 %v2579_v27  ;;  %v8706_v3 = vpop.permute.xlu1 %3239  ;;  %v2441_v60 = vsel %vm1363_vm0, %v8383_v51, 0 }
 0x4de   : > { %v2917_v8 = vpop.permute.xlu2 %2916  ;;  %v8685_v1 = vpop.f32.mrf.mxu3 }
 0x4df   : > { %10405 = vst [vmem:[#allocation46_spill] sm:$0xff] %v8685_v1  ;;  %v2922_v44 = vsel %vm1940_vm1, %v2917_v8, 0 }
 0x4e0   : > { %2931 = vmatpush.bf16.msra.mxu0 %v2922_v44  ;;  %v8690_v39 = vpop.f32.mrf.mxu2 }
 0x4e1   : > { %10406 = vst [vmem:[#allocation47_spill] sm:$0xff] %v8690_v39 }
 0x4e6   : > { %v2039_v36 = vpop.f32.mrf.mxu3 }
 0x4e8   : > { %v2081_v58 = vpop.f32.mrf.mxu2 }
 0x4e9   : > { %v2533_v58 = vsel %vm1363_vm0, %v8510_v5, 0  ;;  %v2625_v5 = vsel %vm1363_vm0, %v8654_v0, 0  ;;  %v2901_v0 = vsel %vm1940_vm1, %v8677_v50, 0 }
 0x4ea   : > { %6362 = vmatmul.msk.bf16.vlgmr.msra.gmra.mxu1 %vm1363_vm0, %v8630_v30  ;;  %v8697_v45 = vpop.f32.mrf.mxu0 }
 0x4eb   : > { %10407 = vst [vmem:[#allocation48_spill] sm:$0xff] %v8697_v45  ;;  %2868 = vmatpush.bf16.msra.mxu1 %v2859_v9  ;;  %v10413_v9 = vld [vmem:[#allocation37_spill] sm:$0xff] }
 0x4ee   : > { %v8699_v55 = vpop.f32.mrf.mxu3 }
 0x4ef   : > { %10408 = vst [vmem:[#allocation49_spill] sm:$0xff] %v8699_v55 }
 0x4f2   : > { %v2123_v6 = vpop.f32.mrf.mxu0 }
 0x4f6   : > { %v2102_v33 = vpop.f32.mrf.mxu3  ;;  %v8703_v13 = vpop.f32.mrf.mxu1 }
 0x4f7   : > { %10409 = vst [vmem:[#allocation50_spill] sm:$0xff] %v8703_v13  ;;  %v2602_v33 = vsel %vm1363_vm0, %v8639_v38, 0  ;;  %v2880_v38 = vsel %vm1940_vm1, %v8679_v7, 0 }
 0x4fa   : > { %6366 = vmatmul.msk.bf16.vlgmr.msrb.gmra.mxu1 %vm1363_vm0, %v2572_v47 }
 0x4fd   : > { %v1883_v25 = vpop.xlane.xlu0 %1882 }
 0x4fe   : > { %6985 = vrcp.f32 %v1883_v25  ;;  %v2144_v41 = vpop.f32.mrf.mxu1  ;;  %v10414_v25 = vld [vmem:[#allocation39_spill] sm:$0xff] }
 0x504   : > { %v6986_v42 = vpop.eup %6985 }
 0x505   : > { %v1917_v30 = vmul.f32 %v6986_v42, %v8595_v20  ;;  %v1886_v54 = vpop.xlane.xlu1 %1885 }
 0x506   : > { %6987 = vrcp.f32 %v1886_v54 }
 0x507   : > { %v1933_v10 = vpack.c.bf16 %v1917_v30, %v1917_v30  ;;  %v10416_v30 = vld [vmem:[#allocation40_spill] sm:$0xff] }
 0x509   : > { %6351 = vmatmul.msk.bf16.vlgmr.msra.gmra.mxu2 %vm1363_vm0, %v1933_v10 }
 0x50a   : > { %2427 = vmatpush.bf16.xpose.msra.mxu2 %v2418_v24 }
 0x50c   : > { %v6988_v62 = vpop.eup %6987 }
 0x50d   : > { %v1918_v47 = vmul.f32 %v6988_v62, %v8602_v56  ;;  %v10412_v56 = vld [vmem:[#allocation38_spill] sm:$0xff] }
 0x50f   : > { %v1934_v48 = vpack.c.bf16 %v1918_v47, %v1918_v47 }
 0x510   : > { %v2980_v27 = vpop.permute.xlu0 %2979 }
 0x511   : > { %v8715_v8 = vpop.f32.mrf.mxu3  ;;  %6352 = vmatmul.msk.bf16.vlgmr.msrb.gmra.mxu3 %vm1363_vm0, %v1934_v48 }
 0x512   : > { %10410 = vst [vmem:[#allocation51_spill] sm:$0xff] %v8715_v8  ;;  %2450 = vmatpush.bf16.xpose.msrb.mxu3 %v2441_v60 }
 0x513   : > { %v8718_v20 = vpop.f32.mrf.mxu0 }
 0x514   : > { %10411 = vst [vmem:[#allocation52_spill] sm:$0xff] %v8718_v20 }
 0x518   : > { %v2938_v44 = vpop.permute.xlu0 %2937 }
 0x519   : > { %v2943_v36 = vsel %vm1940_vm1, %v2938_v44, 0  ;;  %v2186_v46 = vpop.f32.mrf.mxu3  ;;  %6355 = vmatmul.msk.bf16.vlgmr.msrb.gmra.mxu2 %vm1363_vm0, %v10412_v56 }
 0x51a   : > { %2519 = vmatpush.bf16.xpose.msrb.mxu2 %v2510_v2  ;;  %2952 = vmatpush.bf16.msrb.mxu1 %v2943_v36  ;;  %v2985_v2 = vsel %vm1940_vm1, %v2980_v27, 0 }
 0x51b   : > { %v2207_v51 = vpop.f32.mrf.mxu0 }
 0x521   : > { %6356 = vmatmul.msk.bf16.vlgmr.msra.gmra.mxu3 %vm1363_vm0, %v10413_v9 }
 0x522   : > { %2542 = vmatpush.bf16.xpose.msra.mxu3 %v2533_v58 }
 0x523   : > { %v8729_v6 = vpop.f32.mrf.mxu0 }
 0x524   : > { %v2640_v18 = vsel %vm1363_vm0, %v8729_v6, -inf }
 0x525   : > { %2641 = vmax.xlane.f32.xlu2 %v2640_v18 }
 0x529   : > { %6359 = vmatmul.msk.bf16.vlgmr.msra.gmra.mxu2 %vm1363_vm0, %v10414_v25 }
 0x52a   : > { %2611 = vmatpush.bf16.xpose.msra.mxu2 %v2602_v33  ;;  %v8784_v33 = vpop.permute.xlu2 %3042 }
 0x52b   : > { %v2293_v41 = vpop.f32.mrf.mxu0 }
 0x52e   : > { %v8737_v42 = vpop.f32.mrf.mxu2 }
 0x52f   : > { %10415 = vst [vmem:[#allocation38_spill] sm:$0xff] %v8737_v42 }
 0x531   : > { %6360 = vmatmul.msk.bf16.vlgmr.msrb.gmra.mxu3 %vm1363_vm0, %v10416_v30  ;;  %v8790_v30 = vpop.permute.xlu0 %3063 }
 0x532   : > { %2634 = vmatpush.bf16.xpose.msrb.mxu3 %v2625_v5  ;;  %v8788_v5 = vpop.permute.xlu2 %3021 }
 0x533   : > { %v8743_v54 = vpop.f32.mrf.mxu0 }
 0x536   : > { %v2165_v10 = vpop.f32.mrf.mxu2 }
 0x537   : > { %v8745_v24 = vpop.f32.mrf.mxu1 }
 0x538   : > { %10417 = vst [vmem:[#allocation37_spill] sm:$0xff] %v8745_v24 }
 0x539   : > { %6363 = vmatmul.msk.bf16.vlgmr.msrb.gmra.mxu2 %vm1363_vm0, %v8587_v31  ;;  %v2964_v31 = vsel %vm1940_vm1, %v8687_v12, 0 }
 0x53a   : > { %2889 = vmatpush.bf16.msrb.mxu2 %v2880_v38 }
 0x53b   : > { %v2385_v62 = vpop.f32.mrf.mxu0 }
 0x53f   : > { %v2228_v47 = vpop.f32.mrf.mxu1 }
 0x541   : > { %6364 = vmatmul.msk.bf16.vlgmr.msra.gmra.mxu3 %vm1363_vm0, %v8615_v61  ;;  %v2652_v61 = vsel %vm1363_vm0, %v8743_v54, -inf }
 0x542   : > { %2910 = vmatpush.bf16.msra.mxu3 %v2901_v0 }
 0x543   : > { %v8755_v48 = vpop.f32.mrf.mxu0 }
 0x547   : > { %v8757_v60 = vpop.f32.mrf.mxu1 }
 0x548   : > { %v2643_v7 = vsel %vm1363_vm0, %v8757_v60, -inf }
 0x549   : > { %2644 = vmax.xlane.f32.xlu1 %v2643_v7  ;;  %6367 = vmatmul.msk.bf16.vlgmr.msra.gmra.mxu2 %vm1363_vm0, %v8658_v35 }
 0x54a   : > { %2973 = vmatpush.bf16.msra.mxu2 %v2964_v31 }
 0x54b   : > { %v2477_v50 = vpop.f32.mrf.mxu0 }
 0x54c   : > { %v8802_v50 = vpop.permute.xlu2 %3147 }
 0x54f   : > { %v2316_v44 = vpop.f32.mrf.mxu1 }
 0x550   : > { %v8804_v44 = vpop.permute.xlu0 %3084 }
 0x551   : > { %2653 = vmax.xlane.f32.xlu1 %v2652_v61  ;;  %6368 = vmatmul.msk.bf16.vlgmr.msrb.gmra.mxu3 %vm1363_vm0, %v8668_v52 }
 0x552   : > { %2994 = vmatpush.bf16.msrb.mxu3 %v2985_v2 }
 0x553   : > { %v8770_v36 = vpop.f32.mrf.mxu0 }
 0x557   : > { %v8772_v12 = vpop.f32.mrf.mxu1 }
 0x558   : > { %v2655_v35 = vsel %vm1363_vm0, %v8772_v12, -inf }
 0x559   : > { %2656 = vmax.xlane.f32.xlu0 %v2655_v35  ;;  %v2664_v35 = vsel %vm1363_vm0, %v8755_v48, -inf }
 0x55b   : > { %v2569_v46 = vpop.f32.mrf.mxu0 }
 0x55c   : > { %v8810_v46 = vpop.permute.xlu2 %3216 }
 0x55f   : > { %v2408_v56 = vpop.f32.mrf.mxu1 }
 0x560   : > { %v8812_v56 = vpop.permute.xlu0 %3105 }
 0x567   : > { %v8776_v51 = vpop.f32.mrf.mxu1 }
 0x568   : > { %v2667_v27 = vsel %vm1363_vm0, %v8776_v51, -inf }
 0x569   : > { %2668 = vmax.xlane.f32.xlu2 %v2667_v27 }
 0x56f   : > { %v2500_v58 = vpop.f32.mrf.mxu1 }
 0x577   : > { %v8780_v9 = vpop.f32.mrf.mxu1 }
 0x578   : > { %v2679_v31 = vsel %vm1363_vm0, %v8780_v9, -inf }
 0x57f   : > { %v2592_v52 = vpop.f32.mrf.mxu1 }
 0x58c   : > { %v8782_v18 = vpop.f32.mrf.mxu2 }
 0x58d   : > { %10418 = vst [vmem:[#allocation39_spill] sm:$0xff] %v8782_v18 }
 0x594   : > { %v8786_v25 = vpop.f32.mrf.mxu3  ;;  %v2249_v41 = vpop.f32.mrf.mxu2 }
 0x595   : > { %10419 = vst [vmem:[#allocation40_spill] sm:$0xff] %v8786_v25 }
 0x59c   : > { %v2270_v10 = vpop.f32.mrf.mxu3  ;;  %v8792_v38 = vpop.f32.mrf.mxu2 }
 0x59d   : > { %v2646_v62 = vsel %vm1363_vm0, %v8792_v38, -inf  ;;  %v8820_v10 = vpop.permute.xlu2 %3193 }
 0x59e   : > { %2647 = vmax.xlane.f32.xlu1 %v2646_v62  ;;  %v8822_v62 = vpop.permute.xlu0 %3170 }
 0x5a4   : > { %v8796_v47 = vpop.f32.mrf.mxu3  ;;  %v2339_v0 = vpop.f32.mrf.mxu2 }
 0x5a5   : > { %v2649_v7 = vsel %vm1363_vm0, %v8796_v47, -inf }
 0x5a6   : > { %2650 = vmax.xlane.f32.xlu0 %v2649_v7  ;;  %2680 = vmax.xlane.f32.xlu1 %v2679_v31  ;;  %v2676_v31 = vsel %vm1363_vm0, %v8770_v36, -inf }
 0x5ac   : > { %v2362_v61 = vpop.f32.mrf.mxu3  ;;  %v8806_v2 = vpop.f32.mrf.mxu2 }
 0x5ad   : > { %v2658_v52 = vsel %vm1363_vm0, %v8806_v2, -inf  ;;  %v8828_v61 = vpop.permute.xlu1 %3214 }
 0x5ae   : > { %2665 = vmax.xlane.f32.xlu0 %v2664_v35  ;;  %v2642_v35 = vpop.xlane.xlu2 %2641 }
 0x5b4   : > { %v8814_v27 = vpop.f32.mrf.mxu3  ;;  %v2431_v58 = vpop.f32.mrf.mxu2 }
 0x5b5   : > { %v2661_v41 = vsel %vm1363_vm0, %v8814_v27, -inf  ;;  %v8830_v58 = vpop.permute.xlu0 %3237 }
 0x5b6   : > { %2659 = vmax.xlane.f32.xlu0 %v2658_v52  ;;  %2662 = vmax.xlane.f32.xlu2 %v2661_v41  ;;  %v2688_v52 = vsub.f32 %v8729_v6, %v2642_v35 }
 0x5bc   : > { %v2454_v0 = vpop.f32.mrf.mxu3  ;;  %v8824_v7 = vpop.f32.mrf.mxu2 }
 0x5bd   : > { %v2670_v25 = vsel %vm1363_vm0, %v8824_v7, -inf  ;;  %v2645_v20 = vpop.xlane.xlu1 %2644 }
 0x5be   : > { %2677 = vmax.xlane.f32.xlu2 %v2676_v31  ;;  %v2704_v31 = vmul.f32 1.442695, %v2688_v52  ;;  %v2689_v24 = vsub.f32 %v8757_v60, %v2645_v20 }
 0x5c0   : > { %6989 = vpow2.f32 %v2704_v31 }
 0x5c4   : > { %v8832_v18 = vpop.f32.mrf.mxu3  ;;  %v2523_v41 = vpop.f32.mrf.mxu2 }
 0x5c5   : > { %v2673_v0 = vsel %vm1363_vm0, %v8832_v18, -inf  ;;  %v2706_v41 = vmul.f32 1.442695, %v2689_v24  ;;  %v2654_v39 = vpop.xlane.xlu1 %2653 }
 0x5c6   : > { %2671 = vmax.xlane.f32.xlu2 %v2670_v25  ;;  %2674 = vmax.xlane.f32.xlu1 %v2673_v0  ;;  %v8845_v25 = vpop.eup %6989  ;;  %v2692_v20 = vsub.f32 %v8743_v54, %v2654_v39 }
 0x5c8   : > { %v2712_v24 = vmul.f32 1.442695, %v2692_v20 }
 0x5cc   : > { %v2657_v42 = vpop.xlane.xlu0 %2656  ;;  %v2546_v8 = vpop.f32.mrf.mxu3 }
 0x5cd   : > { %v2693_v45 = vsub.f32 %v8772_v12, %v2657_v42  ;;  %v8841_v13 = vpop.f32.mrf.mxu2  ;;  %v2736_v12 = vsel %vm1363_vm0, %v8845_v25, 0.0 }
 0x5ce   : > { %v2682_v6 = vsel %vm1363_vm0, %v8841_v13, -inf }
 0x5cf   : > { %v2714_v35 = vmul.f32 1.442695, %v2693_v45  ;;  %2683 = vmax.xlane.f32.xlu1 %v2682_v6 }
 0x5d1   : > { %6991 = vpow2.f32 %v2714_v35 }
 0x5d2   : > { %6993 = vpow2.f32 %v2706_v41 }
 0x5d3   : > { %6995 = vpow2.f32 %v2712_v24 }
 0x5d4   : > { %v8848_v60 = vpop.f32.mrf.mxu3 }
 0x5d5   : > { %v2615_v8 = vpop.f32.mrf.mxu2  ;;  %v2685_v42 = vsel %vm1363_vm0, %v8848_v60, -inf }
 0x5d6   : > { %2686 = vmax.xlane.f32.xlu0 %v2685_v42 }
 0x5d7   : > { %v8854_v45 = vpop.eup %6991  ;;  %2737 = vadd.xlane.f32.xlu1 %v2736_v12 }
 0x5d8   : > { %v2751_v52 = vsel %vm1363_vm0, %v8854_v45, 0.0  ;;  %v8858_v0 = vpop.eup %6993 }
 0x5d9   : > { %2752 = vadd.xlane.f32.xlu2 %v2751_v52  ;;  %v2739_v54 = vsel %vm1363_vm0, %v8858_v0, 0.0  ;;  %v8862_v31 = vpop.eup %6995 }
 0x5da   : > { %v2748_v6 = vsel %vm1363_vm0, %v8862_v31, 0.0 }
 0x5dc   : > { %v2638_v39 = vpop.f32.mrf.mxu3  ;;  %v2669_v35 = vpop.xlane.xlu2 %2668 }
 0x5dd   : > { %v2697_v41 = vsub.f32 %v8776_v51, %v2669_v35 }
 0x5de   : > { %2740 = vadd.xlane.f32.xlu0 %v2739_v54 }
 0x5df   : > { %v2722_v20 = vmul.f32 1.442695, %v2697_v41 }
 0x5e1   : > { %6997 = vpow2.f32 %v2722_v20 }
 0x5e6   : > { %2749 = vadd.xlane.f32.xlu0 %v2748_v6 }
 0x5e7   : > { %v8870_v24 = vpop.eup %6997 }
 0x5e8   : > { %v2763_v39 = vsel %vm1363_vm0, %v8870_v24, 0.0 }
 0x5f0   : > { %3191 = vrot.lane.b32.xlu1 %v8057_v23, %s7517_s16 }
 0x611   : > { %v2648_v8 = vpop.xlane.xlu1 %2647 }
 0x612   : > { %v2690_v42 = vsub.f32 %v8792_v38, %v2648_v8 }
 0x614   : > { %v2708_v12 = vmul.f32 1.442695, %v2690_v42 }
 0x616   : > { %6999 = vpow2.f32 %v2708_v12 }
 0x619   : > { %v2651_v52 = vpop.xlane.xlu0 %2650 }
 0x61a   : > { %v2691_v54 = vsub.f32 %v8796_v47, %v2651_v52  ;;  %2764 = vadd.xlane.f32.xlu1 %v2763_v39  ;;  %v2681_v47 = vpop.xlane.xlu1 %2680 }
 0x61c   : > { %v8875_v6 = vpop.eup %6999  ;;  %v2710_v55 = vmul.f32 1.442695, %v2691_v54 }
 0x61d   : > { %v2742_v51 = vsel %vm1363_vm0, %v8875_v6, 0.0 }
 0x61e   : > { %7001 = vpow2.f32 %v2710_v55  ;;  %2743 = vadd.xlane.f32.xlu0 %v2742_v51 }
 0x621   : > { %v2666_v52 = vpop.xlane.xlu0 %2665 }
 0x624   : > { %v8879_v38 = vpop.eup %7001 }
 0x625   : > { %v2745_v35 = vsel %vm1363_vm0, %v8879_v38, 0.0 }
 0x626   : > { %2746 = vadd.xlane.f32.xlu2 %v2745_v35 }
 0x629   : > { %v2663_v41 = vpop.xlane.xlu2 %2662  ;;  %v2660_v35 = vpop.xlane.xlu0 %2659 }
 0x62a   : > { %v2695_v20 = vsub.f32 %v8814_v27, %v2663_v41  ;;  %v2694_v34 = vsub.f32 %v8806_v2, %v2660_v35 }
 0x62c   : > { %v2718_v8 = vmul.f32 1.442695, %v2695_v20 }
 0x62e   : > { %7003 = vpow2.f32 %v2718_v8 }
 0x631   : > { %v2678_v42 = vpop.xlane.xlu2 %2677 }
 0x632   : > { %3308 = vrot.lane.b32.xlu0 %v8103_v19, %s7516_s15 }
 0x634   : > { %v8886_v12 = vpop.eup %7003 }
 0x635   : > { %v2757_v55 = vsel %vm1363_vm0, %v8886_v12, 0.0 }
 0x636   : > { %2758 = vadd.xlane.f32.xlu1 %v2757_v55  ;;  %v2696_v55 = vsub.f32 %v8755_v48, %v2666_v52  ;;  %v3006_v48 = vsel %vm1940_vm1, %v8692_v59, 0  ;;  %v3027_v59 = vsel %vm1940_vm1, %v8788_v5, 0 }
 0x639   : > { %v2672_v39 = vpop.xlane.xlu2 %2671  ;;  %v8890_v54 = vpop.xlane.xlu1 %2674 }
 0x63a   : > { %v2698_v51 = vsub.f32 %v8824_v7, %v2672_v39  ;;  %v2720_v7 = vmul.f32 1.442695, %v2696_v55 }
 0x63c   : > { %v2724_v27 = vmul.f32 1.442695, %v2698_v51  ;;  %v2701_v51 = vsub.f32 %v8780_v9, %v2681_v47  ;;  %v2716_v9 = vmul.f32 1.442695, %v2694_v34 }
 0x63e   : > { %7005 = vpow2.f32 %v2724_v27  ;;  %3168 = vrot.lane.b32.xlu2 %v8049_v29, %s7517_s16  ;;  %v2730_v15 = vmul.f32 1.442695, %v2701_v51 }
 0x642   : > { %v8895_v41 = vpop.xlane.xlu1 %2683 }
 0x644   : > { %v8897_v20 = vpop.eup %7005 }
 0x645   : > { %v2766_v8 = vsel %vm1363_vm0, %v8897_v20, 0.0 }
 0x646   : > { %2767 = vadd.xlane.f32.xlu1 %v2766_v8 }
 0x649   : > { %v8902_v1 = vpop.xlane.xlu0 %2686 }
 0x64a   : > { %v2738_v21 = vpop.xlane.xlu1 %2737 }
 0x64b   : > { %7007 = vrcp.f32 %v2738_v21 }
 0x64c   : > { %7009 = vpow2.f32 %v2720_v7 }
 0x651   : > { %v7008_v39 = vpop.eup %7007  ;;  %v2741_v27 = vpop.xlane.xlu0 %2740 }
 0x652   : > { %v2800_v57 = vmul.f32 %v7008_v39, %v8845_v25  ;;  %7011 = vrcp.f32 %v2741_v27  ;;  %v8910_v52 = vpop.eup %7009  ;;  %v2753_v25 = vpop.xlane.xlu2 %2752  ;;  %v3090_v39 = vsel %vm1940_vm1, %v8804_v44, 0 }
 0x653   : > { %7013 = vpow2.f32 %v2730_v15  ;;  %v2760_v2 = vsel %vm1363_vm0, %v8910_v52, 0.0 }
 0x654   : > { %v2816_v4 = vpack.c.bf16 %v2800_v57, %v2800_v57 }
 0x656   : > { %6369 = vmatmul.msk.bf16.vlgmr.msrb.gmra.mxu0 %vm1363_vm0, %v2816_v4  ;;  %v2700_v4 = vsub.f32 %v8770_v36, %v2678_v42  ;;  %v2699_v42 = vsub.f32 %v8832_v18, %v8890_v54  ;;  %v3111_v18 = vsel %vm1940_vm1, %v8812_v56, 0 }
 0x657   : > { %3015 = vmatpush.bf16.msrb.mxu0 %v3006_v48 }
 0x658   : > { %v7012_v21 = vpop.eup %7011  ;;  %v2726_v27 = vmul.f32 1.442695, %v2699_v42 }
 0x659   : > { %v2801_v47 = vmul.f32 %v7012_v21, %v8858_v0  ;;  %v2750_v8 = vpop.xlane.xlu0 %2749  ;;  %v8919_v15 = vpop.eup %7013  ;;  %v2728_v0 = vmul.f32 1.442695, %v2700_v4 }
 0x65a   : > { %7015 = vrcp.f32 %v2750_v8  ;;  %v2775_v5 = vsel %vm1363_vm0, %v8919_v15, 0.0 }
 0x65b   : > { %v2817_v57 = vpack.c.bf16 %v2801_v47, %v2801_v47  ;;  %7017 = vpow2.f32 %v2716_v9  ;;  %v2702_v47 = vsub.f32 %v8841_v13, %v8895_v41  ;;  %v3199_v13 = vsel %vm1363_vm0, %v8820_v10, 0 }
 0x65c   : > { %2761 = vadd.xlane.f32.xlu0 %v2760_v2  ;;  %7019 = vrcp.f32 %v2753_v25 }
 0x65d   : > { %6370 = vmatmul.msk.bf16.vlgmr.msra.gmra.mxu1 %vm1363_vm0, %v2817_v57  ;;  %7021 = vpow2.f32 %v2728_v0  ;;  %v2732_v57 = vmul.f32 1.442695, %v2702_v47  ;;  %v3048_v0 = vsel %vm1940_vm1, %v8784_v33, 0 }
 0x65e   : > { %3036 = vmatpush.bf16.msra.mxu1 %v3027_v59  ;;  %7023 = vpow2.f32 %v2726_v27 }
 0x65f   : > { %3262 = vrot.lane.b32.xlu1 %v8083_v22, %s7516_s15 }
 0x660   : > { %v7016_v34 = vpop.eup %7015 }
 0x661   : > { %v2804_v35 = vmul.f32 %v7016_v34, %v8862_v31  ;;  %v8924_v55 = vpop.eup %7017 }
 0x662   : > { %v7020_v36 = vpop.eup %7019  ;;  %v2754_v31 = vsel %vm1363_vm0, %v8924_v55, 0.0  ;;  %v8957_v56 = vpop.permute.xlu1 %3191 }
 0x663   : > { %v2820_v7 = vpack.c.bf16 %v2804_v35, %v2804_v35  ;;  %v2805_v51 = vmul.f32 %v7020_v36, %v8854_v45  ;;  %v8938_v48 = vpop.eup %7021  ;;  %v3069_v36 = vsel %vm1940_vm1, %v8790_v30, 0  ;;  %v3153_v30 = vsel %vm1940_vm1, %v8802_v50, 0 }
 0x664   : > { %2776 = vadd.xlane.f32.xlu0 %v2775_v5  ;;  %v2772_v44 = vsel %vm1363_vm0, %v8938_v48, 0.0  ;;  %v8947_v45 = vpop.eup %7023 }
 0x665   : > { %v2821_v21 = vpack.c.bf16 %v2805_v51, %v2805_v51  ;;  %v2769_v54 = vsel %vm1363_vm0, %v8947_v45, 0.0 }
 0x666   : > { %6373 = vmatmul.msk.bf16.vlgmr.msra.gmra.mxu0 %vm1363_vm0, %v2820_v7 }
 0x667   : > { %3099 = vmatpush.bf16.msra.mxu0 %v3090_v39  ;;  %2755 = vadd.xlane.f32.xlu2 %v2754_v31 }
 0x668   : > { %3329 = vrot.lane.b32.xlu1 %v8113_v49, %s7517_s16 }
 0x66d   : > { %6374 = vmatmul.msk.bf16.vlgmr.msrb.gmra.mxu1 %vm1363_vm0, %v2821_v21 }
 0x66e   : > { %3120 = vmatpush.bf16.msrb.mxu1 %v3111_v18 }
 0x66f   : > { %2773 = vadd.xlane.f32.xlu2 %v2772_v44 }
 0x670   : > { %3400 = vrot.lane.b32.xlu1 %v8141_v37, %s7516_s15 }
 0x677   : > { %2770 = vadd.xlane.f32.xlu2 %v2769_v54 }
 0x678   : > { %3377 = vrot.lane.b32.xlu1 %v8131_v17, %s7516_s15  ;;  %3285 = vrot.lane.b32.xlu0 %v8093_v26, %s7516_s15 }
 0x680   : > { %3352 = vrot.lane.b32.xlu1 %v8123_v11, %s7517_s16 }
 0x688   : > { %3515 = vrot.lane.b32.xlu1 %v8226_v28, %s7516_s15 }
 0x68d   : > { %v2765_v9 = vpop.xlane.xlu1 %2764 }
 0x68e   : > { %7025 = vrcp.f32 %v2765_v9 }
 0x68f   : > { %3331 = vrot.lane.b32.xlu2 %v8113_v49, %s7516_s15 }
 0x690   : > { %3490 = vrot.lane.b32.xlu1 %v8194_v16, %s7517_s16 }
 0x691   : > { %v2744_v8 = vpop.xlane.xlu0 %2743 }
 0x692   : > { %7027 = vrcp.f32 %v2744_v8 }
 0x693   : > { %7029 = vpow2.f32 %v2732_v57  ;;  %v3176_v57 = vsel %vm1363_vm0, %v8822_v62, 0 }
 0x694   : > { %v7026_v25 = vpop.eup %7025 }
 0x695   : > { %v2809_v2 = vmul.f32 %v7026_v25, %v8870_v24 }
 0x697   : > { %v2825_v59 = vpack.c.bf16 %v2809_v2, %v2809_v2  ;;  %3306 = vrot.lane.b32.xlu2 %v8103_v19, %s7517_s16 }
 0x698   : > { %v7028_v4 = vpop.eup %7027  ;;  %3467 = vrot.lane.b32.xlu1 %v8176_v63, %s7517_s16 }
 0x699   : > { %v2802_v41 = vmul.f32 %v7028_v4, %v8875_v6  ;;  %v2747_v34 = vpop.xlane.xlu2 %2746  ;;  %6378 = vmatmul.msk.bf16.vlgmr.msra.gmra.mxu1 %vm1363_vm0, %v2825_v59  ;;  %v8979_v35 = vpop.eup %7029 }
 0x69a   : > { %7031 = vrcp.f32 %v2747_v34  ;;  %3208 = vmatpush.bf16.xpose.msra.mxu1 %v3199_v13  ;;  %v2778_v7 = vsel %vm1363_vm0, %v8979_v35, 0.0 }
 0x69b   : > { %v2818_v24 = vpack.c.bf16 %v2802_v41, %v2802_v41 }
 0x69d   : > { %6371 = vmatmul.msk.bf16.vlgmr.msrb.gmra.mxu2 %vm1363_vm0, %v2818_v24 }
 0x69e   : > { %3057 = vmatpush.bf16.msrb.mxu2 %v3048_v0 }
 0x69f   : > { %3283 = vrot.lane.b32.xlu2 %v8093_v26, %s7517_s16 }
 0x6a0   : > { %v7032_v10 = vpop.eup %7031 }
 0x6a1   : > { %v2803_v6 = vmul.f32 %v7032_v10, %v8879_v38  ;;  %v2703_v38 = vsub.f32 %v8848_v60, %v8902_v1  ;;  %v9021_v21 = vpop.permute.xlu2 %3168 }
 0x6a2   : > { %2779 = vadd.xlane.f32.xlu0 %v2778_v7 }
 0x6a3   : > { %v2819_v5 = vpack.c.bf16 %v2803_v6, %v2803_v6  ;;  %v2734_v31 = vmul.f32 1.442695, %v2703_v38 }
 0x6a4   : > { %v9013_v50 = vpop.permute.xlu0 %3308 }
 0x6a5   : > { %6372 = vmatmul.msk.bf16.vlgmr.msra.gmra.mxu3 %vm1363_vm0, %v2819_v5 }
 0x6a6   : > { %3078 = vmatpush.bf16.msra.mxu3 %v3069_v36 }
 0x6a7   : > { %3354 = vrot.lane.b32.xlu2 %v8123_v11, %s7516_s15 }
 0x6a9   : > { %v2759_v33 = vpop.xlane.xlu1 %2758 }
 0x6aa   : > { %7033 = vrcp.f32 %v2759_v33 }
 0x6ab   : > { %7035 = vpow2.f32 %v2734_v31 }
 0x6af   : > { %3421 = vrot.lane.b32.xlu2 %v8151_v14, %s7517_s16 }
 0x6b0   : > { %v7034_v42 = vpop.eup %7033 }
 0x6b1   : > { %v2807_v39 = vmul.f32 %v7034_v42, %v8886_v12  ;;  %v9003_v27 = vpop.eup %7035 }
 0x6b2   : > { %v2781_v1 = vsel %vm1363_vm0, %v9003_v27, 0.0 }
 0x6b3   : > { %v2823_v51 = vpack.c.bf16 %v2807_v39, %v2807_v39 }
 0x6b5   : > { %6376 = vmatmul.msk.bf16.vlgmr.msrb.gmra.mxu3 %vm1363_vm0, %v2823_v51 }
 0x6b6   : > { %3260 = vrot.lane.b32.xlu0 %v8083_v22, %s7517_s16  ;;  %3162 = vmatpush.bf16.msrb.mxu3 %v3153_v30 }
 0x6b7   : > { %3492 = vrot.lane.b32.xlu2 %v8194_v16, %s7516_s15 }
 0x6b9   : > { %v2768_v60 = vpop.xlane.xlu1 %2767 }
 0x6be   : > { %3423 = vrot.lane.b32.xlu0 %v8151_v14, %s7516_s15 }
 0x6bf   : > { %3469 = vrot.lane.b32.xlu2 %v8176_v63, %s7516_s15 }
 0x6c2   : > { %2782 = vadd.xlane.f32.xlu1 %v2781_v1 }
 0x6c6   : > { %3398 = vrot.lane.b32.xlu0 %v8141_v37, %s7517_s16 }
 0x6c7   : > { %3444 = vrot.lane.b32.xlu2 %v8162_v53, %s7517_s16 }
 0x6ce   : > { %3375 = vrot.lane.b32.xlu0 %v8131_v17, %s7517_s16 }
 0x6cf   : > { %3770 = vrot.lane.b32.xlu2 %v8065_v32, %s7518_s5  ;;  %v2762_v12 = vpop.xlane.xlu0 %2761 }
 0x6d0   : > { %7037 = vrcp.f32 %v2762_v12 }
 0x6d1   : > { %v3263_v18 = vpop.permute.xlu1 %3262 }
 0x6d2   : > { %v3268_v1 = vsel %vm1363_vm0, %v3263_v18, 0 }
 0x6d3   : > { %v9023_v44 = vpop.f32.mrf.mxu0 }
 0x6d6   : > { %v7038_v54 = vpop.eup %7037  ;;  %3446 = vrot.lane.b32.xlu0 %v8162_v53, %s7516_s15 }
 0x6d7   : > { %v2808_v9 = vmul.f32 %v7038_v54, %v8910_v52  ;;  %3812 = vrot.lane.b32.xlu2 %v8083_v22, %s7518_s5  ;;  %v2777_v47 = vpop.xlane.xlu0 %2776 }
 0x6d8   : > { %7039 = vrcp.f32 %v2777_v47 }
 0x6d9   : > { %v2824_v8 = vpack.c.bf16 %v2808_v9, %v2808_v9 }
 0x6da   : > { %v2756_v25 = vpop.xlane.xlu2 %2755  ;;  %v9034_v2 = vpop.f32.mrf.mxu1 }
 0x6db   : > { %7041 = vrcp.f32 %v2756_v25  ;;  %3728 = vrot.lane.b32.xlu1 %v8049_v29, %s7518_s5  ;;  %v2851_v59 = vpop.f32.mrf.mxu0  ;;  %6377 = vmatmul.msk.bf16.vlgmr.msrb.gmra.mxu0 %vm1363_vm0, %v2824_v8  ;;  %v9037_v52 = vpop.permute.xlu1 %3329 }
 0x6dc   : > { %3185 = vmatpush.bf16.xpose.msrb.mxu0 %v3176_v57 }
 0x6de   : > { %v7040_v13 = vpop.eup %7039  ;;  %3513 = vrot.lane.b32.xlu0 %v8226_v28, %s7517_s16  ;;  %s6059_s16 = scalar_lea.sflag [#allocation4], %s7752_s29 }
 0x6df   : > { %v2813_v62 = vmul.f32 %v7040_v13, %v8919_v15  ;;  %3917 = vrot.lane.b32.xlu2 %v8131_v17, %s7518_s5  ;;  %v3132_v15 = vsel %vm1940_vm1, %v8701_v40, 0 }
 0x6e1   : > { %v7042_v41 = vpop.eup %7041  ;;  %v2829_v34 = vpack.c.bf16 %v2813_v62, %v2813_v62 }
 0x6e2   : > { %v2806_v24 = vmul.f32 %v7042_v41, %v8924_v55  ;;  %v2774_v0 = vpop.xlane.xlu2 %2773  ;;  %v2872_v10 = vpop.f32.mrf.mxu1 }
 0x6e3   : > { %7043 = vrcp.f32 %v2774_v0  ;;  %3854 = vrot.lane.b32.xlu1 %v8103_v19, %s7518_s5  ;;  %v9049_v6 = vpop.f32.mrf.mxu0  ;;  %6382 = vmatmul.msk.bf16.vlgmr.msrb.gmra.mxu1 %vm1363_vm0, %v2829_v34  ;;  %v9054_v5 = vpop.permute.xlu1 %3400 }
 0x6e4   : > { %v2822_v7 = vpack.c.bf16 %v2806_v24, %v2806_v24  ;;  %7045 = vrcp.f32 %v2768_v60 }
 0x6e6   : > { %6375 = vmatmul.msk.bf16.vlgmr.msra.gmra.mxu2 %vm1363_vm0, %v2822_v7  ;;  %3749 = vrot.lane.b32.xlu0 %v8057_v23, %s7518_s5 }
 0x6e7   : > { %3141 = vmatpush.bf16.msra.mxu2 %v3132_v15  ;;  %3980 = vrot.lane.b32.xlu2 %v8162_v53, %s7518_s5 }
 0x6e9   : > { %v7044_v55 = vpop.eup %7043 }
 0x6ea   : > { %v2812_v36 = vmul.f32 %v7044_v55, %v8938_v48  ;;  %v2771_v33 = vpop.xlane.xlu2 %2770  ;;  %v9064_v40 = vpop.f32.mrf.mxu1  ;;  %v3314_v55 = vsel %vm1363_vm0, %v9013_v50, 0 }
 0x6eb   : > { %3896 = vrot.lane.b32.xlu1 %v8123_v11, %s7518_s5  ;;  %7047 = vrcp.f32 %v2771_v33  ;;  %v3286_v38 = vpop.permute.xlu0 %3285  ;;  %v2935_v51 = vpop.f32.mrf.mxu0 }
 0x6ec   : > { %v2828_v42 = vpack.c.bf16 %v2812_v36, %v2812_v36  ;;  %v3291_v31 = vsel %vm1363_vm0, %v3286_v38, 0  ;;  %v7046_v30 = vpop.eup %7045  ;;  %v3378_v60 = vpop.permute.xlu1 %3377 }
 0x6ed   : > { %3300 = vmatpush.bf16.xpose.msrb.mxu1 %v3291_v31  ;;  %v2810_v48 = vmul.f32 %v7046_v30, %v8897_v20  ;;  %v3383_v47 = vsel %vm1363_vm0, %v3378_v60, 0  ;;  %v3245_v20 = vsel %vm1363_vm0, %v8706_v3, 0 }
 0x6ee   : > { %6381 = vmatmul.msk.bf16.vlgmr.msra.gmra.mxu0 %vm1363_vm0, %v2828_v42  ;;  %3791 = vrot.lane.b32.xlu0 %v8073_v43, %s7518_s5 }
 0x6ef   : > { %3277 = vmatpush.bf16.xpose.msra.mxu0 %v3268_v1  ;;  %4043 = vrot.lane.b32.xlu2 %v8226_v28, %s7518_s5  ;;  %v2826_v8 = vpack.c.bf16 %v2810_v48, %v2810_v48  ;;  %v3406_v1 = vsel %vm1363_vm0, %v9054_v5, 0 }
 0x6f1   : > { %v7048_v12 = vpop.eup %7047 }
 0x6f2   : > { %v2811_v54 = vmul.f32 %v7048_v12, %v8947_v45  ;;  %v9077_v9 = vpop.permute.xlu2 %3331  ;;  %v2956_v18 = vpop.f32.mrf.mxu1  ;;  %v3222_v45 = vsel %vm1363_vm0, %v8810_v46, 0 }
 0x6f3   : > { %4022 = vrot.lane.b32.xlu1 %v8194_v16, %s7518_s5  ;;  %6386 = vmatmul.msk.bf16.vlgmr.msra.gmra.mxu1 %vm1363_vm0, %v8957_v56  ;;  %v3337_v5 = vsel %vm1363_vm0, %v9077_v9, 0 }
 0x6f4   : > { %v2827_v25 = vpack.c.bf16 %v2811_v54, %v2811_v54  ;;  %v3353_v59 = vpop.permute.xlu1 %3352 }
 0x6f5   : > { %3392 = vmatpush.bf16.xpose.msra.mxu1 %v3383_v47 }
 0x6f6   : > { %6379 = vmatmul.msk.bf16.vlgmr.msrb.gmra.mxu2 %vm1363_vm0, %v2826_v8  ;;  %6380 = vmatmul.msk.bf16.vlgmr.msra.gmra.mxu3 %vm1363_vm0, %v2827_v25 }
 0x6f7   : > { %3231 = vmatpush.bf16.xpose.msrb.mxu2 %v3222_v45  ;;  %3254 = vmatpush.bf16.xpose.msra.mxu3 %v3245_v20 }
 0x6f8   : > { %3833 = vrot.lane.b32.xlu0 %v8093_v26, %s7518_s5 }
 0x6fa   : > { %v3307_v57 = vpop.permute.xlu2 %3306 }
 0x6fc   : > { %v9108_v41 = vpop.permute.xlu1 %3515 }
 0x6fe   : > { %6385 = vmatmul.msk.bf16.vlgmr.msrb.gmra.mxu0 %vm1363_vm0, %v9021_v21 }
 0x700   : > { %3875 = vrot.lane.b32.xlu0 %v8113_v49, %s7518_s5 }
 0x702   : > { %v3284_v3 = vpop.permute.xlu2 %3283 }
 0x703   : > { %6390 = vmatmul.msk.bf16.vlgmr.msrb.gmra.mxu1 %vm1363_vm0, %v3284_v3 }
 0x704   : > { %v9118_v33 = vpop.permute.xlu1 %3490 }
 0x708   : > { %3938 = vrot.lane.b32.xlu0 %v8141_v37, %s7518_s5 }
 0x70a   : > { %v3355_v46 = vpop.permute.xlu2 %3354 }
 0x70b   : > { %v3360_v56 = vsel %vm1363_vm0, %v3355_v46, 0 }
 0x70c   : > { %3369 = vmatpush.bf16.xpose.msrb.mxu0 %v3360_v56  ;;  %v3468_v30 = vpop.permute.xlu1 %3467 }
 0x710   : > { %3959 = vrot.lane.b32.xlu0 %v8151_v14, %s7518_s5 }
 0x712   : > { %v9102_v13 = vpop.permute.xlu2 %3421 }
 0x715   : > { %v2780_v21 = vpop.xlane.xlu0 %2779 }
 0x716   : > { %7049 = vrcp.f32 %v2780_v21  ;;  %v9104_v62 = vpop.f32.mrf.mxu1 }
 0x718   : > { %4001 = vrot.lane.b32.xlu0 %v8176_v63, %s7518_s5 }
 0x71a   : > { %v3493_v34 = vpop.permute.xlu2 %3492 }
 0x71b   : > { %v3498_v45 = vsel %vm1363_vm0, %v3493_v34, 0 }
 0x71c   : > { %v7050_v24 = vpop.eup %7049 }
 0x71d   : > { %v2814_v0 = vmul.f32 %v7050_v24, %v8979_v35 }
 0x71e   : > { %v3040_v10 = vpop.f32.mrf.mxu1 }
 0x71f   : > { %v2830_v7 = vpack.c.bf16 %v2814_v0, %v2814_v0 }
 0x720   : > { %4066 = vrot.lane.b32.xlu0 %v8049_v29, %s7519_s2  ;;  %v9113_v15 = vpop.f32.mrf.mxu2 }
 0x721   : > { %6383 = vmatmul.msk.bf16.vlgmr.msra.gmra.mxu2 %vm1363_vm0, %v2830_v7 }
 0x722   : > { %v3470_v36 = vpop.permute.xlu2 %3469  ;;  %3323 = vmatpush.bf16.xpose.msra.mxu2 %v3314_v55 }
 0x723   : > { %v3475_v38 = vsel %vm1363_vm0, %v3470_v36, 0 }
 0x724   : > { %3484 = vmatpush.bf16.xpose.msrb.mxu1 %v3475_v38 }
 0x728   : > { %v9121_v35 = vpop.f32.mrf.mxu3  ;;  %v2893_v42 = vpop.f32.mrf.mxu2 }
 0x729   : > { %v3261_v51 = vpop.permute.xlu0 %3260  ;;  %v3521_v42 = vsel %vm1363_vm0, %v9108_v41, 0 }
 0x72a   : > { %6389 = vmatmul.msk.bf16.vlgmr.msra.gmra.mxu0 %vm1363_vm0, %v3261_v51  ;;  %v3445_v18 = vpop.permute.xlu2 %3444 }
 0x730   : > { %v2914_v50 = vpop.f32.mrf.mxu3 }
 0x731   : > { %v3424_v48 = vpop.permute.xlu0 %3423  ;;  %6387 = vmatmul.msk.bf16.vlgmr.msrb.gmra.mxu2 %vm1363_vm0, %v8828_v61 }
 0x732   : > { %3415 = vmatpush.bf16.xpose.msrb.mxu2 %v3406_v1  ;;  %v3771_v3 = vpop.permute.xlu2 %3770  ;;  %v3429_v21 = vsel %vm1363_vm0, %v3424_v48, 0 }
 0x733   : > { %v3776_v34 = vsel %vm1940_vm1, %v3771_v3, 0 }
 0x735   : > { %v2783_v60 = vpop.xlane.xlu1 %2782 }
 0x736   : > { %7051 = vrcp.f32 %v2783_v60 }
 0x738   : > { %v9130_v12 = vpop.f32.mrf.mxu3 }
 0x739   : > { %v3399_v54 = vpop.permute.xlu0 %3398 }
 0x73a   : > { %6393 = vmatmul.msk.bf16.vlgmr.msrb.gmra.mxu0 %vm1363_vm0, %v3353_v59  ;;  %v3813_v59 = vpop.permute.xlu2 %3812 }
 0x73b   : > { %v3818_v24 = vsel %vm1940_vm1, %v3813_v59, 0 }
 0x73c   : > { %v7052_v47 = vpop.eup %7051 }
 0x73d   : > { %v2815_v8 = vmul.f32 %v7052_v47, %v9003_v27 }
 0x73f   : > { %v2831_v25 = vpack.c.bf16 %v2815_v8, %v2815_v8 }
 0x740   : > { %v2998_v20 = vpop.f32.mrf.mxu3 }
 0x741   : > { %6384 = vmatmul.msk.bf16.vlgmr.msrb.gmra.mxu3 %vm1363_vm0, %v2831_v25  ;;  %v3376_v61 = vpop.permute.xlu0 %3375  ;;  %6391 = vmatmul.msk.bf16.vlgmr.msra.gmra.mxu2 %vm1363_vm0, %v3307_v57 }
 0x742   : > { %3346 = vmatpush.bf16.xpose.msrb.mxu3 %v3337_v5  ;;  %6394 = vmatmul.msk.bf16.vlgmr.msra.gmra.mxu1 %vm1363_vm0, %v3376_v61 }
 0x743   : > { %3507 = vmatpush.bf16.xpose.msra.mxu2 %v3498_v45 }
 0x749   : > { %v3447_v46 = vpop.permute.xlu0 %3446 }
 0x74a   : > { %v3452_v27 = vsel %vm1363_vm0, %v3447_v46, 0 }
 0x74b   : > { %3461 = vmatpush.bf16.xpose.msra.mxu0 %v3452_v27 }
 0x74d   : > { %v3729_v56 = vpop.permute.xlu1 %3728 }
 0x74e   : > { %v3734_v9 = vsel %vm1940_vm1, %v3729_v56, 0 }
 0x751   : > { %6388 = vmatmul.msk.bf16.vlgmr.msra.gmra.mxu3 %vm1363_vm0, %v8830_v58  ;;  %v3514_v57 = vpop.permute.xlu0 %3513  ;;  %6395 = vmatmul.msk.bf16.vlgmr.msrb.gmra.mxu2 %vm1363_vm0, %v3399_v54 }
 0x752   : > { %3438 = vmatpush.bf16.xpose.msra.mxu3 %v3429_v21  ;;  %6397 = vmatmul.msk.bf16.vlgmr.msra.gmra.mxu0 %vm1363_vm0, %v3445_v18 }
 0x753   : > { %3743 = vmatpush.bf16.msrb.mxu0 %v3734_v9  ;;  %6398 = vmatmul.msk.bf16.vlgmr.msrb.gmra.mxu1 %vm1363_vm0, %v3468_v30 }
 0x754   : > { %3785 = vmatpush.bf16.msrb.mxu2 %v3776_v34 }
 0x755   : > { %v3855_v55 = vpop.permute.xlu1 %3854 }
 0x756   : > { %v3860_v51 = vsel %vm1940_vm1, %v3855_v55, 0 }
 0x757   : > { %3827 = vmatpush.bf16.msra.mxu0 %v3818_v24 }
 0x758   : > { %v9150_v0 = vpop.f32.mrf.mxu0 }
 0x759   : > { %10420 = vst [vmem:[#allocation53_spill] sm:$0xff] %v9150_v0  ;;  %v3750_v10 = vpop.permute.xlu0 %3749 }
 0x75a   : > { %v3755_v7 = vsel %vm1940_vm1, %v3750_v10, 0 }
 0x75b   : > { %3764 = vmatpush.bf16.msra.mxu1 %v3755_v7 }
 0x760   : > { %v3019_v36 = vpop.f32.mrf.mxu0  ;;  %v9155_v38 = vpop.f32.mrf.mxu1 }
 0x761   : > { %10421 = vst [vmem:[#allocation54_spill] sm:$0xff] %v9155_v38  ;;  %6392 = vmatmul.msk.bf16.vlgmr.msrb.gmra.mxu3 %vm1363_vm0, %v9037_v52  ;;  %v3792_v30 = vpop.permute.xlu0 %3791  ;;  %6399 = vmatmul.msk.bf16.vlgmr.msra.gmra.mxu2 %vm1363_vm0, %v9118_v33 }
 0x762   : > { %3530 = vmatpush.bf16.xpose.msrb.mxu3 %v3521_v42  ;;  %3869 = vmatpush.bf16.msra.mxu2 %v3860_v51  ;;  %v3797_v33 = vsel %vm1940_vm1, %v3792_v30, 0 }
 0x768   : > { %v3124_v50 = vpop.f32.mrf.mxu1 }
 0x769   : > { %v9164_v1 = vpop.f32.mrf.mxu2 }
 0x76a   : > { %v3834_v60 = vpop.permute.xlu0 %3833 }
 0x76b   : > { %v3839_v41 = vsel %vm1940_vm1, %v3834_v60, 0  ;;  %v9169_v54 = vpop.f32.mrf.mxu0 }
 0x76c   : > { %10422 = vst [vmem:[#allocation55_spill] sm:$0xff] %v9169_v54  ;;  %3848 = vmatpush.bf16.msrb.mxu1 %v3839_v41 }
 0x770   : > { %v9173_v47 = vpop.f32.mrf.mxu1 }
 0x771   : > { %6396 = vmatmul.msk.bf16.vlgmr.msra.gmra.mxu3 %vm1363_vm0, %v9102_v13  ;;  %v2977_v18 = vpop.f32.mrf.mxu2  ;;  %v3539_v8 = vsel %vm1363_vm0, %v9173_v47, -inf }
 0x772   : > { %3806 = vmatpush.bf16.msra.mxu3 %v3797_v33  ;;  %3540 = vmax.xlane.f32.xlu2 %v3539_v8  ;;  %v3876_v46 = vpop.permute.xlu0 %3875 }
 0x773   : > { %v3103_v25 = vpop.f32.mrf.mxu0  ;;  %v3881_v56 = vsel %vm1940_vm1, %v3876_v46, 0 }
 0x778   : > { %v3212_v5 = vpop.f32.mrf.mxu1 }
 0x779   : > { %v9180_v20 = vpop.f32.mrf.mxu2  ;;  %v9182_v61 = vpop.f32.mrf.mxu3 }
 0x77a   : > { %10423 = vst [vmem:[#allocation56_spill] sm:$0xff] %v9180_v20 }
 0x77b   : > { %10424 = vst [vmem:[#allocation57_spill] sm:$0xff] %v9182_v61  ;;  %v9186_v3 = vpop.f32.mrf.mxu0 }
 0x77c   : > { %v3536_v13 = vsel %vm1363_vm0, %v9186_v3, -inf }
 0x77d   : > { %3537 = vmax.xlane.f32.xlu0 %v3536_v13  ;;  %v9218_v13 = vpop.permute.xlu0 %3938 }
 0x780   : > { %v9190_v27 = vpop.f32.mrf.mxu1 }
 0x781   : > { %6400 = vmatmul.msk.bf16.vlgmr.msrb.gmra.mxu3 %vm1363_vm0, %v3514_v57  ;;  %v3061_v9 = vpop.f32.mrf.mxu2  ;;  %v3082_v59 = vpop.f32.mrf.mxu3  ;;  %v3551_v21 = vsel %vm1363_vm0, %v9190_v27, -inf }
 0x782   : > { %3890 = vmatpush.bf16.msrb.mxu3 %v3881_v56  ;;  %3552 = vmax.xlane.f32.xlu1 %v3551_v21 }
 0x783   : > { %v3189_v34 = vpop.f32.mrf.mxu0 }
 0x785   : > { %v9224_v21 = vpop.permute.xlu0 %3959 }
 0x788   : > { %v3304_v24 = vpop.f32.mrf.mxu1 }
 0x7a4   : > { %v9196_v10 = vpop.f32.mrf.mxu2 }
 0x7a5   : > { %10425 = vst [vmem:[#allocation58_spill] sm:$0xff] %v9196_v10 }
 0x7a7   : > { %v9198_v7 = vpop.f32.mrf.mxu0 }
 0x7a8   : > { %v3548_v55 = vsel %vm1363_vm0, %v9198_v7, -inf }
 0x7a9   : > { %3549 = vmax.xlane.f32.xlu2 %v3548_v55  ;;  %v9230_v55 = vpop.permute.xlu2 %3917 }
 0x7ac   : > { %v3145_v36 = vpop.f32.mrf.mxu2 }
 0x7af   : > { %v3281_v42 = vpop.f32.mrf.mxu0 }
 0x7b4   : > { %v9202_v57 = vpop.f32.mrf.mxu2 }
 0x7b5   : > { %v3542_v51 = vsel %vm1363_vm0, %v9202_v57, -inf }
 0x7b6   : > { %3543 = vmax.xlane.f32.xlu1 %v3542_v51 }
 0x7b7   : > { %v9206_v30 = vpop.f32.mrf.mxu0 }
 0x7b8   : > { %v3560_v60 = vsel %vm1363_vm0, %v9206_v30, -inf }
 0x7bc   : > { %v3235_v50 = vpop.f32.mrf.mxu2 }
 0x7be   : > { %3561 = vmax.xlane.f32.xlu1 %v3560_v60 }
 0x7bf   : > { %v9210_v41 = vpop.f32.mrf.mxu1  ;;  %v3373_v33 = vpop.f32.mrf.mxu0 }
 0x7c0   : > { %v3563_v33 = vsel %vm1363_vm0, %v9210_v41, -inf }
 0x7c4   : > { %v9212_v18 = vpop.f32.mrf.mxu3  ;;  %v9214_v8 = vpop.f32.mrf.mxu2 }
 0x7c5   : > { %10426 = vst [vmem:[#allocation59_spill] sm:$0xff] %v9212_v18 }
 0x7c7   : > { %v3396_v5 = vpop.f32.mrf.mxu1 }
 0x7c8   : > { %v9236_v5 = vpop.permute.xlu0 %4001 }
 0x7cc   : > { %v3166_v46 = vpop.f32.mrf.mxu3  ;;  %v3327_v56 = vpop.f32.mrf.mxu2 }
 0x7cd   : > { %v9238_v46 = vpop.permute.xlu2 %3980  ;;  %v9240_v56 = vpop.permute.xlu1 %3896 }
 0x7cf   : > { %v9220_v9 = vpop.f32.mrf.mxu0 }
 0x7d0   : > { %v9222_v59 = vpop.f32.mrf.mxu1  ;;  %v3572_v58 = vsel %vm1363_vm0, %v9220_v9, -inf }
 0x7d1   : > { %v3575_v48 = vsel %vm1363_vm0, %v9222_v59, -inf }
 0x7d4   : > { %v9226_v34 = vpop.f32.mrf.mxu3  ;;  %v9228_v24 = vpop.f32.mrf.mxu2 }
 0x7d5   : > { %v3545_v36 = vsel %vm1363_vm0, %v9226_v34, -inf  ;;  %v9254_v45 = vpop.permute.xlu1 %4022 }
 0x7d6   : > { %3546 = vmax.xlane.f32.xlu0 %v3545_v36  ;;  %v3554_v36 = vsel %vm1363_vm0, %v9214_v8, -inf }
 0x7d7   : > { %v3465_v42 = vpop.f32.mrf.mxu0 }
 0x7d8   : > { %v3488_v51 = vpop.f32.mrf.mxu1 }
 0x7d9   : > { %v9250_v51 = vpop.permute.xlu0 %4066 }
 0x7dc   : > { %v3258_v50 = vpop.f32.mrf.mxu3  ;;  %v3419_v60 = vpop.f32.mrf.mxu2 }
 0x7dd   : > { %v9252_v50 = vpop.permute.xlu2 %4043 }
 0x7de   : > { %3564 = vmax.xlane.f32.xlu0 %v3563_v33 }
 0x7e4   : > { %v9242_v25 = vpop.f32.mrf.mxu3  ;;  %v9244_v52 = vpop.f32.mrf.mxu2 }
 0x7e5   : > { %v3557_v42 = vsel %vm1363_vm0, %v9242_v25, -inf  ;;  %v3541_v31 = vpop.xlane.xlu2 %3540 }
 0x7e6   : > { %3555 = vmax.xlane.f32.xlu0 %v3554_v36  ;;  %3558 = vmax.xlane.f32.xlu2 %v3557_v42  ;;  %v3585_v4 = vsub.f32 %v9173_v47, %v3541_v31 }
 0x7ec   : > { %v3350_v60 = vpop.f32.mrf.mxu3  ;;  %v3511_v33 = vpop.f32.mrf.mxu2 }
 0x7ed   : > { %v3566_v60 = vsel %vm1363_vm0, %v9228_v24, -inf }
 0x7ee   : > { %3573 = vmax.xlane.f32.xlu0 %v3572_v58  ;;  %3576 = vmax.xlane.f32.xlu2 %v3575_v48  ;;  %v3602_v48 = vmul.f32 1.442695, %v3585_v4 }
 0x7f0   : > { %v3538_v39 = vpop.xlane.xlu0 %3537 }
 0x7f1   : > { %v3584_v36 = vsub.f32 %v9186_v3, %v3538_v39  ;;  %v3578_v3 = vsel %vm1363_vm0, %v9244_v52, -inf }
 0x7f3   : > { %v3600_v42 = vmul.f32 1.442695, %v3584_v36 }
 0x7f4   : > { %v9262_v10 = vpop.f32.mrf.mxu3 }
 0x7f5   : > { %7053 = vpow2.f32 %v3600_v42  ;;  %v3569_v33 = vsel %vm1363_vm0, %v9262_v10, -inf  ;;  %v3553_v18 = vpop.xlane.xlu1 %3552 }
 0x7f6   : > { %3567 = vmax.xlane.f32.xlu2 %v3566_v60  ;;  %3570 = vmax.xlane.f32.xlu1 %v3569_v33  ;;  %v3589_v58 = vsub.f32 %v9190_v27, %v3553_v18  ;;  %7055 = vpow2.f32 %v3602_v48 }
 0x7f8   : > { %v3610_v54 = vmul.f32 1.442695, %v3589_v58 }
 0x7fa   : > { %7057 = vpow2.f32 %v3610_v54 }
 0x7fb   : > { %v9269_v39 = vpop.eup %7053 }
 0x7fc   : > { %v3442_v31 = vpop.f32.mrf.mxu3  ;;  %v3632_v47 = vsel %vm1363_vm0, %v9269_v39, 0.0  ;;  %v9275_v36 = vpop.eup %7055 }
 0x7fd   : > { %v3635_v4 = vsel %vm1363_vm0, %v9275_v36, 0.0 }
 0x7fe   : > { %3633 = vadd.xlane.f32.xlu2 %v3632_v47  ;;  %3579 = vmax.xlane.f32.xlu1 %v3578_v3 }
 0x800   : > { %v9277_v42 = vpop.eup %7057 }
 0x801   : > { %v3647_v54 = vsel %vm1363_vm0, %v9277_v42, 0.0 }
 0x804   : > { %v9279_v27 = vpop.f32.mrf.mxu3 }
 0x805   : > { %v3581_v18 = vsel %vm1363_vm0, %v9279_v27, -inf }
 0x806   : > { %3636 = vadd.xlane.f32.xlu1 %v3635_v4  ;;  %3582 = vmax.xlane.f32.xlu0 %v3581_v18 }
 0x807   : > { %3648 = vadd.xlane.f32.xlu2 %v3647_v54 }
 0x80c   : > { %v3534_v60 = vpop.f32.mrf.mxu3 }
 0x81c   : > { %v3550_v33 = vpop.xlane.xlu2 %3549 }
 0x81d   : > { %v3588_v58 = vsub.f32 %v9198_v7, %v3550_v33 }
 0x81f   : > { %v3608_v48 = vmul.f32 1.442695, %v3588_v58 }
 0x821   : > { %7059 = vpow2.f32 %v3608_v48 }
 0x827   : > { %v9288_v31 = vpop.eup %7059 }
 0x828   : > { %v3644_v47 = vsel %vm1363_vm0, %v9288_v31, 0.0 }
 0x829   : > { %3645 = vadd.xlane.f32.xlu1 %v3644_v47  ;;  %v3544_v3 = vpop.xlane.xlu1 %3543 }
 0x82a   : > { %v3586_v4 = vsub.f32 %v9202_v57, %v3544_v3 }
 0x82c   : > { %v3604_v18 = vmul.f32 1.442695, %v3586_v4 }
 0x82e   : > { %7061 = vpow2.f32 %v3604_v18 }
 0x831   : > { %v3562_v38 = vpop.xlane.xlu1 %3561 }
 0x832   : > { %v3592_v54 = vsub.f32 %v9206_v30, %v3562_v38 }
 0x834   : > { %v9294_v60 = vpop.eup %7061  ;;  %v3616_v20 = vmul.f32 1.442695, %v3592_v54 }
 0x835   : > { %v3638_v7 = vsel %vm1363_vm0, %v9294_v60, 0.0 }
 0x836   : > { %7063 = vpow2.f32 %v3616_v20  ;;  %3639 = vadd.xlane.f32.xlu0 %v3638_v7 }
 0x83c   : > { %v9298_v33 = vpop.eup %7063 }
 0x83d   : > { %v3656_v58 = vsel %vm1363_vm0, %v9298_v33, 0.0 }
 0x83e   : > { %3657 = vadd.xlane.f32.xlu2 %v3656_v58 }
 0x842   : > { %4112 = vrot.lane.b32.xlu1 %v8065_v32, %s7519_s2 }
 0x849   : > { %v3547_v57 = vpop.xlane.xlu0 %3546 }
 0x84a   : > { %v3587_v38 = vsub.f32 %v9226_v34, %v3547_v57 }
 0x84c   : > { %v3606_v30 = vmul.f32 1.442695, %v3587_v38 }
 0x84e   : > { %7065 = vpow2.f32 %v3606_v30 }
 0x851   : > { %v3565_v48 = vpop.xlane.xlu0 %3564 }
 0x852   : > { %v3593_v18 = vsub.f32 %v9210_v41, %v3565_v48 }
 0x854   : > { %v9305_v47 = vpop.eup %7065  ;;  %v3618_v58 = vmul.f32 1.442695, %v3593_v18 }
 0x855   : > { %v3641_v20 = vsel %vm1363_vm0, %v9305_v47, 0.0 }
 0x856   : > { %3642 = vadd.xlane.f32.xlu2 %v3641_v20 }
 0x859   : > { %v3556_v3 = vpop.xlane.xlu0 %3555  ;;  %v3559_v4 = vpop.xlane.xlu2 %3558 }
 0x85a   : > { %v3590_v54 = vsub.f32 %v9214_v8, %v3556_v3  ;;  %v3591_v41 = vsub.f32 %v9242_v25, %v3559_v4 }
 0x85c   : > { %v3612_v7 = vmul.f32 1.442695, %v3590_v54  ;;  %v3614_v18 = vmul.f32 1.442695, %v3591_v41  ;;  %v3902_v41 = vsel %vm1940_vm1, %v9240_v56, 0 }
 0x85e   : > { %7067 = vpow2.f32 %v3612_v7 }
 0x85f   : > { %7069 = vpow2.f32 %v3618_v58 }
 0x861   : > { %v3574_v61 = vpop.xlane.xlu0 %3573  ;;  %v3577_v34 = vpop.xlane.xlu2 %3576 }
 0x862   : > { %v3596_v57 = vsub.f32 %v9220_v9, %v3574_v61 }
 0x864   : > { %v9312_v38 = vpop.eup %7067  ;;  %v3624_v20 = vmul.f32 1.442695, %v3596_v57 }
 0x865   : > { %v3650_v30 = vsel %vm1363_vm0, %v9312_v38, 0.0  ;;  %v9316_v0 = vpop.eup %7069 }
 0x866   : > { %3651 = vadd.xlane.f32.xlu0 %v3650_v30  ;;  %7071 = vpow2.f32 %v3624_v20  ;;  %v3659_v3 = vsel %vm1363_vm0, %v9316_v0, 0.0 }
 0x867   : > { %7073 = vpow2.f32 %v3614_v18 }
 0x869   : > { %v3568_v8 = vpop.xlane.xlu2 %3567  ;;  %v3571_v48 = vpop.xlane.xlu1 %3570 }
 0x86a   : > { %v3595_v56 = vsub.f32 %v9262_v10, %v3571_v48 }
 0x86c   : > { %3660 = vadd.xlane.f32.xlu1 %v3659_v3  ;;  %v9323_v61 = vpop.eup %7071 }
 0x86d   : > { %v3668_v25 = vsel %vm1363_vm0, %v9323_v61, 0.0  ;;  %v9327_v4 = vpop.eup %7073 }
 0x86e   : > { %4089 = vrot.lane.b32.xlu2 %v8057_v23, %s7519_s2  ;;  %v3653_v20 = vsel %vm1363_vm0, %v9327_v4, 0.0 }
 0x871   : > { %v3634_v9 = vpop.xlane.xlu2 %3633  ;;  %v3580_v54 = vpop.xlane.xlu1 %3579 }
 0x872   : > { %7075 = vrcp.f32 %v3634_v9 }
 0x874   : > { %3669 = vadd.xlane.f32.xlu1 %v3668_v25  ;;  %v3923_v25 = vsel %vm1940_vm1, %v9230_v55, 0 }
 0x878   : > { %v7076_v7 = vpop.eup %7075 }
 0x879   : > { %v3696_v58 = vmul.f32 %v7076_v7, %v9269_v39  ;;  %v3637_v57 = vpop.xlane.xlu1 %3636  ;;  %v3597_v7 = vsub.f32 %v9222_v59, %v3577_v34  ;;  %v4007_v59 = vsel %vm1940_vm1, %v9236_v5, 0 }
 0x87a   : > { %7077 = vrcp.f32 %v3637_v57  ;;  %4135 = vrot.lane.b32.xlu0 %v8073_v43, %s7519_s2  ;;  %v3649_v39 = vpop.xlane.xlu2 %3648 }
 0x87b   : > { %v3712_v30 = vpack.c.bf16 %v3696_v58, %v3696_v58  ;;  %7079 = vrcp.f32 %v3649_v39  ;;  %v3626_v58 = vmul.f32 1.442695, %v3597_v7  ;;  %v3986_v7 = vsel %vm1940_vm1, %v9238_v46, 0 }
 0x87c   : > { %3654 = vadd.xlane.f32.xlu1 %v3653_v20  ;;  %v3622_v20 = vmul.f32 1.442695, %v3595_v56 }
 0x87d   : > { %6401 = vmatmul.msk.bf16.vlgmr.msrb.gmra.mxu0 %vm1363_vm0, %v3712_v30  ;;  %7081 = vpow2.f32 %v3626_v58 }
 0x87e   : > { %3911 = vmatpush.bf16.msrb.mxu0 %v3902_v41  ;;  %7083 = vpow2.f32 %v3622_v20 }
 0x880   : > { %v7078_v3 = vpop.eup %7077 }
 0x881   : > { %v3697_v18 = vmul.f32 %v7078_v3, %v9275_v36  ;;  %v7080_v57 = vpop.eup %7079  ;;  %v3594_v36 = vsub.f32 %v9228_v24, %v3568_v8  ;;  %v3598_v24 = vsub.f32 %v9244_v52, %v3580_v54 }
 0x882   : > { %v3701_v30 = vmul.f32 %v7080_v57, %v9277_v42 }
 0x883   : > { %v3713_v9 = vpack.c.bf16 %v3697_v18, %v3697_v18  ;;  %v9345_v41 = vpop.eup %7081  ;;  %v3620_v55 = vmul.f32 1.442695, %v3594_v36  ;;  %v3628_v5 = vmul.f32 1.442695, %v3598_v24  ;;  %v3583_v18 = vpop.xlane.xlu0 %3582  ;;  %v3944_v36 = vsel %vm1940_vm1, %v9218_v13, 0 }
 0x884   : > { %v3717_v3 = vpack.c.bf16 %v3701_v30, %v3701_v30  ;;  %v3671_v10 = vsel %vm1363_vm0, %v9345_v41, 0.0  ;;  %v9355_v42 = vpop.eup %7083  ;;  %v3599_v46 = vsub.f32 %v9279_v27, %v3583_v18 }
 0x885   : > { %6402 = vmatmul.msk.bf16.vlgmr.msra.gmra.mxu1 %vm1363_vm0, %v3713_v9  ;;  %7085 = vpow2.f32 %v3620_v55  ;;  %v3665_v8 = vsel %vm1363_vm0, %v9355_v42, 0.0 }
 0x886   : > { %3932 = vmatpush.bf16.msra.mxu1 %v3923_v25 }
 0x88b   : > { %v9361_v48 = vpop.eup %7085 }
 0x88c   : > { %v3662_v52 = vsel %vm1363_vm0, %v9361_v48, 0.0 }
 0x895   : > { %6406 = vmatmul.msk.bf16.vlgmr.msrb.gmra.mxu1 %vm1363_vm0, %v3717_v3  ;;  %4087 = vrot.lane.b32.xlu1 %v8057_v23, %s7520_s7 }
 0x896   : > { %4016 = vmatpush.bf16.msrb.mxu1 %v4007_v59  ;;  %v3630_v59 = vmul.f32 1.442695, %v3599_v46 }
 0x897   : > { %3672 = vadd.xlane.f32.xlu2 %v3671_v10 }
 0x89c   : > { %v3646_v34 = vpop.xlane.xlu1 %3645 }
 0x89d   : > { %7087 = vrcp.f32 %v3646_v34  ;;  %4158 = vrot.lane.b32.xlu1 %v8083_v22, %s7519_s2 }
 0x89e   : > { %7089 = vpow2.f32 %v3628_v5  ;;  %v3965_v5 = vsel %vm1940_vm1, %v9224_v21, 0 }
 0x89f   : > { %3666 = vadd.xlane.f32.xlu2 %v3665_v8 }
 0x8a3   : > { %v7088_v39 = vpop.eup %7087 }
 0x8a4   : > { %v3700_v54 = vmul.f32 %v7088_v39, %v9288_v31  ;;  %3663 = vadd.xlane.f32.xlu0 %v3662_v52  ;;  %v9366_v25 = vpop.eup %7089 }
 0x8a5   : > { %v3674_v57 = vsel %vm1363_vm0, %v9366_v25, 0.0 }
 0x8a6   : > { %v3716_v9 = vpack.c.bf16 %v3700_v54, %v3700_v54  ;;  %v4028_v54 = vsel %vm1940_vm1, %v9254_v45, 0 }
 0x8a8   : > { %6405 = vmatmul.msk.bf16.vlgmr.msra.gmra.mxu0 %vm1363_vm0, %v3716_v9 }
 0x8a9   : > { %3995 = vmatpush.bf16.msra.mxu0 %v3986_v7  ;;  %v3640_v58 = vpop.xlane.xlu0 %3639 }
 0x8aa   : > { %7091 = vrcp.f32 %v3640_v58 }
 0x8ac   : > { %3675 = vadd.xlane.f32.xlu0 %v3674_v57 }
 0x8b0   : > { %v7092_v56 = vpop.eup %7091 }
 0x8b1   : > { %v3698_v30 = vmul.f32 %v7092_v56, %v9294_v60  ;;  %v3658_v31 = vpop.xlane.xlu2 %3657  ;;  %v4072_v60 = vsel %vm1363_vm0, %v9250_v51, 0 }
 0x8b2   : > { %7093 = vrcp.f32 %v3658_v31 }
 0x8b3   : > { %v3714_v20 = vpack.c.bf16 %v3698_v30, %v3698_v30  ;;  %7095 = vpow2.f32 %v3630_v59 }
 0x8b4   : > { %v9404_v8 = vpop.permute.xlu1 %4112 }
 0x8b5   : > { %6403 = vmatmul.msk.bf16.vlgmr.msrb.gmra.mxu2 %vm1363_vm0, %v3714_v20 }
 0x8b6   : > { %3953 = vmatpush.bf16.msrb.mxu2 %v3944_v36 }
 0x8b7   : > { %4064 = vrot.lane.b32.xlu2 %v8049_v29, %s7520_s7 }
 0x8b8   : > { %v7094_v3 = vpop.eup %7093 }
 0x8b9   : > { %v3704_v55 = vmul.f32 %v7094_v3, %v9298_v33  ;;  %v9388_v13 = vpop.eup %7095  ;;  %v4049_v3 = vsel %vm1940_vm1, %v9252_v50, 0 }
 0x8ba   : > { %v3677_v27 = vsel %vm1363_vm0, %v9388_v13, 0.0 }
 0x8bb   : > { %v3720_v10 = vpack.c.bf16 %v3704_v55, %v3704_v55 }
 0x8bd   : > { %6409 = vmatmul.msk.bf16.vlgmr.msrb.gmra.mxu0 %vm1363_vm0, %v3720_v10 }
 0x8be   : > { %4081 = vmatpush.bf16.xpose.msrb.mxu0 %v4072_v60 }
 0x8bf   : > { %4133 = vrot.lane.b32.xlu2 %v8073_v43, %s7520_s7 }
 0x8c0   : > { %4110 = vrot.lane.b32.xlu0 %v8065_v32, %s7520_s7 }
 0x8c7   : > { %4204 = vrot.lane.b32.xlu2 %v8103_v19, %s7519_s2  ;;  %3678 = vadd.xlane.f32.xlu1 %v3677_v27 }
 0x8c8   : > { %4181 = vrot.lane.b32.xlu0 %v8093_v26, %s7519_s2 }
 0x8c9   : > { %v3643_v51 = vpop.xlane.xlu2 %3642 }
 0x8ca   : > { %7097 = vrcp.f32 %v3643_v51 }
 0x8cf   : > { %4179 = vrot.lane.b32.xlu2 %v8093_v26, %s7520_s7 }
 0x8d0   : > { %v7098_v33 = vpop.eup %7097  ;;  %4156 = vrot.lane.b32.xlu0 %v8083_v22, %s7520_s7 }
 0x8d1   : > { %v3699_v24 = vmul.f32 %v7098_v33, %v9305_v47  ;;  %v4090_v57 = vpop.permute.xlu2 %4089 }
 0x8d2   : > { %v4095_v45 = vsel %vm1363_vm0, %v4090_v57, 0 }
 0x8d3   : > { %v3715_v34 = vpack.c.bf16 %v3699_v24, %v3699_v24 }
 0x8d5   : > { %6404 = vmatmul.msk.bf16.vlgmr.msra.gmra.mxu3 %vm1363_vm0, %v3715_v34 }
 0x8d6   : > { %3974 = vmatpush.bf16.msra.mxu3 %v3965_v5 }
 0x8d7   : > { %4250 = vrot.lane.b32.xlu2 %v8123_v11, %s7519_s2 }
 0x8d8   : > { %4225 = vrot.lane.b32.xlu0 %v8113_v49, %s7520_s7 }
 0x8d9   : > { %v3652_v18 = vpop.xlane.xlu0 %3651 }
 0x8da   : > { %7099 = vrcp.f32 %v3652_v18 }
 0x8df   : > { %4319 = vrot.lane.b32.xlu2 %v8151_v14, %s7519_s2  ;;  %v3661_v47 = vpop.xlane.xlu1 %3660 }
 0x8e0   : > { %v7100_v39 = vpop.eup %7099  ;;  %4296 = vrot.lane.b32.xlu0 %v8141_v37, %s7519_s2  ;;  %7101 = vrcp.f32 %v3661_v47  ;;  %4227 = vrot.lane.b32.xlu1 %v8113_v49, %s7519_s2 }
 0x8e1   : > { %v3702_v21 = vmul.f32 %v7100_v39, %v9312_v38 }
 0x8e3   : > { %v3718_v52 = vpack.c.bf16 %v3702_v21, %v3702_v21 }
 0x8e5   : > { %6407 = vmatmul.msk.bf16.vlgmr.msra.gmra.mxu2 %vm1363_vm0, %v3718_v52 }
 0x8e6   : > { %v7102_v9 = vpop.eup %7101  ;;  %4037 = vmatpush.bf16.msra.mxu2 %v4028_v54 }
 0x8e7   : > { %v3705_v7 = vmul.f32 %v7102_v9, %v9316_v0  ;;  %4294 = vrot.lane.b32.xlu2 %v8141_v37, %s7520_s7  ;;  %v3670_v58 = vpop.xlane.xlu1 %3669 }
 0x8e8   : > { %4271 = vrot.lane.b32.xlu0 %v8131_v17, %s7520_s7  ;;  %7103 = vrcp.f32 %v3670_v58  ;;  %4202 = vrot.lane.b32.xlu1 %v8103_v19, %s7520_s7 }
 0x8e9   : > { %v3721_v38 = vpack.c.bf16 %v3705_v7, %v3705_v7 }
 0x8eb   : > { %6410 = vmatmul.msk.bf16.vlgmr.msra.gmra.mxu1 %vm1363_vm0, %v3721_v38 }
 0x8ec   : > { %4104 = vmatpush.bf16.xpose.msra.mxu1 %v4095_v45  ;;  %v4136_v27 = vpop.permute.xlu0 %4135 }
 0x8ed   : > { %v4141_v52 = vsel %vm1363_vm0, %v4136_v27, 0 }
 0x8ee   : > { %v7104_v56 = vpop.eup %7103 }
 0x8ef   : > { %v3708_v0 = vmul.f32 %v7104_v56, %v9323_v61  ;;  %4365 = vrot.lane.b32.xlu2 %v8176_v63, %s7519_s2  ;;  %v3655_v30 = vpop.xlane.xlu1 %3654 }
 0x8f0   : > { %4342 = vrot.lane.b32.xlu0 %v8162_v53, %s7519_s2  ;;  %7105 = vrcp.f32 %v3655_v30  ;;  %4273 = vrot.lane.b32.xlu1 %v8131_v17, %s7519_s2 }
 0x8f1   : > { %v3724_v31 = vpack.c.bf16 %v3708_v0, %v3708_v0 }
 0x8f3   : > { %6413 = vmatmul.msk.bf16.vlgmr.msra.gmra.mxu0 %vm1363_vm0, %v3724_v31 }
 0x8f6   : > { %v7106_v20 = vpop.eup %7105 }
 0x8f7   : > { %v3703_v36 = vmul.f32 %v7106_v20, %v9327_v4  ;;  %4340 = vrot.lane.b32.xlu2 %v8162_v53, %s7520_s7 }
 0x8f8   : > { %4411 = vrot.lane.b32.xlu0 %v8226_v28, %s7519_s2  ;;  %4248 = vrot.lane.b32.xlu1 %v8123_v11, %s7520_s7 }
 0x8f9   : > { %v3719_v61 = vpack.c.bf16 %v3703_v36, %v3703_v36 }
 0x8fa   : > { %v9444_v46 = vpop.f32.mrf.mxu0 }
 0x8fb   : > { %6408 = vmatmul.msk.bf16.vlgmr.msrb.gmra.mxu3 %vm1363_vm0, %v3719_v61 }
 0x8fc   : > { %4058 = vmatpush.bf16.msrb.mxu3 %v4049_v3 }
 0x8ff   : > { %4409 = vrot.lane.b32.xlu2 %v8226_v28, %s7520_s7 }
 0x900   : > { %4386 = vrot.lane.b32.xlu0 %v8194_v16, %s7520_s7  ;;  %4317 = vrot.lane.b32.xlu1 %v8151_v14, %s7520_s7 }
 0x902   : > { %v3747_v4 = vpop.f32.mrf.mxu0  ;;  %v9455_v59 = vpop.f32.mrf.mxu1 }
 0x903   : > { %v6770_v55 = vpack.i.bf16 %v9455_v59, %v9444_v46 }
 0x907   : > { %4645 = vrot.lane.b32.xlu2 %v8057_v23, %s7521_s11  ;;  %v4088_v50 = vpop.permute.xlu1 %4087 }
 0x908   : > { %4624 = vrot.lane.b32.xlu0 %v8049_v29, %s7521_s11  ;;  %4388 = vrot.lane.b32.xlu1 %v8194_v16, %s7519_s2 }
 0x90a   : > { %v3673_v10 = vpop.xlane.xlu2 %3672  ;;  %v3768_v60 = vpop.f32.mrf.mxu1 }
 0x90b   : > { %7107 = vrcp.f32 %v3673_v10 }
 0x90f   : > { %4666 = vrot.lane.b32.xlu2 %v8065_v32, %s7521_s11  ;;  %v4159_v51 = vpop.permute.xlu1 %4158 }
 0x910   : > { %4708 = vrot.lane.b32.xlu0 %v8083_v22, %s7521_s11  ;;  %v4164_v23 = vsel %vm1363_vm0, %v4159_v51, 0  ;;  %4363 = vrot.lane.b32.xlu1 %v8176_v63, %s7520_s7  ;;  %s10481_s7 = sld [smem:[#allocation65_spill]] }
 0x911   : > { %v7108_v29 = vpop.eup %7107  ;;  %4173 = vmatpush.bf16.xpose.msra.mxu0 %v4164_v23 }
 0x912   : > { %v3709_v33 = vmul.f32 %v7108_v29, %v9345_v41  ;;  %v3667_v24 = vpop.xlane.xlu2 %3666  ;;  %v9473_v34 = vpop.f32.mrf.mxu1 }
 0x913   : > { %7109 = vrcp.f32 %v3667_v24 }
 0x914   : > { %v3725_v5 = vpack.c.bf16 %v3709_v33, %v3709_v33 }
 0x916   : > { %6414 = vmatmul.msk.bf16.vlgmr.msrb.gmra.mxu1 %vm1363_vm0, %v3725_v5 }
 0x917   : > { %v3664_v32 = vpop.xlane.xlu0 %3663  ;;  %4729 = vrot.lane.b32.xlu2 %v8093_v26, %s7521_s11 }
 0x918   : > { %7111 = vrcp.f32 %v3664_v32  ;;  %4687 = vrot.lane.b32.xlu1 %v8073_v43, %s7521_s11 }
 0x919   : > { %v7110_v22 = vpop.eup %7109 }
 0x91a   : > { %v3707_v18 = vmul.f32 %v7110_v22, %v9355_v42  ;;  %v4065_v47 = vpop.permute.xlu2 %4064  ;;  %v3852_v41 = vpop.f32.mrf.mxu1  ;;  %v4118_v42 = vsel %vm1363_vm0, %v9404_v8, 0 }
 0x91b   : > { %6417 = vmatmul.msk.bf16.vlgmr.msrb.gmra.mxu0 %vm1363_vm0, %v4065_v47 }
 0x91c   : > { %v3723_v39 = vpack.c.bf16 %v3707_v18, %v3707_v18 }
 0x91e   : > { %v7112_v21 = vpop.eup %7111  ;;  %6412 = vmatmul.msk.bf16.vlgmr.msra.gmra.mxu3 %vm1363_vm0, %v3723_v39 }
 0x91f   : > { %v3706_v54 = vmul.f32 %v7112_v21, %v9361_v48  ;;  %4150 = vmatpush.bf16.xpose.msra.mxu3 %v4141_v52  ;;  %v3676_v26 = vpop.xlane.xlu0 %3675 }
 0x920   : > { %4750 = vrot.lane.b32.xlu1 %v8103_v19, %s7521_s11  ;;  %7113 = vrcp.f32 %v3676_v26 }
 0x921   : > { %v3722_v43 = vpack.c.bf16 %v3706_v54, %v3706_v54 }
 0x922   : > { %v4134_v9 = vpop.permute.xlu2 %4133 }
 0x923   : > { %6411 = vmatmul.msk.bf16.vlgmr.msrb.gmra.mxu2 %vm1363_vm0, %v3722_v43 }
 0x924   : > { %4127 = vmatpush.bf16.xpose.msrb.mxu2 %v4118_v42 }
 0x925   : > { %v9490_v7 = vpop.f32.mrf.mxu0 }
 0x926   : > { %v6800_v58 = vpack.i.bf16 %v9473_v34, %v9490_v7  ;;  %6418 = vmatmul.msk.bf16.vlgmr.msra.gmra.mxu1 %vm1363_vm0, %v4088_v50  ;;  %v7114_v19 = vpop.eup %7113 }
 0x927   : > { %v3710_v57 = vmul.f32 %v7114_v19, %v9366_v25 }
 0x928   : > { %4771 = vrot.lane.b32.xlu1 %v8113_v49, %s7521_s11 }
 0x929   : > { %v3726_v8 = vpack.c.bf16 %v3710_v57, %v3710_v57 }
 0x92a   : > { %v4205_v48 = vpop.permute.xlu2 %4204 }
 0x92b   : > { %v4210_v0 = vsel %vm1363_vm0, %v4205_v48, 0 }
 0x92d   : > { %v3831_v38 = vpop.f32.mrf.mxu0 }
 0x932   : > { %v4180_v45 = vpop.permute.xlu2 %4179  ;;  %v4111_v56 = vpop.permute.xlu0 %4110 }
 0x933   : > { %6415 = vmatmul.msk.bf16.vlgmr.msra.gmra.mxu2 %vm1363_vm0, %v3726_v8 }
 0x934   : > { %4219 = vmatpush.bf16.xpose.msra.mxu2 %v4210_v0 }
 0x938   : > { %v9500_v30 = vpop.f32.mrf.mxu2 }
 0x93a   : > { %v4251_v31 = vpop.permute.xlu2 %4250  ;;  %v4182_v20 = vpop.permute.xlu0 %4181 }
 0x93b   : > { %v4256_v36 = vsel %vm1363_vm0, %v4251_v31, 0  ;;  %v4187_v49 = vsel %vm1363_vm0, %v4182_v20, 0  ;;  %v3679_v61 = vpop.xlane.xlu1 %3678  ;;  %v9504_v3 = vpop.f32.mrf.mxu0 }
 0x93c   : > { %7115 = vrcp.f32 %v3679_v61  ;;  %4196 = vmatpush.bf16.xpose.msrb.mxu1 %v4187_v49  ;;  %4265 = vmatpush.bf16.xpose.msrb.mxu0 %v4256_v36 }
 0x940   : > { %v3789_v25 = vpop.f32.mrf.mxu2 }
 0x942   : > { %v7116_v4 = vpop.eup %7115  ;;  %v4320_v50 = vpop.permute.xlu2 %4319 }
 0x943   : > { %v4157_v10 = vpop.permute.xlu0 %4156  ;;  %v3711_v60 = vmul.f32 %v7116_v4, %v9388_v13  ;;  %6419 = vmatmul.msk.bf16.vlgmr.msrb.gmra.mxu2 %vm1363_vm0, %v4111_v56  ;;  %v3915_v27 = vpop.f32.mrf.mxu0  ;;  %6422 = vmatmul.msk.bf16.vlgmr.msrb.gmra.mxu1 %vm1363_vm0, %v4180_v45  ;;  %v4325_v13 = vsel %vm1363_vm0, %v4320_v50, 0 }
 0x944   : > { %6421 = vmatmul.msk.bf16.vlgmr.msra.gmra.mxu0 %vm1363_vm0, %v4157_v10 }
 0x945   : > { %v3727_v51 = vpack.c.bf16 %v3711_v60, %v3711_v60 }
 0x947   : > { %6416 = vmatmul.msk.bf16.vlgmr.msrb.gmra.mxu3 %vm1363_vm0, %v3727_v51 }
 0x94a   : > { %v4295_v23 = vpop.permute.xlu2 %4294 }
 0x94b   : > { %v4226_v29 = vpop.permute.xlu0 %4225 }
 0x952   : > { %v4366_v33 = vpop.permute.xlu2 %4365  ;;  %v4228_v32 = vpop.permute.xlu1 %4227 }
 0x953   : > { %v4297_v24 = vpop.permute.xlu0 %4296  ;;  %v4233_v22 = vsel %vm1363_vm0, %v4228_v32, 0 }
 0x954   : > { %v4302_v5 = vsel %vm1363_vm0, %v4297_v24, 0  ;;  %4242 = vmatpush.bf16.xpose.msrb.mxu3 %v4233_v22 }
 0x955   : > { %4311 = vmatpush.bf16.xpose.msrb.mxu2 %v4302_v5 }
 0x957   : > { %6420 = vmatmul.msk.bf16.vlgmr.msra.gmra.mxu3 %vm1363_vm0, %v4134_v9  ;;  %v4371_v9 = vsel %vm1363_vm0, %v4366_v33, 0 }
 0x958   : > { %v9515_v18 = vpop.f32.mrf.mxu3 }
 0x959   : > { %v6785_v47 = vpack.i.bf16 %v9515_v18, %v9500_v30 }
 0x95a   : > { %v4341_v41 = vpop.permute.xlu2 %4340  ;;  %v4203_v21 = vpop.permute.xlu1 %4202 }
 0x95b   : > { %v4272_v39 = vpop.permute.xlu0 %4271  ;;  %6423 = vmatmul.msk.bf16.vlgmr.msra.gmra.mxu2 %vm1363_vm0, %v4203_v21 }
 0x95c   : > { %4334 = vmatpush.bf16.xpose.msra.mxu3 %v4325_v13 }
 0x960   : > { %v3810_v52 = vpop.f32.mrf.mxu3 }
 0x962   : > { %v4410_v54 = vpop.permute.xlu2 %4409  ;;  %v4274_v42 = vpop.permute.xlu1 %4273 }
 0x963   : > { %v4343_v43 = vpop.permute.xlu0 %4342  ;;  %v4279_v19 = vsel %vm1363_vm0, %v4274_v42, 0 }
 0x964   : > { %v4348_v26 = vsel %vm1363_vm0, %v4343_v43, 0  ;;  %4288 = vmatpush.bf16.xpose.msra.mxu1 %v4279_v19 }
 0x965   : > { %4357 = vmatpush.bf16.xpose.msra.mxu0 %v4348_v26 }
 0x967   : > { %6424 = vmatmul.msk.bf16.vlgmr.msrb.gmra.mxu3 %vm1363_vm0, %v4226_v29 }
 0x968   : > { %v9524_v48 = vpop.f32.mrf.mxu2  ;;  %v9526_v57 = vpop.f32.mrf.mxu1 }
 0x96a   : > { %v4646_v8 = vpop.permute.xlu2 %4645  ;;  %v4249_v31 = vpop.permute.xlu1 %4248 }
 0x96b   : > { %v4412_v45 = vpop.permute.xlu0 %4411  ;;  %v4651_v56 = vsel %vm1940_vm1, %v4646_v8, 0  ;;  %6425 = vmatmul.msk.bf16.vlgmr.msrb.gmra.mxu0 %vm1363_vm0, %v4249_v31  ;;  %6426 = vmatmul.msk.bf16.vlgmr.msra.gmra.mxu1 %vm1363_vm0, %v4272_v39 }
 0x96c   : > { %4380 = vmatpush.bf16.xpose.msrb.mxu1 %v4371_v9  ;;  %v4417_v0 = vsel %vm1363_vm0, %v4412_v45, 0  ;;  %6427 = vmatmul.msk.bf16.vlgmr.msrb.gmra.mxu2 %vm1363_vm0, %v4295_v23 }
 0x96d   : > { %4426 = vmatpush.bf16.xpose.msrb.mxu3 %v4417_v0 }
 0x970   : > { %v3873_v20 = vpop.f32.mrf.mxu2  ;;  %v3936_v36 = vpop.f32.mrf.mxu1 }
 0x971   : > { %v9535_v49 = vpop.f32.mrf.mxu0 }
 0x972   : > { %v4318_v25 = vpop.permute.xlu1 %4317  ;;  %v4667_v4 = vpop.permute.xlu2 %4666 }
 0x973   : > { %v4387_v61 = vpop.permute.xlu0 %4386  ;;  %v4672_v23 = vsel %vm1940_vm1, %v4667_v4, 0 }
 0x974   : > { %4660 = vmatpush.bf16.msra.mxu1 %v4651_v56 }
 0x977   : > { %6428 = vmatmul.msk.bf16.vlgmr.msra.gmra.mxu3 %vm1363_vm0, %v4318_v25 }
 0x979   : > { %v3999_v50 = vpop.f32.mrf.mxu0 }
 0x97a   : > { %v4389_v27 = vpop.permute.xlu1 %4388  ;;  %v4730_v24 = vpop.permute.xlu2 %4729 }
 0x97b   : > { %v4625_v10 = vpop.permute.xlu0 %4624  ;;  %v4394_v51 = vsel %vm1363_vm0, %v4389_v27, 0  ;;  %6429 = vmatmul.msk.bf16.vlgmr.msra.gmra.mxu0 %vm1363_vm0, %v4341_v41  ;;  %v4735_v13 = vsel %vm1940_vm1, %v4730_v24, 0 }
 0x97c   : > { %v4630_v60 = vsel %vm1940_vm1, %v4625_v10, 0  ;;  %4403 = vmatpush.bf16.xpose.msra.mxu2 %v4394_v51 }
 0x97d   : > { %4639 = vmatpush.bf16.msrb.mxu0 %v4630_v60 }
 0x97e   : > { %v9542_v29 = vpop.f32.mrf.mxu3 }
 0x982   : > { %v4364_v22 = vpop.permute.xlu1 %4363 }
 0x983   : > { %v4709_v5 = vpop.permute.xlu0 %4708  ;;  %6430 = vmatmul.msk.bf16.vlgmr.msrb.gmra.mxu1 %vm1363_vm0, %v4364_v22  ;;  %6431 = vmatmul.msk.bf16.vlgmr.msra.gmra.mxu2 %vm1363_vm0, %v4387_v61 }
 0x984   : > { %4681 = vmatpush.bf16.msrb.mxu2 %v4672_v23  ;;  %v4714_v32 = vsel %vm1940_vm1, %v4709_v5, 0  ;;  %4744 = vmatpush.bf16.msrb.mxu1 %v4735_v13 }
 0x985   : > { %4723 = vmatpush.bf16.msra.mxu0 %v4714_v32 }
 0x986   : > { %v3894_v41 = vpop.f32.mrf.mxu3 }
 0x987   : > { %6432 = vmatmul.msk.bf16.vlgmr.msrb.gmra.mxu3 %vm1363_vm0, %v4410_v54 }
 0x98a   : > { %v4688_v39 = vpop.permute.xlu1 %4687 }
 0x98b   : > { %v4693_v21 = vsel %vm1940_vm1, %v4688_v39, 0 }
 0x98c   : > { %4702 = vmatpush.bf16.msra.mxu3 %v4693_v21 }
 0x992   : > { %v4751_v43 = vpop.permute.xlu1 %4750 }
 0x993   : > { %v9552_v52 = vpop.f32.mrf.mxu1  ;;  %v4756_v42 = vsel %vm1940_vm1, %v4751_v43, 0 }
 0x994   : > { %4765 = vmatpush.bf16.msra.mxu2 %v4756_v42 }
 0x998   : > { %v9557_v19 = vpop.f32.mrf.mxu0 }
 0x999   : > { %v4432_v9 = vsel %vm1363_vm0, %v9557_v19, -inf }
 0x99a   : > { %4433 = vmax.xlane.f32.xlu1 %v4432_v9  ;;  %v4772_v8 = vpop.permute.xlu1 %4771 }
 0x99b   : > { %v4020_v54 = vpop.f32.mrf.mxu1  ;;  %v4777_v45 = vsel %vm1940_vm1, %v4772_v8, 0 }
 0x99c   : > { %4786 = vmatpush.bf16.msrb.mxu3 %v4777_v45 }
 0x9a0   : > { %v4085_v56 = vpop.f32.mrf.mxu0 }
 0x9a1   : > { %v9562_v0 = vpop.f32.mrf.mxu3 }
 0x9a3   : > { %v9564_v31 = vpop.f32.mrf.mxu1 }
 0x9a4   : > { %v4435_v20 = vsel %vm1363_vm0, %v9564_v31, -inf }
 0x9a5   : > { %4436 = vmax.xlane.f32.xlu0 %v4435_v20 }
 0x9a6   : > { %v9568_v36 = vpop.f32.mrf.mxu2 }
 0x9a9   : > { %v3978_v25 = vpop.f32.mrf.mxu3 }
 0x9ab   : > { %v4108_v4 = vpop.f32.mrf.mxu1 }
 0x9ae   : > { %v3957_v50 = vpop.f32.mrf.mxu2 }
 0x9b6   : > { %v9572_v10 = vpop.f32.mrf.mxu2 }
 0x9be   : > { %v4041_v60 = vpop.f32.mrf.mxu2 }
 0x9c0   : > { %v9576_v51 = vpop.f32.mrf.mxu1 }
 0x9c1   : > { %v9574_v27 = vpop.f32.mrf.mxu0  ;;  %v4447_v24 = vsel %vm1363_vm0, %v9576_v51, -inf }
 0x9c2   : > { %v4444_v23 = vsel %vm1363_vm0, %v9574_v27, -inf  ;;  %4448 = vmax.xlane.f32.xlu2 %v4447_v24 }
 0x9c3   : > { %4445 = vmax.xlane.f32.xlu0 %v4444_v23 }
 0x9c6   : > { %v9582_v5 = vpop.f32.mrf.mxu2 }
 0x9c7   : > { %v4438_v13 = vsel %vm1363_vm0, %v9582_v5, -inf }
 0x9c8   : > { %v4200_v22 = vpop.f32.mrf.mxu1 }
 0x9c9   : > { %v4177_v32 = vpop.f32.mrf.mxu0 }
 0x9ca   : > { %v9586_v41 = vpop.f32.mrf.mxu3  ;;  %4439 = vmax.xlane.f32.xlu2 %v4438_v13 }
 0x9ce   : > { %v4131_v21 = vpop.f32.mrf.mxu2 }
 0x9d2   : > { %v4062_v43 = vpop.f32.mrf.mxu3 }
 0x9da   : > { %v9590_v42 = vpop.f32.mrf.mxu3 }
 0x9db   : > { %v4441_v24 = vsel %vm1363_vm0, %v9590_v42, -inf }
 0x9de   : > { %v9592_v9 = vpop.f32.mrf.mxu2 }
 0x9df   : > { %v4450_v43 = vsel %vm1363_vm0, %v9592_v9, -inf }
 0x9e2   : > { %v4154_v54 = vpop.f32.mrf.mxu3  ;;  %4792 = vrot.lane.b32.xlu2 %v8123_v11, %s7521_s11 }
 0x9e6   : > { %v4223_v8 = vpop.f32.mrf.mxu2 }
 0x9e8   : > { %v9596_v45 = vpop.f32.mrf.mxu0  ;;  %v9598_v56 = vpop.f32.mrf.mxu1 }
 0x9e9   : > { %v4459_v25 = vsel %vm1363_vm0, %v9598_v56, -inf  ;;  %v4456_v4 = vsel %vm1363_vm0, %v9596_v45, -inf }
 0x9ea   : > { %v9600_v20 = vpop.f32.mrf.mxu3  ;;  %4460 = vmax.xlane.f32.xlu1 %v4459_v25  ;;  %4457 = vmax.xlane.f32.xlu0 %v4456_v4 }
 0x9eb   : > { %v4453_v32 = vsel %vm1363_vm0, %v9600_v20, -inf }
 0x9ef   : > { %v9606_v50 = vpop.f32.mrf.mxu2 }
 0x9f0   : > { %v4269_v60 = vpop.f32.mrf.mxu0  ;;  %v4292_v23 = vpop.f32.mrf.mxu1  ;;  %v4462_v39 = vsel %vm1363_vm0, %v9606_v50, -inf }
 0x9f2   : > { %v4246_v11 = vpop.f32.mrf.mxu3  ;;  %4442 = vmax.xlane.f32.xlu1 %v4441_v24  ;;  %4454 = vmax.xlane.f32.xlu0 %v4453_v32 }
 0x9f7   : > { %v4315_v22 = vpop.f32.mrf.mxu2 }
 0x9f8   : > { %v9612_v13 = vpop.f32.mrf.mxu0 }
 0x9f9   : > { %v4468_v22 = vsel %vm1363_vm0, %v9612_v13, -inf }
 0x9fa   : > { %v9614_v21 = vpop.f32.mrf.mxu3  ;;  %4451 = vmax.xlane.f32.xlu1 %v4450_v43 }
 0x9fb   : > { %v4465_v32 = vsel %vm1363_vm0, %v9614_v21, -inf }
 0xa00   : > { %v4361_v54 = vpop.f32.mrf.mxu0  ;;  %v9618_v8 = vpop.f32.mrf.mxu1 }
 0xa01   : > { %v4471_v4 = vsel %vm1363_vm0, %v9618_v8, -inf }
 0xa02   : > { %v4338_v25 = vpop.f32.mrf.mxu3  ;;  %4472 = vmax.xlane.f32.xlu1 %v4471_v4 }
 0xa06   : > { %v9622_v60 = vpop.f32.mrf.mxu2 }
 0xa07   : > { %v4474_v23 = vsel %vm1363_vm0, %v9622_v60, -inf }
 0xa08   : > { %4475 = vmax.xlane.f32.xlu0 %v4474_v23  ;;  %v4384_v11 = vpop.f32.mrf.mxu1 }
 0xa0a   : > { %v9626_v24 = vpop.f32.mrf.mxu3  ;;  %4466 = vmax.xlane.f32.xlu1 %v4465_v32 }
 0xa0b   : > { %4469 = vmax.xlane.f32.xlu2 %v4468_v22  ;;  %v4477_v38 = vsel %vm1363_vm0, %v9626_v24, -inf }
 0xa0d   : > { %v4434_v43 = vpop.xlane.xlu1 %4433 }
 0xa0e   : > { %v4407_v54 = vpop.f32.mrf.mxu2  ;;  %v4480_v25 = vsub.f32 %v9557_v19, %v4434_v43 }
 0xa10   : > { %v4496_v23 = vmul.f32 1.442695, %v4480_v25 }
 0xa12   : > { %v4430_v4 = vpop.f32.mrf.mxu3  ;;  %7117 = vpow2.f32 %v4496_v23 }
 0xa13   : > { %4463 = vmax.xlane.f32.xlu2 %v4462_v39 }
 0xa18   : > { %v4437_v11 = vpop.xlane.xlu0 %4436  ;;  %v9638_v32 = vpop.eup %7117 }
 0xa19   : > { %v4481_v26 = vsub.f32 %v9564_v31, %v4437_v11  ;;  %v4528_v19 = vsel %vm1363_vm0, %v9638_v32, 0.0 }
 0xa1b   : > { %v4498_v61 = vmul.f32 1.442695, %v4481_v26  ;;  %4478 = vmax.xlane.f32.xlu2 %v4477_v38 }
 0xa1d   : > { %7119 = vpow2.f32 %v4498_v61 }
 0xa23   : > { %v9640_v22 = vpop.eup %7119  ;;  %4529 = vadd.xlane.f32.xlu2 %v4528_v19 }
 0xa24   : > { %v4531_v39 = vsel %vm1363_vm0, %v9640_v22, 0.0 }
 0xa25   : > { %4532 = vadd.xlane.f32.xlu1 %v4531_v39 }
 0xa35   : > { %v4449_v43 = vpop.xlane.xlu2 %4448 }
 0xa36   : > { %v4446_v31 = vpop.xlane.xlu0 %4445  ;;  %v4485_v54 = vsub.f32 %v9576_v51, %v4449_v43 }
 0xa37   : > { %v4484_v26 = vsub.f32 %v9574_v27, %v4446_v31 }
 0xa38   : > { %v4506_v61 = vmul.f32 1.442695, %v4485_v54 }
 0xa39   : > { %v4504_v38 = vmul.f32 1.442695, %v4484_v26 }
 0xa3b   : > { %7121 = vpow2.f32 %v4504_v38 }
 0xa3c   : > { %7123 = vpow2.f32 %v4506_v61 }
 0xa3d   : > { %v4440_v19 = vpop.xlane.xlu2 %4439 }
 0xa3e   : > { %v4482_v43 = vsub.f32 %v9582_v5, %v4440_v19 }
 0xa40   : > { %v4500_v38 = vmul.f32 1.442695, %v4482_v43 }
 0xa41   : > { %v9648_v25 = vpop.eup %7121 }
 0xa42   : > { %v4540_v4 = vsel %vm1363_vm0, %v9648_v25, 0.0  ;;  %v9652_v23 = vpop.eup %7123 }
 0xa43   : > { %4541 = vadd.xlane.f32.xlu0 %v4540_v4  ;;  %v4543_v11 = vsel %vm1363_vm0, %v9652_v23, 0.0 }
 0xa45   : > { %v4793_v43 = vpop.permute.xlu2 %4792 }
 0xa4b   : > { %4544 = vadd.xlane.f32.xlu0 %v4543_v11 }
 0xa5d   : > { %v4458_v27 = vpop.xlane.xlu0 %4457  ;;  %v4461_v39 = vpop.xlane.xlu1 %4460 }
 0xa5e   : > { %v4488_v51 = vsub.f32 %v9596_v45, %v4458_v27  ;;  %v4489_v31 = vsub.f32 %v9598_v56, %v4461_v39 }
 0xa60   : > { %v4512_v26 = vmul.f32 1.442695, %v4488_v51  ;;  %v4514_v54 = vmul.f32 1.442695, %v4489_v31 }
 0xa62   : > { %7125 = vpow2.f32 %v4512_v26 }
 0xa63   : > { %7127 = vpow2.f32 %v4514_v54 }
 0xa64   : > { %7129 = vpow2.f32 %v4500_v38 }
 0xa65   : > { %v4443_v61 = vpop.xlane.xlu1 %4442 }
 0xa66   : > { %v4483_v11 = vsub.f32 %v9590_v42, %v4443_v61 }
 0xa68   : > { %v9659_v4 = vpop.eup %7125  ;;  %v4502_v56 = vmul.f32 1.442695, %v4483_v11 }
 0xa69   : > { %v9662_v33 = vpop.eup %7127  ;;  %v4552_v45 = vsel %vm1363_vm0, %v9659_v4, 0.0 }
 0xa6a   : > { %4553 = vadd.xlane.f32.xlu1 %v4552_v45  ;;  %v4555_v5 = vsel %vm1363_vm0, %v9662_v33, 0.0  ;;  %v9668_v27 = vpop.eup %7129  ;;  %7131 = vpow2.f32 %v4502_v56 }
 0xa6b   : > { %4556 = vadd.xlane.f32.xlu0 %v4555_v5  ;;  %v4534_v42 = vsel %vm1363_vm0, %v9668_v27, 0.0 }
 0xa6d   : > { %v4452_v19 = vpop.xlane.xlu1 %4451 }
 0xa6e   : > { %v4486_v39 = vsub.f32 %v9592_v9, %v4452_v19 }
 0xa70   : > { %v4508_v51 = vmul.f32 1.442695, %v4486_v39  ;;  %v9673_v31 = vpop.eup %7131 }
 0xa71   : > { %v4537_v54 = vsel %vm1363_vm0, %v9673_v31, 0.0 }
 0xa72   : > { %7133 = vpow2.f32 %v4508_v51  ;;  %4535 = vadd.xlane.f32.xlu1 %v4534_v42 }
 0xa75   : > { %v4473_v45 = vpop.xlane.xlu1 %4472 }
 0xa78   : > { %v9675_v26 = vpop.eup %7133 }
 0xa79   : > { %v4546_v38 = vsel %vm1363_vm0, %v9675_v26, 0.0 }
 0xa7a   : > { %4538 = vadd.xlane.f32.xlu1 %v4537_v54  ;;  %4547 = vadd.xlane.f32.xlu0 %v4546_v38 }
 0xa7d   : > { %v4467_v51 = vpop.xlane.xlu1 %4466 }
 0xa7e   : > { %v4470_v9 = vpop.xlane.xlu2 %4469 }
 0xa7f   : > { %v4492_v61 = vsub.f32 %v9612_v13, %v4470_v9 }
 0xa81   : > { %v4520_v11 = vmul.f32 1.442695, %v4492_v61 }
 0xa83   : > { %7135 = vpow2.f32 %v4520_v11 }
 0xa86   : > { %v4464_v5 = vpop.xlane.xlu2 %4463 }
 0xa89   : > { %v9682_v56 = vpop.eup %7135 }
 0xa8a   : > { %v4564_v19 = vsel %vm1363_vm0, %v9682_v56, 0.0 }
 0xa8b   : > { %4565 = vadd.xlane.f32.xlu2 %v4564_v19 }
 0xa8e   : > { %v9686_v39 = vpop.xlane.xlu2 %4478  ;;  %4813 = vrot.lane.b32.xlu0 %v8131_v17, %s7521_s11  ;;  %v4798_v17 = vsel %vm1940_vm1, %v4793_v43, 0 }
 0xa93   : > { %4834 = vrot.lane.b32.xlu1 %v8141_v37, %s7521_s11  ;;  %v4455_v37 = vpop.xlane.xlu0 %4454 }
 0xa96   : > { %v4530_v13 = vpop.xlane.xlu2 %4529 }
 0xa97   : > { %7137 = vrcp.f32 %v4530_v13 }
 0xa98   : > { %v4533_v42 = vpop.xlane.xlu1 %4532 }
 0xa99   : > { %7139 = vrcp.f32 %v4533_v42 }
 0xa9b   : > { %4855 = vrot.lane.b32.xlu1 %v8151_v14, %s7521_s11  ;;  %v4493_v14 = vsub.f32 %v9618_v8, %v4473_v45  ;;  %v4476_v42 = vpop.xlane.xlu0 %4475  ;;  %v4490_v45 = vsub.f32 %v9606_v50, %v4464_v5 }
 0xa9d   : > { %v7138_v54 = vpop.eup %7137  ;;  %v4522_v13 = vmul.f32 1.442695, %v4493_v14 }
 0xa9e   : > { %v4592_v9 = vmul.f32 %v7138_v54, %v9638_v32  ;;  %v4491_v32 = vsub.f32 %v9614_v21, %v4467_v51  ;;  %v4487_v54 = vsub.f32 %v9600_v20, %v4455_v37 }
 0xa9f   : > { %v7140_v38 = vpop.eup %7139  ;;  %7141 = vpow2.f32 %v4522_v13 }
 0xaa0   : > { %v4593_v61 = vmul.f32 %v7140_v38, %v9640_v22  ;;  %v4608_v11 = vpack.c.bf16 %v4592_v9, %v4592_v9  ;;  %v4518_v22 = vmul.f32 1.442695, %v4491_v32  ;;  %v4494_v9 = vsub.f32 %v9622_v60, %v4476_v42 }
 0xaa2   : > { %v4609_v19 = vpack.c.bf16 %v4593_v61, %v4593_v61  ;;  %6433 = vmatmul.msk.bf16.vlgmr.msrb.gmra.mxu0 %vm1363_vm0, %v4608_v11  ;;  %v4524_v8 = vmul.f32 1.442695, %v4494_v9 }
 0xaa3   : > { %4807 = vmatpush.bf16.msrb.mxu0 %v4798_v17  ;;  %4897 = vrot.lane.b32.xlu2 %v8176_v63, %s7521_s11  ;;  %v4510_v63 = vmul.f32 1.442695, %v4487_v54 }
 0xaa4   : > { %6434 = vmatmul.msk.bf16.vlgmr.msra.gmra.mxu1 %vm1363_vm0, %v4609_v19  ;;  %v4516_v19 = vmul.f32 1.442695, %v4490_v45 }
 0xaa5   : > { %v9704_v43 = vpop.eup %7141 }
 0xaa6   : > { %v4567_v61 = vsel %vm1363_vm0, %v9704_v43, 0.0 }
 0xab6   : > { %v4542_v38 = vpop.xlane.xlu0 %4541 }
 0xab7   : > { %7143 = vrcp.f32 %v4542_v38  ;;  %v10427_v38 = vpack.i.bf16 %v9034_v2, %v9023_v44 }
 0xab8   : > { %7145 = vpow2.f32 %v4518_v22  ;;  %4568 = vadd.xlane.f32.xlu0 %v4567_v61 }
 0xab9   : > { %7147 = vpow2.f32 %v4510_v63 }
 0xabd   : > { %v7144_v11 = vpop.eup %7143 }
 0xabe   : > { %v9710_v21 = vpop.eup %7145  ;;  %v4596_v20 = vmul.f32 %v7144_v11, %v9648_v25  ;;  %v4545_v51 = vpop.xlane.xlu0 %4544  ;;  %v4495_v11 = vsub.f32 %v9626_v24, %v9686_v39 }
 0xabf   : > { %7149 = vrcp.f32 %v4545_v51  ;;  %v4561_v17 = vsel %vm1363_vm0, %v9710_v21, 0.0  ;;  %v9716_v37 = vpop.eup %7147 }
 0xac0   : > { %7151 = vpow2.f32 %v4524_v8  ;;  %v4612_v60 = vpack.c.bf16 %v4596_v20, %v4596_v20  ;;  %4562 = vadd.xlane.f32.xlu0 %v4561_v17  ;;  %v4549_v25 = vsel %vm1363_vm0, %v9716_v37, 0.0 }
 0xac1   : > { %7153 = vpow2.f32 %v4516_v19 }
 0xac2   : > { %6437 = vmatmul.msk.bf16.vlgmr.msra.gmra.mxu0 %vm1363_vm0, %v4612_v60 }
 0xac5   : > { %v7150_v50 = vpop.eup %7149  ;;  %4550 = vadd.xlane.f32.xlu1 %v4549_v25 }
 0xac6   : > { %v9718_v5 = vpop.eup %7151  ;;  %v4597_v14 = vmul.f32 %v7150_v50, %v9652_v23 }
 0xac7   : > { %v4570_v42 = vsel %vm1363_vm0, %v9718_v5, 0.0  ;;  %v9725_v32 = vpop.eup %7153 }
 0xac8   : > { %v4613_v13 = vpack.c.bf16 %v4597_v14, %v4597_v14  ;;  %4571 = vadd.xlane.f32.xlu0 %v4570_v42  ;;  %v4558_v22 = vsel %vm1363_vm0, %v9725_v32, 0.0 }
 0xaca   : > { %6438 = vmatmul.msk.bf16.vlgmr.msrb.gmra.mxu1 %vm1363_vm0, %v4613_v13 }
 0xacc   : > { %4559 = vadd.xlane.f32.xlu2 %v4558_v22 }
 0xadc   : > { %4918 = vrot.lane.b32.xlu0 %v8194_v16, %s7521_s11 }
 0xadd   : > { %v4554_v23 = vpop.xlane.xlu1 %4553 }
 0xade   : > { %7155 = vrcp.f32 %v4554_v23  ;;  %4876 = vrot.lane.b32.xlu1 %v8162_v53, %s7521_s11  ;;  %v4557_v16 = vpop.xlane.xlu0 %4556 }
 0xae4   : > { %v7156_v54 = vpop.eup %7155  ;;  %4939 = vrot.lane.b32.xlu2 %v8226_v28, %s7521_s11  ;;  %6766 = vrot.lane.b32.xlu0 %v10427_v38, %s7522_s26 }
 0xae5   : > { %v4600_v9 = vmul.f32 %v7156_v54, %v9659_v4  ;;  %v4536_v63 = vpop.xlane.xlu1 %4535  ;;  %v10428_v4 = vpack.i.bf16 %v9121_v35, %v9113_v15  ;;  %v10429_v15 = vpack.i.bf16 %v9064_v40, %v9049_v6 }
 0xae6   : > { %7157 = vrcp.f32 %v4536_v63 }
 0xae7   : > { %v4616_v61 = vpack.c.bf16 %v4600_v9, %v4600_v9 }
 0xae9   : > { %6441 = vmatmul.msk.bf16.vlgmr.msrb.gmra.mxu0 %vm1363_vm0, %v4616_v61 }
 0xaec   : > { %v7158_v8 = vpop.eup %7157  ;;  %6771 = vrot.lane.b32.xlu2 %v6770_v55, %s7523_s30 }
 0xaed   : > { %v4594_v53 = vmul.f32 %v7158_v8, %v9668_v27  ;;  %v4539_v28 = vpop.xlane.xlu1 %4538  ;;  %v4548_v2 = vpop.xlane.xlu0 %4547  ;;  %v4526_v27 = vmul.f32 1.442695, %v4495_v11 }
 0xaee   : > { %7159 = vrcp.f32 %v4539_v28 }
 0xaef   : > { %v4610_v44 = vpack.c.bf16 %v4594_v53, %v4594_v53  ;;  %7161 = vrcp.f32 %v4548_v2  ;;  %v10430_v53 = vpack.i.bf16 %v9130_v12, %v9164_v1 }
 0xaf0   : > { %7163 = vrcp.f32 %v4557_v16 }
 0xaf1   : > { %6435 = vmatmul.msk.bf16.vlgmr.msrb.gmra.mxu2 %vm1363_vm0, %v4610_v44  ;;  %7165 = vpow2.f32 %v4526_v27 }
 0xaf4   : > { %6781 = vrot.lane.b32.xlu2 %v10428_v4, %s7522_s26  ;;  %v7160_v45 = vpop.eup %7159 }
 0xaf5   : > { %v4595_v46 = vmul.f32 %v7160_v45, %v9673_v31  ;;  %v7162_v59 = vpop.eup %7161 }
 0xaf6   : > { %v4598_v20 = vmul.f32 %v7162_v59, %v9675_v26  ;;  %v7164_v51 = vpop.eup %7163 }
 0xaf7   : > { %v4611_v55 = vpack.c.bf16 %v4595_v46, %v4595_v46  ;;  %v4601_v24 = vmul.f32 %v7164_v51, %v9662_v33  ;;  %v9764_v17 = vpop.eup %7165 }
 0xaf8   : > { %v4614_v39 = vpack.c.bf16 %v4598_v20, %v4598_v20  ;;  %v4573_v33 = vsel %vm1363_vm0, %v9764_v17, 0.0  ;;  %v10431_v20 = vpack.i.bf16 %v9542_v29, %v9524_v48  ;;  %v10434_v29 = vld [vmem:[#allocation57_spill] sm:$0xff] }
 0xaf9   : > { %6436 = vmatmul.msk.bf16.vlgmr.msra.gmra.mxu3 %vm1363_vm0, %v4611_v55  ;;  %v4617_v60 = vpack.c.bf16 %v4601_v24, %v4601_v24 }
 0xafc   : > { %6796 = vrot.lane.b32.xlu2 %v10429_v15, %s7522_s26 }
 0xafe   : > { %v4566_v35 = vpop.xlane.xlu2 %4565 }
 0xb00   : > { %v4814_v19 = vpop.permute.xlu0 %4813 }
 0xb01   : > { %v4819_v31 = vsel %vm1940_vm1, %v4814_v19, 0  ;;  %6439 = vmatmul.msk.bf16.vlgmr.msra.gmra.mxu2 %vm1363_vm0, %v4614_v39 }
 0xb02   : > { %4828 = vmatpush.bf16.msra.mxu1 %v4819_v31  ;;  %v10435_v31 = vld [vmem:[#allocation56_spill] sm:$0xff] }
 0xb05   : > { %6442 = vmatmul.msk.bf16.vlgmr.msra.gmra.mxu1 %vm1363_vm0, %v4617_v60  ;;  %v4835_v26 = vpop.permute.xlu1 %4834  ;;  %v10436_v60 = vpack.i.bf16 %v10434_v29, %v10435_v31 }
 0xb06   : > { %v4898_v50 = vpop.permute.xlu2 %4897  ;;  %v4840_v6 = vsel %vm1940_vm1, %v4835_v26, 0 }
 0xb07   : > { %v4903_v40 = vsel %vm1940_vm1, %v4898_v50, 0  ;;  %4849 = vmatpush.bf16.msrb.mxu2 %v4840_v6  ;;  %v10437_v50 = vld [vmem:[#allocation54_spill] sm:$0xff]  ;;  %v10438_v6 = vld [vmem:[#allocation55_spill] sm:$0xff] }
 0xb08   : > { %4912 = vmatpush.bf16.msrb.mxu1 %v4903_v40  ;;  %4574 = vadd.xlane.f32.xlu1 %v4573_v33  ;;  %v10440_v33 = vld [vmem:[#allocation59_spill] sm:$0xff] }
 0xb0d   : > { %v4856_v14 = vpop.permute.xlu1 %4855 }
 0xb0e   : > { %v4861_v25 = vsel %vm1940_vm1, %v4856_v14, 0  ;;  %v10441_v14 = vld [vmem:[#allocation58_spill] sm:$0xff] }
 0xb0f   : > { %4870 = vmatpush.bf16.msra.mxu3 %v4861_v25  ;;  %v6560_v25 = vld [vmem:[#allocation10 + $0x8] sm:$0xff] }
 0xb1f   : > { %v4641_v13 = vpop.f32.mrf.mxu0 }
 0xb21   : > { %v4662_v42 = vpop.f32.mrf.mxu1 }
 0xb22   : > { %v6775_v22 = vpack.i.bf16 %v4662_v42, %v4641_v13  ;;  %v6559_v42 = vld [vmem:[#allocation10] sm:$0xff] }
 0xb24   : > { %6776 = vrot.lane.b32.xlu0 %v6775_v22, %s7524_s24 }
 0xb27   : > { %v4643_v23 = vpop.f32.mrf.mxu0 }
 0xb29   : > { %v4664_v54 = vpop.f32.mrf.mxu1 }
 0xb2b   : > { %v4569_v38 = vpop.xlane.xlu0 %4568 }
 0xb2c   : > { %7167 = vrcp.f32 %v4569_v38  ;;  %6786 = vrot.lane.b32.xlu0 %v6785_v47, %s7523_s30 }
 0xb32   : > { %v7168_v9 = vpop.eup %7167 }
 0xb33   : > { %v4605_v63 = vmul.f32 %v7168_v9, %v9704_v43  ;;  %v4563_v8 = vpop.xlane.xlu0 %4562 }
 0xb34   : > { %6801 = vrot.lane.b32.xlu0 %v6800_v58, %s7523_s30 }
 0xb35   : > { %v4621_v16 = vpack.c.bf16 %v4605_v63, %v4605_v63 }
 0xb37   : > { %6446 = vmatmul.msk.bf16.vlgmr.msrb.gmra.mxu1 %vm1363_vm0, %v4621_v16 }
 0xb38   : > { %v4551_v61 = vpop.xlane.xlu1 %4550 }
 0xb39   : > { %7169 = vrcp.f32 %v4551_v61 }
 0xb3b   : > { %v4572_v44 = vpop.xlane.xlu0 %4571 }
 0xb3c   : > { %6811 = vrot.lane.b32.xlu0 %v10430_v53, %s7522_s26 }
 0xb3f   : > { %v4725_v30 = vpop.f32.mrf.mxu0  ;;  %v7170_v18 = vpop.eup %7169 }
 0xb40   : > { %v4560_v47 = vpop.xlane.xlu2 %4559  ;;  %v4599_v43 = vmul.f32 %v7170_v18, %v9716_v37  ;;  %v10443_v18 = vpack.i.bf16 %v9526_v57, %v9504_v3 }
 0xb41   : > { %7171 = vrcp.f32 %v4560_v47 }
 0xb42   : > { %v4615_v28 = vpack.c.bf16 %v4599_v43, %v4599_v43  ;;  %7173 = vrcp.f32 %v4563_v8 }
 0xb43   : > { %7175 = vrcp.f32 %v4566_v35 }
 0xb44   : > { %6440 = vmatmul.msk.bf16.vlgmr.msrb.gmra.mxu3 %vm1363_vm0, %v4615_v28  ;;  %7177 = vrcp.f32 %v4572_v44  ;;  %v10445_v44 = vld [vmem:[#allocation42_spill] sm:$0xff] }
 0xb47   : > { %v4727_v34 = vpop.f32.mrf.mxu0  ;;  %v4746_v7 = vpop.f32.mrf.mxu1 }
 0xb48   : > { %v7172_v58 = vpop.eup %7171  ;;  %v6805_v2 = vpack.i.bf16 %v4746_v7, %v4725_v30  ;;  %v4940_v12 = vpop.permute.xlu2 %4939  ;;  %v10444_v34 = vpack.i.bf16 %v9562_v0, %v9568_v36  ;;  %v10447_v36 = vpack.i.bf16 %v9552_v52, %v9535_v49 }
 0xb49   : > { %v4602_v4 = vmul.f32 %v7172_v58, %v9725_v32  ;;  %v4945_v1 = vsel %vm1940_vm1, %v4940_v12, 0  ;;  %v7174_v37 = vpop.eup %7173 }
 0xb4a   : > { %6806 = vrot.lane.b32.xlu2 %v6805_v2, %s7524_s24  ;;  %4954 = vmatpush.bf16.msrb.mxu3 %v4945_v1  ;;  %v7176_v11 = vpop.eup %7175  ;;  %v4603_v59 = vmul.f32 %v7174_v37, %v9710_v21 }
 0xb4b   : > { %v4618_v45 = vpack.c.bf16 %v4602_v4, %v4602_v4  ;;  %v4604_v27 = vmul.f32 %v7176_v11, %v9682_v56  ;;  %v7178_v35 = vpop.eup %7177  ;;  %v10432_v56 = vld [vmem:[#allocation53_spill] sm:$0xff] }
 0xb4c   : > { %v4619_v24 = vpack.c.bf16 %v4603_v59, %v4603_v59  ;;  %v4606_v21 = vmul.f32 %v7178_v35, %v9718_v5  ;;  %v10433_v19 = vpack.i.bf16 %v9104_v62, %v10432_v56  ;;  %v10439_v5 = vpack.i.bf16 %v10437_v50, %v10438_v6  ;;  %v10446_v4 = vld [vmem:[#allocation41_spill] sm:$0xff] }
 0xb4d   : > { %6443 = vmatmul.msk.bf16.vlgmr.msrb.gmra.mxu2 %vm1363_vm0, %v4618_v45  ;;  %v4620_v39 = vpack.c.bf16 %v4604_v27, %v4604_v27  ;;  %v10442_v62 = vpack.i.bf16 %v10440_v33, %v10441_v14  ;;  %v10448_v27 = vpack.i.bf16 %v9586_v41, %v9572_v10  ;;  %v10450_v14 = vld [vmem:[#allocation43_spill] sm:$0xff] }
 0xb4e   : > { %v4919_v55 = vpop.permute.xlu0 %4918  ;;  %v4622_v48 = vpack.c.bf16 %v4606_v21, %v4606_v21 }
 0xb4f   : > { %v4748_v46 = vpop.f32.mrf.mxu1  ;;  %v4924_v32 = vsel %vm1940_vm1, %v4919_v55, 0 }
 0xb50   : > { %4933 = vmatpush.bf16.msra.mxu2 %v4924_v32  ;;  %v4877_v51 = vpop.permute.xlu1 %4876  ;;  %v6772_v58 = vpop.permute.xlu2 %6771 }
 0xb51   : > { %v4882_v15 = vsel %vm1940_vm1, %v4877_v51, 0  ;;  %v6774_v3 = vunpack.i.h.bf16 %v6772_v58  ;;  %v6773_v57 = vunpack.i.l.bf16 %v6772_v58 }
 0xb52   : > { %6816 = vrot.lane.b32.xlu2 %v10431_v20, %s7523_s30  ;;  %4891 = vmatpush.bf16.msra.mxu0 %v4882_v15 }
 0xb54   : > { %6444 = vmatmul.msk.bf16.vlgmr.msra.gmra.mxu3 %vm1363_vm0, %v4619_v24 }
 0xb55   : > { %6445 = vmatmul.msk.bf16.vlgmr.msra.gmra.mxu0 %vm1363_vm0, %v4620_v39 }
 0xb56   : > { %5257 = vmatpush.bf16.msrb.mxu0 %v6560_v25  ;;  %v6767_v28 = vpop.permute.xlu0 %6766 }
 0xb57   : > { %v6768_v7 = vunpack.i.l.bf16 %v6767_v28 }
 0xb58   : > { %v6782_v29 = vpop.permute.xlu2 %6781 }
 0xb59   : > { %v5152_v12 = vsel %vm1363_vm0, %v10446_v4, %v6768_v7 }
 0xb5a   : > { %6826 = vrot.lane.b32.xlu2 %v10433_v19, %s7522_s26  ;;  %5258 = vmatpush.bf16.msrb.mxu0 %v6559_v42  ;;  %v5169_v11 = vsel %vm5168_vm2, %v5152_v12, %v6773_v57 }
 0xb5d   : > { %6447 = vmatmul.msk.bf16.vlgmr.msra.gmra.mxu2 %vm1363_vm0, %v4622_v48 }
 0xb62   : > { %6841 = vrot.lane.b32.xlu2 %v10436_v60, %s7522_s26  ;;  %v6784_v60 = vunpack.i.h.bf16 %v6782_v29 }
 0xb66   : > { %v4809_v26 = vpop.f32.mrf.mxu0 }
 0xb6a   : > { %6856 = vrot.lane.b32.xlu2 %v10439_v5, %s7522_s26 }
 0xb6e   : > { %v4811_v40 = vpop.f32.mrf.mxu0 }
 0xb6f   : > { %v10449_v40 = vld [vmem:[#allocation44_spill] sm:$0xff] }
 0xb70   : > { %v5155_v33 = vsel %vm1363_vm0, %v10449_v40, %v6784_v60 }
 0xb72   : > { %6871 = vrot.lane.b32.xlu2 %v10442_v62, %s7522_s26  ;;  %s7443_s26 = scalar_lea.hbm %s10487_s17, 128 }
 0xb74   : > { %v4683_v13 = vpop.f32.mrf.mxu2 }
 0xb7b   : > { %v4575_v22 = vpop.xlane.xlu1 %4574 }
 0xb7c   : > { %7179 = vrcp.f32 %v4575_v22  ;;  %v4685_v23 = vpop.f32.mrf.mxu2  ;;  %v4704_v54 = vpop.f32.mrf.mxu3 }
 0xb7d   : > { %v6790_v38 = vpack.i.bf16 %v4704_v54, %v4683_v13 }
 0xb7f   : > { %6791 = vrot.lane.b32.xlu1 %v6790_v38, %s7524_s24  ;;  %v6797_v38 = vpop.permute.xlu2 %6796 }
 0xb82   : > { %v7180_v9 = vpop.eup %7179  ;;  %v4830_v63 = vpop.f32.mrf.mxu1 }
 0xb83   : > { %v4607_v16 = vmul.f32 %v7180_v9, %v9764_v17  ;;  %v6835_v61 = vpack.i.bf16 %v4830_v63, %v4809_v26  ;;  %v6769_v17 = vunpack.i.h.bf16 %v6767_v28  ;;  %v6783_v26 = vunpack.i.l.bf16 %v6782_v29 }
 0xb84   : > { %v4767_v8 = vpop.f32.mrf.mxu2  ;;  %v4706_v30 = vpop.f32.mrf.mxu3 }
 0xb85   : > { %v4623_v53 = vpack.c.bf16 %v4607_v16, %v4607_v16  ;;  %v5153_v2 = vsel %vm1363_vm0, %v10445_v44, %v6769_v17  ;;  %v5154_v62 = vsel %vm1363_vm0, %v10450_v14, %v6783_v26  ;;  %v6799_v16 = vunpack.i.h.bf16 %v6797_v38 }
 0xb86   : > { %v5170_v0 = vsel %vm5168_vm2, %v5153_v2, %v6774_v3 }
 0xb87   : > { %6448 = vmatmul.msk.bf16.vlgmr.msrb.gmra.mxu3 %vm1363_vm0, %v4623_v53  ;;  %6831 = vrot.lane.b32.xlu1 %v10443_v18, %s7523_s30  ;;  %v10451_v18 = vld [vmem:[#allocation45_spill] sm:$0xff] }
 0xb8a   : > { %v4832_v47 = vpop.f32.mrf.mxu1 }
 0xb8b   : > { %v5157_v47 = vsel %vm1363_vm0, %v10451_v18, %v6799_v16 }
 0xb8c   : > { %v4769_v43 = vpop.f32.mrf.mxu2 }
 0xb8d   : > { %v10452_v43 = vld [vmem:[#allocation46_spill] sm:$0xff] }
 0xb8f   : > { %6846 = vrot.lane.b32.xlu1 %v10444_v34, %s7523_s30 }
 0xb96   : > { %v6777_v1 = vpop.permute.xlu0 %6776 }
 0xb97   : > { %v6779_v45 = vunpack.i.h.bf16 %v6777_v1  ;;  %v6778_v37 = vunpack.i.l.bf16 %v6777_v1  ;;  %6861 = vrot.lane.b32.xlu1 %v10447_v36, %s7523_s30  ;;  %v9875_v1 = vld [vmem:[%s10321_s8] ss:$0 sm:$0xff] }
 0xb99   : > { %v5187_v46 = vsel %vm5185_vm3, %v5170_v0, %v6779_v45  ;;  %v5186_v59 = vsel %vm5185_vm3, %v5169_v11, %v6778_v37  ;;  %v10453_v37 = vld [vmem:[#allocation21_spill] sm:$0xff] }
 0xb9a   : > { %v5202_v55 = vpack.c.bf16 %v5187_v46, %v5186_v59  ;;  %v10454_v46 = vld [vmem:[#allocation22_spill] sm:$0xff] }
 0xb9c   : > { %6457 = vmatmul.msk.bf16.vlgmr.msrb.gmra.mxu0 %vm5226_vm4, %v5202_v55 }
 0xb9e   : > { %v6787_v31 = vpop.permute.xlu0 %6786 }
 0xb9f   : > { %6876 = vrot.lane.b32.xlu1 %v10448_v27, %s7523_s30  ;;  %v6789_v50 = vunpack.i.h.bf16 %v6787_v31  ;;  %v6788_v6 = vunpack.i.l.bf16 %v6787_v31  ;;  %s10486_s30 = sld [smem:[#allocation67_spill]] }
 0xba1   : > { %v5172_v42 = vsel %vm5168_vm2, %v5155_v33, %v6789_v50  ;;  %v5171_v22 = vsel %vm5168_vm2, %v5154_v62, %v6788_v6 }
 0xba4   : > { %v6807_v30 = vpop.permute.xlu2 %6806 }
 0xba5   : > { %v6809_v7 = vunpack.i.h.bf16 %v6807_v30  ;;  %v6808_v58 = vunpack.i.l.bf16 %v6807_v30 }
 0xba6   : > { %v6802_v63 = vpop.permute.xlu0 %6801 }
 0xba7   : > { %v6803_v53 = vunpack.i.l.bf16 %v6802_v63 }
 0xbb4   : > { %v4914_v32 = vpop.f32.mrf.mxu1 }
 0xbbc   : > { %v4916_v20 = vpop.f32.mrf.mxu1 }
 0xbc7   : > { %v4788_v51 = vpop.f32.mrf.mxu3 }
 0xbc8   : > { %v6820_v15 = vpack.i.bf16 %v4788_v51, %v4767_v8  ;;  %v6804_v8 = vunpack.i.h.bf16 %v6802_v63 }
 0xbca   : > { %6821 = vrot.lane.b32.xlu0 %v6820_v15, %s7524_s24  ;;  %v5174_v34 = vsel %vm5168_vm2, %v5157_v47, %v6804_v8 }
 0xbcb   : > { %v5191_v2 = vsel %vm5185_vm3, %v5174_v34, %v6809_v7  ;;  %v10459_v7 = vld [vmem:[#allocation51_spill] sm:$0xff] }
 0xbcf   : > { %v4790_v52 = vpop.f32.mrf.mxu3 }
 0xbd0   : > { %v4851_v49 = vpop.f32.mrf.mxu2  ;;  %v10455_v52 = vld [vmem:[#allocation49_spill] sm:$0xff] }
 0xbd2   : > { %6836 = vrot.lane.b32.xlu0 %v6835_v61, %s7524_s24  ;;  %v4893_v35 = vpop.f32.mrf.mxu0  ;;  %v6798_v61 = vunpack.i.l.bf16 %v6797_v38 }
 0xbd3   : > { %v6865_v41 = vpack.i.bf16 %v4914_v32, %v4893_v35  ;;  %v6812_v32 = vpop.permute.xlu0 %6811 }
 0xbd4   : > { %v5156_v28 = vsel %vm1363_vm0, %v10452_v43, %v6798_v61  ;;  %v6814_v51 = vunpack.i.h.bf16 %v6812_v32  ;;  %v6813_v15 = vunpack.i.l.bf16 %v6812_v32 }
 0xbd5   : > { %v5173_v17 = vsel %vm5168_vm2, %v5156_v28, %v6803_v53 }
 0xbd6   : > { %v5190_v44 = vsel %vm5185_vm3, %v5173_v17, %v6808_v58  ;;  %v5159_v35 = vsel %vm1363_vm0, %v10455_v52, %v6814_v51  ;;  %v10462_v52 = vld [vmem:[#allocation52_spill] sm:$0xff] }
 0xbd7   : > { %v4872_v39 = vpop.f32.mrf.mxu3  ;;  %v5204_v4 = vpack.c.bf16 %v5191_v2, %v5190_v44  ;;  %v10460_v44 = vld [vmem:[#allocation38_spill] sm:$0xff] }
 0xbd8   : > { %v4853_v24 = vpop.f32.mrf.mxu2  ;;  %v6850_v21 = vpack.i.bf16 %v4872_v39, %v4851_v49  ;;  %v6817_v49 = vpop.permute.xlu2 %6816 }
 0xbd9   : > { %v10456_v24 = vld [vmem:[#allocation47_spill] sm:$0xff] }
 0xbda   : > { %6851 = vrot.lane.b32.xlu0 %v6850_v21, %s7524_s24  ;;  %v4895_v56 = vpop.f32.mrf.mxu0  ;;  %v5158_v39 = vsel %vm1363_vm0, %v10456_v24, %v6813_v15  ;;  %v6819_v21 = vunpack.i.h.bf16 %v6817_v49  ;;  %v10461_v15 = vld [vmem:[#allocation37_spill] sm:$0xff] }
 0xbdb   : > { %v6818_v56 = vunpack.i.l.bf16 %v6817_v49 }
 0xbdc   : > { %v5176_v29 = vsel %vm5168_vm2, %v5159_v35, %v6819_v21 }
 0xbdf   : > { %v4874_v10 = vpop.f32.mrf.mxu3 }
 0xbe0   : > { %v4935_v19 = vpop.f32.mrf.mxu2  ;;  %v6827_v50 = vpop.permute.xlu2 %6826 }
 0xbe1   : > { %v6829_v40 = vunpack.i.h.bf16 %v6827_v50  ;;  %v6828_v33 = vunpack.i.l.bf16 %v6827_v50 }
 0xbe2   : > { %6866 = vrot.lane.b32.xlu0 %v6865_v41, %s7524_s24 }
 0xbe8   : > { %v4937_v48 = vpop.f32.mrf.mxu2  ;;  %v6842_v8 = vpop.permute.xlu2 %6841 }
 0xbe9   : > { %v5175_v48 = vsel %vm5168_vm2, %v5158_v39, %v6818_v56  ;;  %v6844_v18 = vunpack.i.h.bf16 %v6842_v8  ;;  %v6843_v47 = vunpack.i.l.bf16 %v6842_v8 }
 0xbeb   : > { %v5163_v58 = vsel %vm1363_vm0, %v10459_v7, %v6844_v18  ;;  %v5162_v2 = vsel %vm1363_vm0, %v10460_v44, %v6843_v47  ;;  %v10467_v47 = vld [vmem:[#allocation25_spill] sm:$0xff]  ;;  %v10468_v7 = vld [vmem:[#allocation26_spill] sm:$0xff]  ;;  %v6568_v44 = vld [vmem:[#allocation11 + $0x38] sm:$0xff] }
 0xbec   : > { %5820 = vmatpush.bf16.msra.mxu1 %v6568_v44  ;;  %6625 = vmatpush.bf16.msra.mxu3 %v6568_v44 }
 0xbf1   : > { %v6792_v5 = vpop.permute.xlu1 %6791 }
 0xbf2   : > { %v6794_v25 = vunpack.i.h.bf16 %v6792_v5  ;;  %v6793_v13 = vunpack.i.l.bf16 %v6792_v5 }
 0xbf4   : > { %v5189_v23 = vsel %vm5185_vm3, %v5172_v42, %v6794_v25  ;;  %v5188_v54 = vsel %vm5185_vm3, %v5171_v22, %v6793_v13  ;;  %v10457_v42 = vld [vmem:[#allocation50_spill] sm:$0xff] }
 0xbf5   : > { %v5203_v9 = vpack.c.bf16 %v5189_v23, %v5188_v54  ;;  %v5161_v22 = vsel %vm1363_vm0, %v10457_v42, %v6829_v40  ;;  %v10458_v23 = vld [vmem:[#allocation48_spill] sm:$0xff] }
 0xbf6   : > { %v5160_v54 = vsel %vm1363_vm0, %v10458_v23, %v6828_v33 }
 0xbf7   : > { %6458 = vmatmul.msk.bf16.gmra.mxu0 %vm5226_vm4, %v5203_v9 }
 0xbf9   : > { %v6832_v6 = vpop.permute.xlu1 %6831 }
 0xbfa   : > { %v6834_v14 = vunpack.i.h.bf16 %v6832_v6  ;;  %v6833_v62 = vunpack.i.l.bf16 %v6832_v6 }
 0xbfc   : > { %v5178_v38 = vsel %vm5168_vm2, %v5161_v22, %v6834_v14  ;;  %v5177_v9 = vsel %vm5168_vm2, %v5160_v54, %v6833_v62  ;;  %v10464_v14 = vld [vmem:[#allocation24_spill] sm:$0xff]  ;;  %v10466_v22 = vld [vmem:[#allocation39_spill] sm:$0xff] }
 0xc01   : > { %v6847_v53 = vpop.permute.xlu1 %6846 }
 0xc02   : > { %v6849_v43 = vunpack.i.h.bf16 %v6847_v53  ;;  %v6848_v28 = vunpack.i.l.bf16 %v6847_v53 }
 0xc07   : > { %6459 = vmatmul.msk.bf16.gmra.mxu0 %vm5226_vm4, %v5204_v4  ;;  %v5180_v4 = vsel %vm5168_vm2, %v5163_v58, %v6849_v43 }
 0xc0a   : > { %v4956_v12 = vpop.f32.mrf.mxu3 }
 0xc0b   : > { %v6880_v3 = vpack.i.bf16 %v4956_v12, %v4935_v19  ;;  %v5179_v12 = vsel %vm5168_vm2, %v5162_v2, %v6848_v28 }
 0xc0d   : > { %6881 = vrot.lane.b32.xlu0 %v6880_v3, %s7524_s24  ;;  %s10230_s24 = scalar_lea.vmem [#allocation14], %s6217_s13  ;;  %s6577_s13 = sshll.u32 %s7630_s25, 6 }
 0xc0e   : > { %s6070_s27 = scalar_lea.hbm %s10487_s17, %s6577_s13  ;;  %s6071_s25 = sshll.u32 %s10230_s24, 4  ;;  %s6072_s25 = int_to_ptr.vmem [resolvable:$true] %s6071_s25 }
 0xc0f   : > { %s6073_s15 = sshll.u32 %s6070_s27, 4  ;;  %s6074_s15 = int_to_ptr.hbm [resolvable:$true] %s6073_s15 }
 0xc10   : > { %s7437_s5 = sshra.s32 %s6074_s15, 4  ;;  %s7438_s5 = int_to_ptr.hbm [resolvable:$true] %s7437_s5 }
 0xc11   : > { %s7439_s2 = scalar_lea.hbm %s7438_s5, 64  ;;  %p7444_p12 = scmp.lt.s32.totalorder %s7438_s5, %s10487_s17 }
 0xc12   : > { %v4958_v57 = vpop.f32.mrf.mxu3  ;;  %p7440_p1 = scmp.ne.s32.totalorder %s7438_s5, %s7439_s2  ;;  %p7445_p7 = scmp.lt.s32.totalorder %s7443_s26, %s7439_s2 }
 0xc14   : > { %p7441_p3 = pnand %p7440_p1, %p7718_p4  ;;  %p7446_p8 = por %p7445_p7, %p7444_p12 }
 0xc16   : > { %p7442_p5 = pneg %p7441_p3 }
 0xc18   : > { %p7447_p9 = pnand %p7446_p8, %p7442_p5 }
 0xc19   : > { %v5260_v45 = vpop.f32.mrf.mxu0 }
 0xc1a   : > { %v5300_v11 = vadd.f32 %v5260_v45, %v10453_v37  ;;  %v6857_v37 = vpop.permute.xlu2 %6856 }
 0xc1c   : > { %v9879_v0 = vadd.f32 %v9875_v1, %v5300_v11  ;;  %v6862_v11 = vpop.permute.xlu1 %6861 }
 0xc1d   : > { %v6863_v32 = vunpack.i.l.bf16 %v6862_v11 }
 0xc1e   : > { %5338 = vadd.xlane.f32.xlu2 %v9879_v0  ;;  %v5370_v20 = vmul.f32 %v9879_v0, %v9879_v0 }
 0xc21   : > { %v5262_v36 = vpop.f32.mrf.mxu0 }
 0xc22   : > { %v5301_v59 = vadd.f32 %v5262_v36, %v10454_v46  ;;  %v6859_v46 = vunpack.i.h.bf16 %v6857_v37 }
 0xc24   : > { %v9884_v55 = vadd.f32 %v9875_v1, %v5301_v59  ;;  %v6858_v59 = vunpack.i.l.bf16 %v6857_v37  ;;  %v5165_v49 = vsel %vm1363_vm0, %v10461_v15, %v6859_v46  ;;  %v6563_v15 = vld [vmem:[#allocation11 + $0x10] sm:$0xff] }
 0xc26   : > { %5340 = vadd.xlane.f32.xlu1 %v9884_v55  ;;  %v5371_v27 = vmul.f32 %v9884_v55, %v9884_v55  ;;  %v5164_v35 = vsel %vm1363_vm0, %v10462_v52, %v6858_v59 }
 0xc27   : > { %v5181_v39 = vsel %vm5168_vm2, %v5164_v35, %v6863_v32  ;;  %v6564_v32 = vld [vmem:[#allocation11 + $0x18] sm:$0xff] }
 0xc28   : > { %5388 = vadd.xlane.f32.xlu2 %v5371_v27  ;;  %v6864_v27 = vunpack.i.h.bf16 %v6862_v11  ;;  %v6565_v11 = vld [vmem:[#allocation11 + $0x20] sm:$0xff] }
 0xc2a   : > { %v5182_v24 = vsel %vm5168_vm2, %v5165_v49, %v6864_v27  ;;  %v6562_v49 = vld [vmem:[#allocation11 + $0x8] sm:$0xff] }
 0xc37   : > { %5386 = vadd.xlane.f32.xlu0 %v5370_v20 }
 0xc3c   : > { %v6822_v19 = vpop.permute.xlu0 %6821 }
 0xc3d   : > { %v6824_v10 = vunpack.i.h.bf16 %v6822_v19  ;;  %v6823_v41 = vunpack.i.l.bf16 %v6822_v19 }
 0xc3f   : > { %v5193_v31 = vsel %vm5185_vm3, %v5176_v29, %v6824_v10  ;;  %v5192_v60 = vsel %vm5185_vm3, %v5175_v48, %v6823_v41  ;;  %v10463_v41 = vld [vmem:[#allocation23_spill] sm:$0xff]  ;;  %v6872_v29 = vpop.permute.xlu2 %6871 }
 0xc40   : > { %v5205_v26 = vpack.c.bf16 %v5193_v31, %v5192_v60  ;;  %v6877_v60 = vpop.permute.xlu1 %6876  ;;  %v6874_v50 = vunpack.i.h.bf16 %v6872_v29  ;;  %v6873_v6 = vunpack.i.l.bf16 %v6872_v29 }
 0xc41   : > { %v6878_v40 = vunpack.i.l.bf16 %v6877_v60 }
 0xc42   : > { %6460 = vmatmul.msk.bf16.gmra.mxu0 %vm5226_vm4, %v5205_v26  ;;  %v5166_v23 = vsel %vm1363_vm0, %v10466_v22, %v6873_v6 }
 0xc44   : > { %v6837_v5 = vpop.permute.xlu0 %6836 }
 0xc45   : > { %v6839_v25 = vunpack.i.h.bf16 %v6837_v5  ;;  %v6838_v13 = vunpack.i.l.bf16 %v6837_v5  ;;  %v6879_v5 = vunpack.i.h.bf16 %v6877_v60 }
 0xc47   : > { %v5194_v63 = vsel %vm5185_vm3, %v5177_v9, %v6838_v13  ;;  %v5195_v16 = vsel %vm5185_vm3, %v5178_v38, %v6839_v25  ;;  %v10465_v25 = vld [vmem:[#allocation40_spill] sm:$0xff] }
 0xc48   : > { %v5206_v61 = vpack.c.bf16 %v5195_v16, %v5194_v63  ;;  %v5167_v13 = vsel %vm1363_vm0, %v10465_v25, %v6874_v50  ;;  %v5183_v16 = vsel %vm5168_vm2, %v5166_v23, %v6878_v40  ;;  %v9969_v23 = vld [vmem:[%s10322_s9] ss:$0 sm:$0xff] }
 0xc49   : > { %v5184_v63 = vsel %vm5168_vm2, %v5167_v13, %v6879_v5 }
 0xc4c   : > { %v6852_v30 = vpop.permute.xlu0 %6851 }
 0xc4d   : > { %v6854_v34 = vunpack.i.h.bf16 %v6852_v30  ;;  %v6853_v17 = vunpack.i.l.bf16 %v6852_v30 }
 0xc4f   : > { %v5196_v3 = vsel %vm5185_vm3, %v5179_v12, %v6853_v17  ;;  %v5197_v57 = vsel %vm5185_vm3, %v5180_v4, %v6854_v34  ;;  %v6567_v12 = vld [vmem:[#allocation11 + $0x30] sm:$0xff] }
 0xc50   : > { %v5207_v45 = vpack.c.bf16 %v5197_v57, %v5196_v3  ;;  %5821 = vmatpush.bf16.msra.mxu1 %v6567_v12  ;;  %6626 = vmatpush.bf16.msra.mxu3 %v6567_v12  ;;  %v6566_v57 = vld [vmem:[#allocation11 + $0x28] sm:$0xff] }
 0xc52   : > { %6461 = vmatmul.msk.bf16.gmra.mxu0 %vm5226_vm4, %v5206_v61 }
 0xc54   : > { %v6867_v36 = vpop.permute.xlu0 %6866  ;;  %5822 = vmatpush.bf16.msra.mxu1 %v6566_v57  ;;  %6627 = vmatpush.bf16.msra.mxu3 %v6566_v57  ;;  %v10471_v57 = vld [vmem:[#allocation29_spill] sm:$0xff] }
 0xc55   : > { %v6869_v20 = vunpack.i.h.bf16 %v6867_v36  ;;  %v6868_v51 = vunpack.i.l.bf16 %v6867_v36 }
 0xc57   : > { %v5198_v21 = vsel %vm5185_vm3, %v5181_v39, %v6868_v51  ;;  %v5199_v56 = vsel %vm5185_vm3, %v5182_v24, %v6869_v20  ;;  %v6561_v39 = vld [vmem:[#allocation11] sm:$0xff] }
 0xc58   : > { %v5208_v19 = vpack.c.bf16 %v5199_v56, %v5198_v21  ;;  %5823 = vmatpush.bf16.msra.mxu1 %v6565_v11  ;;  %6628 = vmatpush.bf16.msra.mxu3 %v6565_v11 }
 0xc5c   : > { %5824 = vmatpush.bf16.msra.mxu1 %v6564_v32  ;;  %6629 = vmatpush.bf16.msra.mxu3 %v6564_v32 }
 0xc60   : > { %5825 = vmatpush.bf16.msra.mxu1 %v6563_v15  ;;  %6630 = vmatpush.bf16.msra.mxu3 %v6563_v15 }
 0xc62   : > { %6462 = vmatmul.msk.bf16.gmra.mxu0 %vm5226_vm4, %v5207_v45 }
 0xc64   : > { %5826 = vmatpush.bf16.msra.mxu1 %v6562_v49  ;;  %6631 = vmatpush.bf16.msra.mxu3 %v6562_v49 }
 0xc68   : > { %5827 = vmatpush.bf16.msra.mxu1 %v6561_v39  ;;  %6632 = vmatpush.bf16.msra.mxu3 %v6561_v39  ;;  %v10473_v39 = vld [vmem:[#allocation33_spill] sm:$0xff] }
 0xc72   : > { %6463 = vmatmul.msk.bf16.gmra.mxu0 %vm5226_vm4, %v5208_v19 }
 0xc74   : > { %v5265_v10 = vpop.f32.mrf.mxu0 }
 0xc75   : > { %v5302_v48 = vadd.f32 %v5265_v10, %v10463_v41 }
 0xc77   : > { %v9929_v31 = vadd.f32 %v9875_v1, %v5302_v48 }
 0xc79   : > { %5342 = vadd.xlane.f32.xlu1 %v9929_v31  ;;  %v5372_v26 = vmul.f32 %v9929_v31, %v9929_v31 }
 0xc7b   : > { %5390 = vadd.xlane.f32.xlu2 %v5372_v26 }
 0xc7c   : > { %v5267_v33 = vpop.f32.mrf.mxu0 }
 0xc7d   : > { %v5303_v62 = vadd.f32 %v5267_v33, %v10464_v14 }
 0xc7f   : > { %v6882_v42 = vpop.permute.xlu0 %6881  ;;  %v9940_v54 = vadd.f32 %v9875_v1, %v5303_v62 }
 0xc80   : > { %v6884_v38 = vunpack.i.h.bf16 %v6882_v42  ;;  %v6883_v9 = vunpack.i.l.bf16 %v6882_v42  ;;  %v10469_v42 = vld [vmem:[#allocation27_spill] sm:$0xff] }
 0xc81   : > { %5344 = vadd.xlane.f32.xlu0 %v9940_v54  ;;  %v5373_v53 = vmul.f32 %v9940_v54, %v9940_v54 }
 0xc82   : > { %v5200_v61 = vsel %vm5185_vm3, %v5183_v16, %v6883_v9  ;;  %v5201_v8 = vsel %vm5185_vm3, %v5184_v63, %v6884_v38 }
 0xc83   : > { %v5209_v30 = vpack.c.bf16 %v5201_v8, %v5200_v61  ;;  %5392 = vadd.xlane.f32.xlu1 %v5373_v53 }
 0xc84   : > { %v5270_v18 = vpop.f32.mrf.mxu0 }
 0xc85   : > { %6464 = vmatmul.msk.bf16.gmra.mxu0 %vm5226_vm4, %v5209_v30  ;;  %v5304_v43 = vadd.f32 %v5270_v18, %v10467_v47  ;;  %v9982_v18 = vld [vmem:[%s10323_s10] ss:$0 sm:$0xff] }
 0xc87   : > { %v9952_v28 = vadd.f32 %v9875_v1, %v5304_v43 }
 0xc89   : > { %5346 = vadd.xlane.f32.xlu0 %v9952_v28  ;;  %v5374_v34 = vmul.f32 %v9952_v28, %v9952_v28 }
 0xc8b   : > { %5394 = vadd.xlane.f32.xlu1 %v5374_v34  ;;  %v10470_v34 = vld [vmem:[#allocation28_spill] sm:$0xff] }
 0xc8c   : > { %v5272_v17 = vpop.f32.mrf.mxu0 }
 0xc8d   : > { %v5305_v58 = vadd.f32 %v5272_v17, %v10468_v7 }
 0xc8f   : > { %v9959_v2 = vadd.f32 %v9875_v1, %v5305_v58 }
 0xc91   : > { %5348 = vadd.xlane.f32.xlu2 %v9959_v2  ;;  %v5375_v4 = vmul.f32 %v9959_v2, %v9959_v2  ;;  %v5339_v3 = vpop.xlane.xlu2 %5338 }
 0xc92   : > { %v5418_v52 = vmul.f32 0.03125, %v5339_v3 }
 0xc93   : > { %5396 = vadd.xlane.f32.xlu0 %v5375_v4 }
 0xc94   : > { %v5450_v21 = vmul.f32 %v5418_v52, %v5418_v52  ;;  %v5498_v16 = vsub.f32 %v9879_v0, %v5418_v52 }
 0xc99   : > { %v5341_v45 = vpop.xlane.xlu1 %5340 }
 0xc9a   : > { %v5419_v37 = vmul.f32 0.03125, %v5341_v45 }
 0xc9b   : > { %v5389_v36 = vpop.xlane.xlu2 %5388 }
 0xc9c   : > { %v5451_v46 = vmul.f32 %v5419_v37, %v5419_v37  ;;  %v5435_v59 = vmul.f32 0.03125, %v5389_v36  ;;  %v5499_v62 = vsub.f32 %v9884_v55, %v5419_v37 }
 0xc9e   : > { %v5467_v27 = vsub.f32 %v5435_v59, %v5451_v46  ;;  %v10472_v46 = vld [vmem:[#allocation30_spill] sm:$0xff] }
 0xca0   : > { %v5483_v20 = vmax.f32 %v5467_v27, 0.0 }
 0xca2   : > { %v5515_v51 = vadd.f32 1e-06, %v5483_v20 }
 0xca4   : > { %7181 = vrsqrt.f32 %v5515_v51  ;;  %vm5546_vm6 = vweird.f32 %v5515_v51 }
 0xcaa   : > { %v7182_v35 = vpop.eup %7181  ;;  %v5387_v24 = vpop.xlane.xlu0 %5386 }
 0xcab   : > { %v5541_v56 = vmul.f32 %v7182_v35, %v5515_v51  ;;  %v5434_v19 = vmul.f32 0.03125, %v5387_v24  ;;  %vm5547_vm5 = vweird.f32 %v7182_v35 }
 0xcac   : > { %vm5548_vm7 = vmor %vm5546_vm6, %vm5547_vm5 }
 0xcad   : > { %v5466_v10 = vsub.f32 %v5434_v19, %v5450_v21  ;;  %v5542_v41 = vmul.f32 %v7182_v35, %v5541_v56 }
 0xcaf   : > { %v5482_v48 = vmax.f32 %v5466_v10, 0.0  ;;  %v5543_v60 = vmul.f32 0.5, %v5542_v41 }
 0xcb1   : > { %v5514_v29 = vadd.f32 1e-06, %v5482_v48  ;;  %v5544_v26 = vsub.f32 1.5, %v5543_v60 }
 0xcb3   : > { %7183 = vrsqrt.f32 %v5514_v29  ;;  %v5545_v6 = vmul.f32 %v7182_v35, %v5544_v26  ;;  %vm5536_vm9 = vweird.f32 %v5514_v29 }
 0xcb5   : > { %v5549_v33 = vsel %vm5548_vm7, %v7182_v35, %v5545_v6 }
 0xcb6   : > { %v5691_v38 = vmul.f32 %v5549_v33, %v5499_v62 }
 0xcb8   : > { %v5710_v53 = vmul.f32 %v9969_v23, %v5691_v38 }
 0xcb9   : > { %v7184_v50 = vpop.eup %7183 }
 0xcba   : > { %v5531_v5 = vmul.f32 %v7184_v50, %v5514_v29  ;;  %vm5537_vm8 = vweird.f32 %v7184_v50  ;;  %v5729_v58 = vadd.f32 %v9982_v18, %v5710_v53 }
 0xcbb   : > { %vm5538_vm10 = vmor %vm5536_vm9, %vm5537_vm8 }
 0xcbc   : > { %v5532_v40 = vmul.f32 %v7184_v50, %v5531_v5 }
 0xcbe   : > { %v5533_v14 = vmul.f32 0.5, %v5532_v40  ;;  %v10474_v40 = vld [vmem:[#allocation34_spill] sm:$0xff] }
 0xcbf   : > { %v5275_v25 = vpop.f32.mrf.mxu0 }
 0xcc0   : > { %v5534_v13 = vsub.f32 1.5, %v5533_v14  ;;  %v5306_v22 = vadd.f32 %v5275_v25, %v10469_v42 }
 0xcc2   : > { %v5535_v9 = vmul.f32 %v7184_v50, %v5534_v13  ;;  %v9972_v63 = vadd.f32 %v9875_v1, %v5306_v22 }
 0xcc4   : > { %v5539_v61 = vsel %vm5538_vm10, %v7184_v50, %v5535_v9  ;;  %5350 = vadd.xlane.f32.xlu2 %v9972_v63  ;;  %v5376_v8 = vmul.f32 %v9972_v63, %v9972_v63 }
 0xcc5   : > { %v5690_v30 = vmul.f32 %v5539_v61, %v5498_v16 }
 0xcc6   : > { %5398 = vadd.xlane.f32.xlu0 %v5376_v8 }
 0xcc7   : > { %v5709_v47 = vmul.f32 %v9969_v23, %v5690_v30  ;;  %v5277_v43 = vpop.f32.mrf.mxu0  ;;  %v10475_v30 = vld [vmem:[#allocation31_spill] sm:$0xff] }
 0xcc8   : > { %v5307_v17 = vadd.f32 %v5277_v43, %v10470_v34 }
 0xcc9   : > { %v5728_v7 = vadd.f32 %v9982_v18, %v5709_v47 }
 0xcca   : > { %v9989_v44 = vadd.f32 %v9875_v1, %v5307_v17 }
 0xccb   : > { %v5744_v4 = vpack.c.bf16 %v5729_v58, %v5728_v7  ;;  %v10476_v58 = vld [vmem:[#allocation35_spill] sm:$0xff] }
 0xccc   : > { %5352 = vadd.xlane.f32.xlu1 %v9989_v44  ;;  %v5377_v12 = vmul.f32 %v9989_v44, %v9989_v44 }
 0xccd   : > { %5828 = vmatmul.bf16.vlgmr.msra.gmra.mxu1 %v5744_v4 }
 0xcce   : > { %5400 = vadd.xlane.f32.xlu2 %v5377_v12 }
 0xccf   : > { %v5280_v3 = vpop.f32.mrf.mxu0 }
 0xcd0   : > { %v5308_v45 = vadd.f32 %v5280_v3, %v10471_v57 }
 0xcd2   : > { %v9996_v37 = vadd.f32 %v9875_v1, %v5308_v45 }
 0xcd4   : > { %5354 = vadd.xlane.f32.xlu0 %v9996_v37  ;;  %v5378_v11 = vmul.f32 %v9996_v37, %v9996_v37 }
 0xcd6   : > { %5402 = vadd.xlane.f32.xlu1 %v5378_v11 }
 0xcd7   : > { %v5282_v36 = vpop.f32.mrf.mxu0 }
 0xcd8   : > { %v5309_v59 = vadd.f32 %v5282_v36, %v10472_v46 }
 0xcda   : > { %v10003_v27 = vadd.f32 %v9875_v1, %v5309_v59 }
 0xcdc   : > { %5356 = vadd.xlane.f32.xlu2 %v10003_v27  ;;  %v5379_v12 = vmul.f32 %v10003_v27, %v10003_v27 }
 0xcdf   : > { %v5285_v32 = vpop.f32.mrf.mxu0 }
 0xce0   : > { %v5310_v47 = vadd.f32 %v5285_v32, %v10475_v30 }
 0xce2   : > { %v10039_v57 = vadd.f32 %v9875_v1, %v5310_v47 }
 0xce7   : > { %v10006_v20 = vpop.f32.mrf.mxu0 }
 0xcec   : > { %v5343_v51 = vpop.xlane.xlu1 %5342 }
 0xced   : > { %v10008_v15 = vmul.f32 0.03125, %v5343_v51 }
 0xcee   : > { %v5391_v49 = vpop.xlane.xlu2 %5390 }
 0xcef   : > { %v5290_v52 = vpop.f32.mrf.mxu0  ;;  %v5452_v35 = vmul.f32 %v10008_v15, %v10008_v15  ;;  %v5436_v24 = vmul.f32 0.03125, %v5391_v49 }
 0xcf0   : > { %v5312_v21 = vadd.f32 %v5290_v52, %v10473_v39 }
 0xcf1   : > { %v5468_v56 = vsub.f32 %v5436_v24, %v5452_v35 }
 0xcf2   : > { %v10014_v19 = vadd.f32 %v9875_v1, %v5312_v21 }
 0xcf3   : > { %v5484_v10 = vmax.f32 %v5468_v56, 0.0 }
 0xcf4   : > { %5362 = vadd.xlane.f32.xlu1 %v10014_v19  ;;  %v5382_v41 = vmul.f32 %v10014_v19, %v10014_v19  ;;  %v5345_v48 = vpop.xlane.xlu0 %5344 }
 0xcf5   : > { %v5516_v29 = vadd.f32 1e-06, %v5484_v10  ;;  %v10019_v60 = vmul.f32 0.03125, %v5345_v48 }
 0xcf6   : > { %5410 = vadd.xlane.f32.xlu2 %v5382_v41  ;;  %v5393_v26 = vpop.xlane.xlu1 %5392  ;;  %v10479_v41 = vld [vmem:[#allocation36_spill] sm:$0xff] }
 0xcf7   : > { %v5292_v50 = vpop.f32.mrf.mxu0  ;;  %7185 = vrsqrt.f32 %v5516_v29  ;;  %v5453_v6 = vmul.f32 %v10019_v60, %v10019_v60  ;;  %v5437_v5 = vmul.f32 0.03125, %v5393_v26  ;;  %vm5556_vm12 = vweird.f32 %v5516_v29 }
 0xcf8   : > { %v5313_v33 = vadd.f32 %v5292_v50, %v10474_v40 }
 0xcf9   : > { %v5469_v14 = vsub.f32 %v5437_v5, %v5453_v6  ;;  %v10480_v5 = vld [vmem:[#allocation32_spill] sm:$0xff] }
 0xcfa   : > { %v10025_v62 = vadd.f32 %v9875_v1, %v5313_v33  ;;  %v5311_v40 = vadd.f32 %v10006_v20, %v10480_v5 }
 0xcfb   : > { %v5485_v25 = vmax.f32 %v5469_v14, 0.0 }
 0xcfc   : > { %v5347_v13 = vpop.xlane.xlu0 %5346  ;;  %5364 = vadd.xlane.f32.xlu0 %v10025_v62  ;;  %v5383_v42 = vmul.f32 %v10025_v62, %v10025_v62 }
 0xcfd   : > { %v7186_v22 = vpop.eup %7185  ;;  %v10030_v38 = vmul.f32 0.03125, %v5347_v13  ;;  %v5517_v16 = vadd.f32 1e-06, %v5485_v25 }
 0xcfe   : > { %v5551_v9 = vmul.f32 %v7186_v22, %v5516_v29  ;;  %v5395_v61 = vpop.xlane.xlu1 %5394  ;;  %5412 = vadd.xlane.f32.xlu1 %v5383_v42  ;;  %vm5557_vm11 = vweird.f32 %v7186_v22  ;;  %v5500_v29 = vsub.f32 %v9929_v31, %v10008_v15  ;;  %v10074_v15 = vadd.f32 %v9875_v1, %v5311_v40  ;;  %v6572_v40 = vld [vmem:[#allocation13 + $0x18] sm:$0xff] }
 0xcff   : > { %v5454_v8 = vmul.f32 %v10030_v38, %v10030_v38  ;;  %v5438_v53 = vmul.f32 0.03125, %v5395_v61  ;;  %7187 = vrsqrt.f32 %v5517_v16  ;;  %vm10053_vm13 = vmor %vm5556_vm12, %vm5557_vm11  ;;  %vm5566_vm15 = vweird.f32 %v5517_v16 }
 0xd00   : > { %v5552_v43 = vmul.f32 %v7186_v22, %v5551_v9 }
 0xd01   : > { %v5470_v34 = vsub.f32 %v5438_v53, %v5454_v8  ;;  %v5501_v8 = vsub.f32 %v9940_v54, %v10019_v60 }
 0xd02   : > { %v5295_v17 = vpop.f32.mrf.mxu0  ;;  %v5553_v7 = vmul.f32 0.5, %v5552_v43 }
 0xd03   : > { %v5314_v4 = vadd.f32 %v5295_v17, %v10476_v58  ;;  %v5486_v3 = vmax.f32 %v5470_v34, 0.0 }
 0xd04   : > { %v5554_v45 = vsub.f32 1.5, %v5553_v7  ;;  %v5349_v36 = vpop.xlane.xlu2 %5348  ;;  %5404 = vadd.xlane.f32.xlu0 %v5379_v12 }
 0xd05   : > { %v10042_v11 = vadd.f32 %v9875_v1, %v5314_v4  ;;  %v10044_v46 = vadd.f32 1e-06, %v5486_v3  ;;  %v10046_v59 = vmul.f32 0.03125, %v5349_v36  ;;  %v7188_v32 = vpop.eup %7187  ;;  %v5380_v4 = vmul.f32 %v10039_v57, %v10039_v57 }
 0xd06   : > { %v5397_v51 = vpop.xlane.xlu0 %5396  ;;  %5358 = vadd.xlane.f32.xlu1 %v10039_v57  ;;  %v5555_v49 = vmul.f32 %v7186_v22, %v5554_v45  ;;  %v5561_v52 = vmul.f32 %v7188_v32, %v5517_v16  ;;  %vm5567_vm14 = vweird.f32 %v7188_v32  ;;  %v5381_v16 = vmul.f32 %v10074_v15, %v10074_v15 }
 0xd07   : > { %5366 = vadd.xlane.f32.xlu2 %v10042_v11  ;;  %7189 = vrsqrt.f32 %v10044_v46  ;;  %v5455_v35 = vmul.f32 %v10046_v59, %v10046_v59  ;;  %v5439_v24 = vmul.f32 0.03125, %v5397_v51  ;;  %v5384_v26 = vmul.f32 %v10042_v11, %v10042_v11  ;;  %vm5568_vm0 = vmor %vm5566_vm15, %vm5567_vm14 }
 0xd08   : > { %v5562_v39 = vmul.f32 %v7188_v32, %v5561_v52  ;;  %v5559_v6 = vsel %vm10053_vm13, %v7186_v22, %v5555_v49  ;;  %vm5576_vm2 = vweird.f32 %v10044_v46  ;;  %v5502_v52 = vsub.f32 %v9952_v28, %v10030_v38 }
 0xd09   : > { %v5471_v10 = vsub.f32 %v5439_v24, %v5455_v35  ;;  %v5692_v20 = vmul.f32 %v5559_v6, %v5500_v29  ;;  %v6575_v24 = vld [vmem:[#allocation13 + $0x30] sm:$0xff]  ;;  %v6570_v29 = vld [vmem:[#allocation13 + $0x8] sm:$0xff] }
 0xd0a   : > { %v5297_v21 = vpop.f32.mrf.mxu0  ;;  %v5563_v50 = vmul.f32 0.5, %v5562_v39 }
 0xd0b   : > { %v5315_v48 = vadd.f32 %v5297_v21, %v10479_v41  ;;  %v5487_v33 = vmax.f32 %v5471_v10, 0.0  ;;  %v5711_v34 = vmul.f32 %v9969_v23, %v5692_v20  ;;  %v6574_v10 = vld [vmem:[#allocation13 + $0x28] sm:$0xff] }
 0xd0c   : > { %5414 = vadd.xlane.f32.xlu0 %v5384_v26  ;;  %v5564_v13 = vsub.f32 1.5, %v5563_v50  ;;  %v6573_v26 = vld [vmem:[#allocation13 + $0x20] sm:$0xff] }
 0xd0d   : > { %v10067_v14 = vadd.f32 %v9875_v1, %v5315_v48  ;;  %v7190_v25 = vpop.eup %7189  ;;  %v5519_v9 = vadd.f32 1e-06, %v5487_v33  ;;  %v5730_v60 = vadd.f32 %v9982_v18, %v5711_v34  ;;  %v6569_v33 = vld [vmem:[#allocation13] sm:$0xff] }
 0xd0e   : > { %v5571_v42 = vmul.f32 %v7190_v25, %v10044_v46  ;;  %v5565_v61 = vmul.f32 %v7188_v32, %v5564_v13  ;;  %vm5577_vm1 = vweird.f32 %v7190_v25  ;;  %v5503_v46 = vsub.f32 %v9959_v2, %v10046_v59  ;;  %v6571_v59 = vld [vmem:[#allocation13 + $0x10] sm:$0xff] }
 0xd0f   : > { %5368 = vadd.xlane.f32.xlu1 %v10067_v14  ;;  %v5385_v22 = vmul.f32 %v10067_v14, %v10067_v14  ;;  %7191 = vrsqrt.f32 %v5519_v9  ;;  %vm5578_vm3 = vmor %vm5576_vm2, %vm5577_vm1  ;;  %vm5586_vm5 = vweird.f32 %v5519_v9 }
 0xd10   : > { %v5572_v53 = vmul.f32 %v7190_v25, %v5571_v42  ;;  %v5569_v30 = vsel %vm5568_vm0, %v7188_v32, %v5565_v61  ;;  %v6576_v32 = vld [vmem:[#allocation13 + $0x38] sm:$0xff] }
 0xd11   : > { %5416 = vadd.xlane.f32.xlu2 %v5385_v22  ;;  %v5693_v43 = vmul.f32 %v5569_v30, %v5501_v8  ;;  %5961 = vmatpush.bf16.msrb.mxu2 %v6576_v32 }
 0xd12   : > { %v5573_v47 = vmul.f32 0.5, %v5572_v53  ;;  %6633 = vmatpush.bf16.msrb.mxu3 %v6576_v32 }
 0xd13   : > { %v5712_v1 = vmul.f32 %v9969_v23, %v5693_v43 }
 0xd14   : > { %v5574_v17 = vsub.f32 1.5, %v5573_v47  ;;  %5360 = vadd.xlane.f32.xlu0 %v10074_v15 }
 0xd15   : > { %v7192_v7 = vpop.eup %7191  ;;  %v5731_v58 = vadd.f32 %v9982_v18, %v5712_v1  ;;  %5962 = vmatpush.bf16.msrb.mxu2 %v6575_v24 }
 0xd16   : > { %v5575_v12 = vmul.f32 %v7190_v25, %v5574_v17  ;;  %v5581_v3 = vmul.f32 %v7192_v7, %v5519_v9  ;;  %vm5587_vm4 = vweird.f32 %v7192_v7  ;;  %6634 = vmatpush.bf16.msrb.mxu3 %v6575_v24 }
 0xd17   : > { %5408 = vadd.xlane.f32.xlu1 %v5381_v16  ;;  %v5745_v45 = vpack.c.bf16 %v5731_v58, %v5730_v60  ;;  %vm5588_vm6 = vmor %vm5586_vm5, %vm5587_vm4 }
 0xd18   : > { %v5582_v36 = vmul.f32 %v7192_v7, %v5581_v3  ;;  %v5579_v49 = vsel %vm5578_vm3, %v7190_v25, %v5575_v12  ;;  %v10099_v3 = vld [vmem:[%s10481_s7] ss:$0 sm:$0xff] }
 0xd19   : > { %5406 = vadd.xlane.f32.xlu2 %v5380_v4  ;;  %5833 = vmatmul.bf16.gmra.mxu1 %v5745_v45  ;;  %v5694_v39 = vmul.f32 %v5579_v49, %v5502_v52 }
 0xd1a   : > { %v5583_v51 = vmul.f32 0.5, %v5582_v36  ;;  %5963 = vmatpush.bf16.msrb.mxu2 %v6574_v10  ;;  %6635 = vmatpush.bf16.msrb.mxu3 %v6574_v10 }
 0xd1b   : > { %v5713_v48 = vmul.f32 %v9969_v23, %v5694_v39 }
 0xd1c   : > { %v5584_v35 = vsub.f32 1.5, %v5583_v51 }
 0xd1d   : > { %v5732_v50 = vadd.f32 %v9982_v18, %v5713_v48 }
 0xd1e   : > { %v5585_v21 = vmul.f32 %v7192_v7, %v5584_v35  ;;  %5964 = vmatpush.bf16.msrb.mxu2 %v6573_v26  ;;  %6636 = vmatpush.bf16.msrb.mxu3 %v6573_v26 }
 0xd20   : > { %v5589_v56 = vsel %vm5588_vm6, %v7192_v7, %v5585_v21 }
 0xd21   : > { %v5695_v41 = vmul.f32 %v5589_v56, %v5503_v46 }
 0xd22   : > { %5965 = vmatpush.bf16.msrb.mxu2 %v6572_v40  ;;  %6637 = vmatpush.bf16.msrb.mxu3 %v6572_v40 }
 0xd23   : > { %v5714_v38 = vmul.f32 %v9969_v23, %v5695_v41 }
 0xd25   : > { %v5733_v6 = vadd.f32 %v9982_v18, %v5714_v38 }
 0xd26   : > { %5966 = vmatpush.bf16.msrb.mxu2 %v6571_v59  ;;  %6638 = vmatpush.bf16.msrb.mxu3 %v6571_v59 }
 0xd27   : > { %v5746_v5 = vpack.c.bf16 %v5733_v6, %v5732_v50 }
 0xd29   : > { %5838 = vmatmul.bf16.gmra.mxu1 %v5746_v5 }
 0xd2a   : > { %5967 = vmatpush.bf16.msrb.mxu2 %v6570_v29  ;;  %6639 = vmatpush.bf16.msrb.mxu3 %v6570_v29 }
 0xd2e   : > { %5968 = vmatpush.bf16.msrb.mxu2 %v6569_v33  ;;  %6640 = vmatpush.bf16.msrb.mxu3 %v6569_v33 }
 0xd37   : > { %v5351_v25 = vpop.xlane.xlu2 %5350 }
 0xd38   : > { %v5424_v13 = vmul.f32 0.03125, %v5351_v25 }
 0xd39   : > { %v5399_v42 = vpop.xlane.xlu0 %5398 }
 0xd3a   : > { %v5456_v9 = vmul.f32 %v5424_v13, %v5424_v13  ;;  %v5440_v22 = vmul.f32 0.03125, %v5399_v42  ;;  %v5504_v10 = vsub.f32 %v9972_v63, %v5424_v13 }
 0xd3c   : > { %v5472_v20 = vsub.f32 %v5440_v22, %v5456_v9 }
 0xd3e   : > { %v5488_v61 = vmax.f32 %v5472_v20, 0.0 }
 0xd3f   : > { %v5353_v8 = vpop.xlane.xlu1 %5352 }
 0xd40   : > { %v5520_v53 = vadd.f32 1e-06, %v5488_v61  ;;  %v5425_v30 = vmul.f32 0.03125, %v5353_v8 }
 0xd41   : > { %v5401_v47 = vpop.xlane.xlu2 %5400 }
 0xd42   : > { %7193 = vrsqrt.f32 %v5520_v53  ;;  %v5457_v43 = vmul.f32 %v5425_v30, %v5425_v30  ;;  %v5441_v34 = vmul.f32 0.03125, %v5401_v47  ;;  %vm5596_vm8 = vweird.f32 %v5520_v53 }
 0xd43   : > { %v5505_v6 = vsub.f32 %v9989_v44, %v5425_v30 }
 0xd44   : > { %v5473_v17 = vsub.f32 %v5441_v34, %v5457_v43 }
 0xd46   : > { %v5489_v16 = vmax.f32 %v5473_v17, 0.0 }
 0xd47   : > { %v5355_v38 = vpop.xlane.xlu0 %5354 }
 0xd48   : > { %v7194_v1 = vpop.eup %7193  ;;  %v5521_v60 = vadd.f32 1e-06, %v5489_v16  ;;  %v10105_v5 = vmul.f32 0.03125, %v5355_v38 }
 0xd49   : > { %v5591_v7 = vmul.f32 %v7194_v1, %v5520_v53  ;;  %vm5597_vm7 = vweird.f32 %v7194_v1  ;;  %v5403_v40 = vpop.xlane.xlu1 %5402 }
 0xd4a   : > { %v5829_v58 = vpop.f32.mrf.mxu1  ;;  %7195 = vrsqrt.f32 %v5521_v60  ;;  %vm5598_vm9 = vmor %vm5596_vm8, %vm5597_vm7  ;;  %vm5606_vm11 = vweird.f32 %v5521_v60  ;;  %v5458_v25 = vmul.f32 %v10105_v5, %v10105_v5  ;;  %v5442_v13 = vmul.f32 0.03125, %v5403_v40 }
 0xd4b   : > { %v5592_v4 = vmul.f32 %v7194_v1, %v5591_v7  ;;  %v5830_v32 = vadd.f32 %v10099_v3, %v5829_v58 }
 0xd4c   : > { %v5474_v61 = vsub.f32 %v5442_v13, %v5458_v25 }
 0xd4d   : > { %v5593_v12 = vmul.f32 0.5, %v5592_v4  ;;  %v5869_v39 = vmax.f32 %v5830_v32, 0.0 }
 0xd4e   : > { %v5490_v53 = vmax.f32 %v5474_v61, 0.0 }
 0xd4f   : > { %v5594_v45 = vsub.f32 1.5, %v5593_v12  ;;  %v5357_v9 = vpop.xlane.xlu2 %5356 }
 0xd50   : > { %v7196_v36 = vpop.eup %7195  ;;  %v10117_v16 = vadd.f32 1e-06, %v5490_v53 }
 0xd51   : > { %v5595_v51 = vmul.f32 %v7194_v1, %v5594_v45  ;;  %v5601_v49 = vmul.f32 %v7196_v36, %v5521_v60  ;;  %vm5607_vm10 = vweird.f32 %v7196_v36 }
 0xd52   : > { %v5831_v52 = vpop.f32.mrf.mxu1  ;;  %vm5608_vm12 = vmor %vm5606_vm11, %vm5607_vm10  ;;  %7197 = vrsqrt.f32 %v10117_v16  ;;  %vm5616_vm0 = vweird.f32 %v10117_v16 }
 0xd53   : > { %v5832_v35 = vadd.f32 %v10099_v3, %v5831_v52  ;;  %v5602_v24 = vmul.f32 %v7196_v36, %v5601_v49  ;;  %v5599_v56 = vsel %vm5598_vm9, %v7194_v1, %v5595_v51  ;;  %v10126_v51 = vmul.f32 0.03125, %v5357_v9 }
 0xd54   : > { %v5696_v26 = vmul.f32 %v5599_v56, %v5504_v10 }
 0xd55   : > { %v5870_v21 = vmax.f32 %v5832_v35, 0.0  ;;  %v5603_v46 = vmul.f32 0.5, %v5602_v24 }
 0xd56   : > { %v5715_v33 = vmul.f32 %v9969_v23, %v5696_v26 }
 0xd57   : > { %v5885_v41 = vpack.c.bf16 %v5870_v21, %v5869_v39  ;;  %v5604_v48 = vsub.f32 1.5, %v5603_v46  ;;  %v5459_v21 = vmul.f32 %v10126_v51, %v10126_v51 }
 0xd58   : > { %v5734_v22 = vadd.f32 %v9982_v18, %v5715_v33  ;;  %v10124_v32 = vpop.eup %7197 }
 0xd59   : > { %5969 = vmatmul.bf16.vlgmr.msrb.gmra.mxu2 %v5885_v41  ;;  %v5605_v50 = vmul.f32 %v7196_v36, %v5604_v48  ;;  %v5611_v24 = vmul.f32 %v10124_v32, %v10117_v16  ;;  %vm5617_vm1 = vweird.f32 %v10124_v32 }
 0xd5a   : > { %vm10163_vm3 = vmor %vm5616_vm0, %vm5617_vm1 }
 0xd5b   : > { %v5609_v59 = vsel %vm5608_vm12, %v7196_v36, %v5605_v50  ;;  %v5612_v50 = vmul.f32 %v10124_v32, %v5611_v24 }
 0xd5c   : > { %v5697_v29 = vmul.f32 %v5609_v59, %v5505_v6 }
 0xd5d   : > { %v5613_v25 = vmul.f32 0.5, %v5612_v50 }
 0xd5e   : > { %v5716_v42 = vmul.f32 %v9969_v23, %v5697_v29 }
 0xd60   : > { %v5735_v20 = vadd.f32 %v9982_v18, %v5716_v42 }
 0xd62   : > { %v5747_v8 = vpack.c.bf16 %v5735_v20, %v5734_v22 }
 0xd64   : > { %5843 = vmatmul.bf16.gmra.mxu1 %v5747_v8 }
 0xd67   : > { %v5363_v30 = vpop.xlane.xlu1 %5362 }
 0xd68   : > { %v10113_v47 = vmul.f32 0.03125, %v5363_v30 }
 0xd69   : > { %v5411_v43 = vpop.xlane.xlu2 %5410 }
 0xd6a   : > { %v5462_v34 = vmul.f32 %v10113_v47, %v10113_v47  ;;  %v5446_v17 = vmul.f32 0.03125, %v5411_v43  ;;  %v5614_v43 = vsub.f32 1.5, %v5613_v25 }
 0xd6c   : > { %v5478_v1 = vsub.f32 %v5446_v17, %v5462_v34 }
 0xd6e   : > { %v5494_v7 = vmax.f32 %v5478_v1, 0.0 }
 0xd6f   : > { %v5365_v58 = vpop.xlane.xlu0 %5364 }
 0xd70   : > { %v5526_v60 = vadd.f32 1e-06, %v5494_v7  ;;  %v10120_v4 = vmul.f32 0.03125, %v5365_v58 }
 0xd71   : > { %v5413_v12 = vpop.xlane.xlu1 %5412 }
 0xd72   : > { %7199 = vrsqrt.f32 %v5526_v60  ;;  %v5463_v45 = vmul.f32 %v10120_v4, %v10120_v4  ;;  %v5447_v36 = vmul.f32 0.03125, %v5413_v12  ;;  %vm5656_vm14 = vweird.f32 %v5526_v60 }
 0xd74   : > { %v5479_v49 = vsub.f32 %v5447_v36, %v5463_v45 }
 0xd76   : > { %v5495_v52 = vmax.f32 %v5479_v49, 0.0 }
 0xd77   : > { %v5405_v39 = vpop.xlane.xlu0 %5404 }
 0xd78   : > { %v7200_v35 = vpop.eup %7199  ;;  %v5527_v56 = vadd.f32 1e-06, %v5495_v52  ;;  %v5443_v10 = vmul.f32 0.03125, %v5405_v39  ;;  %v5615_v39 = vmul.f32 %v10124_v32, %v5614_v43 }
 0xd79   : > { %v5651_v46 = vmul.f32 %v7200_v35, %v5526_v60  ;;  %v5359_v41 = vpop.xlane.xlu1 %5358  ;;  %vm5657_vm13 = vweird.f32 %v7200_v35  ;;  %v5510_v60 = vsub.f32 %v10014_v19, %v10113_v47 }
 0xd7a   : > { %v5367_v48 = vpop.xlane.xlu2 %5366  ;;  %7201 = vrsqrt.f32 %v5527_v56  ;;  %v5475_v26 = vsub.f32 %v5443_v10, %v5459_v21  ;;  %vm10142_vm15 = vmor %vm5656_vm14, %vm5657_vm13  ;;  %vm5666_vm4 = vweird.f32 %v5527_v56 }
 0xd7b   : > { %v5652_v38 = vmul.f32 %v7200_v35, %v5651_v46  ;;  %v10133_v59 = vmul.f32 0.03125, %v5367_v48 }
 0xd7c   : > { %v5491_v40 = vmax.f32 %v5475_v26, 0.0 }
 0xd7d   : > { %v5653_v6 = vmul.f32 0.5, %v5652_v38  ;;  %v5464_v9 = vmul.f32 %v10133_v59, %v10133_v59 }
 0xd7e   : > { %v10135_v33 = vadd.f32 1e-06, %v5491_v40 }
 0xd7f   : > { %v5654_v29 = vsub.f32 1.5, %v5653_v6  ;;  %v5415_v13 = vpop.xlane.xlu0 %5414  ;;  %v10167_v6 = vmul.f32 0.03125, %v5359_v41  ;;  %v5619_v41 = vsel %vm10163_vm3, %v10124_v32, %v5615_v39 }
 0xd80   : > { %v7202_v42 = vpop.eup %7201  ;;  %7203 = vrsqrt.f32 %v10135_v33  ;;  %v5448_v22 = vmul.f32 0.03125, %v5415_v13  ;;  %vm5626_vm7 = vweird.f32 %v10135_v33 }
 0xd81   : > { %v5655_v20 = vmul.f32 %v7200_v35, %v5654_v29  ;;  %v5661_v61 = vmul.f32 %v7202_v42, %v5527_v56  ;;  %vm5667_vm2 = vweird.f32 %v7202_v42  ;;  %v5511_v29 = vsub.f32 %v10025_v62, %v10120_v4 }
 0xd82   : > { %v5369_v8 = vpop.xlane.xlu1 %5368  ;;  %v5480_v53 = vsub.f32 %v5448_v22, %v5464_v9  ;;  %vm5668_vm5 = vmor %vm5666_vm4, %vm5667_vm2  ;;  %v5506_v9 = vsub.f32 %v9996_v37, %v10105_v5  ;;  %v5460_v43 = vmul.f32 %v10167_v6, %v10167_v6 }
 0xd83   : > { %v10140_v30 = vmul.f32 0.03125, %v5369_v8  ;;  %v5662_v34 = vmul.f32 %v7202_v42, %v5661_v61  ;;  %v5659_v45 = vsel %vm10142_vm15, %v7200_v35, %v5655_v20 }
 0xd84   : > { %v5417_v17 = vpop.xlane.xlu2 %5416  ;;  %v5496_v7 = vmax.f32 %v5480_v53, 0.0  ;;  %v5702_v48 = vmul.f32 %v5659_v45, %v5510_v60  ;;  %v5698_v1 = vmul.f32 %v5619_v41, %v5506_v9 }
 0xd85   : > { %v5465_v58 = vmul.f32 %v10140_v30, %v10140_v30  ;;  %v5449_v12 = vmul.f32 0.03125, %v5417_v17  ;;  %v5663_v36 = vmul.f32 0.5, %v5662_v34 }
 0xd86   : > { %v7204_v49 = vpop.eup %7203  ;;  %v10154_v52 = vadd.f32 1e-06, %v5496_v7  ;;  %v5721_v61 = vmul.f32 %v9969_v23, %v5702_v48 }
 0xd87   : > { %v5481_v24 = vsub.f32 %v5449_v12, %v5465_v58  ;;  %v5664_v21 = vsub.f32 1.5, %v5663_v36  ;;  %v5621_v46 = vmul.f32 %v7204_v49, %v10135_v33  ;;  %v5361_v10 = vpop.xlane.xlu0 %5360  ;;  %vm5627_vm6 = vweird.f32 %v7204_v49 }
 0xd88   : > { %7205 = vrsqrt.f32 %v10154_v52  ;;  %v10159_v38 = vmul.f32 0.03125, %v5361_v10  ;;  %v5507_v12 = vsub.f32 %v10003_v27, %v10126_v51  ;;  %vm5628_vm8 = vmor %vm5626_vm7, %vm5627_vm6  ;;  %v5740_v36 = vadd.f32 %v9982_v18, %v5721_v61 }
 0xd89   : > { %v5497_v35 = vmax.f32 %v5481_v24, 0.0  ;;  %v5665_v26 = vmul.f32 %v7202_v42, %v5664_v21  ;;  %v5622_v50 = vmul.f32 %v7204_v49, %v5621_v46  ;;  %v5717_v33 = vmul.f32 %v9969_v23, %v5698_v1 }
 0xd8a   : > { %v5409_v40 = vpop.xlane.xlu1 %5408  ;;  %v5461_v13 = vmul.f32 %v10159_v38, %v10159_v38  ;;  %vm5676_vm10 = vweird.f32 %v10154_v52 }
 0xd8b   : > { %v10171_v25 = vadd.f32 1e-06, %v5497_v35  ;;  %v5445_v16 = vmul.f32 0.03125, %v5409_v40  ;;  %v5669_v22 = vsel %vm5668_vm5, %v7202_v42, %v5665_v26  ;;  %v5623_v20 = vmul.f32 0.5, %v5622_v50 }
 0xd8c   : > { %v5407_v56 = vpop.xlane.xlu2 %5406  ;;  %v5703_v4 = vmul.f32 %v5669_v22, %v5511_v29  ;;  %v5736_v29 = vadd.f32 %v9982_v18, %v5717_v33 }
 0xd8d   : > { %7207 = vrsqrt.f32 %v10171_v25  ;;  %v5477_v8 = vsub.f32 %v5445_v16, %v5461_v13  ;;  %v5624_v53 = vsub.f32 1.5, %v5623_v20  ;;  %v5444_v34 = vmul.f32 0.03125, %v5407_v56 }
 0xd8e   : > { %v7206_v5 = vpop.eup %7205  ;;  %v5722_v42 = vmul.f32 %v9969_v23, %v5703_v4  ;;  %v5512_v20 = vsub.f32 %v10042_v11, %v10133_v59  ;;  %vm5686_vm13 = vweird.f32 %v10171_v25 }
 0xd8f   : > { %v5493_v17 = vmax.f32 %v5477_v8, 0.0  ;;  %v5625_v7 = vmul.f32 %v7204_v49, %v5624_v53  ;;  %v5671_v32 = vmul.f32 %v7206_v5, %v10154_v52  ;;  %v5476_v58 = vsub.f32 %v5444_v34, %v5460_v43 }
 0xd90   : > { %v5741_v60 = vadd.f32 %v9982_v18, %v5722_v42  ;;  %vm5677_vm9 = vweird.f32 %v7206_v5  ;;  %v5513_v52 = vsub.f32 %v10067_v14, %v10140_v30 }
 0xd91   : > { %v5525_v45 = vadd.f32 1e-06, %v5493_v17  ;;  %v5672_v24 = vmul.f32 %v7206_v5, %v5671_v32  ;;  %v5492_v39 = vmax.f32 %v5476_v58, 0.0  ;;  %v5629_v21 = vsel %vm5628_vm8, %v7204_v49, %v5625_v7  ;;  %vm5678_vm11 = vmor %vm5676_vm10, %vm5677_vm9 }
 0xd92   : > { %v5750_v10 = vpack.c.bf16 %v5741_v60, %v5740_v36  ;;  %v5699_v48 = vmul.f32 %v5629_v21, %v5507_v12 }
 0xd93   : > { %v7208_v46 = vpop.eup %7207  ;;  %7209 = vrsqrt.f32 %v5525_v45  ;;  %v5673_v35 = vmul.f32 0.5, %v5672_v24  ;;  %v5524_v26 = vadd.f32 1e-06, %v5492_v39  ;;  %vm5646_vm0 = vweird.f32 %v5525_v45 }
 0xd94   : > { %v5681_v47 = vmul.f32 %v7208_v46, %v10171_v25  ;;  %5858 = vmatmul.bf16.vlgmr.msra.gmra.mxu3 %v5750_v10  ;;  %v5718_v51 = vmul.f32 %v9969_v23, %v5699_v48  ;;  %vm5687_vm12 = vweird.f32 %v7208_v46  ;;  %v5509_v25 = vsub.f32 %v10074_v15, %v10159_v38 }
 0xd95   : > { %v5674_v50 = vsub.f32 1.5, %v5673_v35  ;;  %7211 = vrsqrt.f32 %v5524_v26  ;;  %vm5688_vm14 = vmor %vm5686_vm13, %vm5687_vm12  ;;  %vm5636_vm3 = vweird.f32 %v5524_v26 }
 0xd96   : > { %v5682_v40 = vmul.f32 %v7208_v46, %v5681_v47  ;;  %v5737_v49 = vadd.f32 %v9982_v18, %v5718_v51  ;;  %v5834_v9 = vpop.f32.mrf.mxu1 }
 0xd97   : > { %v5675_v13 = vmul.f32 %v7206_v5, %v5674_v50  ;;  %v5835_v59 = vadd.f32 %v10099_v3, %v5834_v9  ;;  %v5508_v50 = vsub.f32 %v10039_v57, %v10167_v6 }
 0xd98   : > { %v5683_v16 = vmul.f32 0.5, %v5682_v40  ;;  %v5748_v56 = vpack.c.bf16 %v5737_v49, %v5736_v29 }
 0xd99   : > { %v7210_v22 = vpop.eup %7209  ;;  %v5679_v4 = vsel %vm5678_vm11, %v7206_v5, %v5675_v13  ;;  %v5871_v39 = vmax.f32 %v5835_v59, 0.0 }
 0xd9a   : > { %v5684_v41 = vsub.f32 1.5, %v5683_v16  ;;  %v5641_v61 = vmul.f32 %v7210_v22, %v5525_v45  ;;  %5848 = vmatmul.bf16.gmra.mxu1 %v5748_v56  ;;  %v5704_v8 = vmul.f32 %v5679_v4, %v5512_v20  ;;  %vm5647_vm15 = vweird.f32 %v7210_v22 }
 0xd9b   : > { %v7212_v53 = vpop.eup %7211  ;;  %vm5648_vm2 = vmor %vm5646_vm0, %vm5647_vm15 }
 0xd9c   : > { %v5685_v43 = vmul.f32 %v7208_v46, %v5684_v41  ;;  %v5642_v34 = vmul.f32 %v7210_v22, %v5641_v61  ;;  %v5631_v42 = vmul.f32 %v7212_v53, %v5524_v26  ;;  %v5723_v5 = vmul.f32 %v9969_v23, %v5704_v8 }
 0xd9d   : > { %vm5637_vm1 = vweird.f32 %v7212_v53 }
 0xd9e   : > { %v5643_v17 = vmul.f32 0.5, %v5642_v34  ;;  %v5689_v1 = vsel %vm5688_vm14, %v7208_v46, %v5685_v43  ;;  %v5632_v7 = vmul.f32 %v7212_v53, %v5631_v42  ;;  %v5836_v12 = vpop.f32.mrf.mxu1  ;;  %v5742_v10 = vadd.f32 %v9982_v18, %v5723_v5  ;;  %vm5638_vm4 = vmor %vm5636_vm3, %vm5637_vm1 }
 0xd9f   : > { %v5705_v32 = vmul.f32 %v5689_v1, %v5513_v52  ;;  %v5837_v60 = vadd.f32 %v10099_v3, %v5836_v12 }
 0xda0   : > { %v5644_v58 = vsub.f32 1.5, %v5643_v17  ;;  %v5633_v36 = vmul.f32 0.5, %v5632_v7 }
 0xda1   : > { %v5724_v30 = vmul.f32 %v9969_v23, %v5705_v32  ;;  %v5872_v46 = vmax.f32 %v5837_v60, 0.0 }
 0xda2   : > { %v5645_v24 = vmul.f32 %v7210_v22, %v5644_v58  ;;  %v5634_v21 = vsub.f32 1.5, %v5633_v36 }
 0xda3   : > { %v5743_v48 = vadd.f32 %v9982_v18, %v5724_v30  ;;  %v5886_v38 = vpack.c.bf16 %v5872_v46, %v5871_v39 }
 0xda4   : > { %v5649_v33 = vsel %vm5648_vm2, %v7210_v22, %v5645_v24  ;;  %v5635_v35 = vmul.f32 %v7212_v53, %v5634_v21 }
 0xda5   : > { %v5751_v47 = vpack.c.bf16 %v5743_v48, %v5742_v10  ;;  %v5701_v51 = vmul.f32 %v5649_v33, %v5509_v25  ;;  %5974 = vmatmul.bf16.gmra.mxu2 %v5886_v38 }
 0xda6   : > { %v5639_v45 = vsel %vm5638_vm4, %v7212_v53, %v5635_v35  ;;  %v5839_v40 = vpop.f32.mrf.mxu1 }
 0xda7   : > { %5863 = vmatmul.bf16.gmra.mxu3 %v5751_v47  ;;  %v5700_v29 = vmul.f32 %v5639_v45, %v5508_v50  ;;  %v5720_v49 = vmul.f32 %v9969_v23, %v5701_v51  ;;  %v5840_v22 = vadd.f32 %v10099_v3, %v5839_v40 }
 0xda9   : > { %v5719_v13 = vmul.f32 %v9969_v23, %v5700_v29  ;;  %v5739_v26 = vadd.f32 %v9982_v18, %v5720_v49  ;;  %v5873_v56 = vmax.f32 %v5840_v22, 0.0  ;;  %v10221_v23 = vld [vmem:[%s10486_s30] ss:$0 sm:$0xff] }
 0xdab   : > { %v5738_v16 = vadd.f32 %v9982_v18, %v5719_v13 }
 0xdad   : > { %v5749_v9 = vpack.c.bf16 %v5739_v26, %v5738_v16 }
 0xdae   : > { %v5841_v20 = vpop.f32.mrf.mxu1 }
 0xdaf   : > { %5853 = vmatmul.bf16.gmra.mxu1 %v5749_v9  ;;  %v5842_v6 = vadd.f32 %v10099_v3, %v5841_v20 }
 0xdb1   : > { %v5874_v41 = vmax.f32 %v5842_v6, 0.0 }
 0xdb3   : > { %v5887_v61 = vpack.c.bf16 %v5874_v41, %v5873_v56 }
 0xdb5   : > { %5979 = vmatmul.bf16.gmra.mxu2 %v5887_v61 }
 0xddc   : > { %v5970_v4 = vpop.f32.mrf.mxu2 }
 0xddd   : > { %v5971_v18 = vadd.f32 %v10221_v23, %v5970_v4 }
 0xddf   : > { %v6010_v34 = vadd.f32 %v5971_v18, %v9879_v0 }
 0xde1   : > { %v5844_v8 = vpop.f32.mrf.mxu1 }
 0xde2   : > { %v5845_v42 = vadd.f32 %v10099_v3, %v5844_v8 }
 0xde4   : > { %v5972_v53 = vpop.f32.mrf.mxu2  ;;  %v5875_v7 = vmax.f32 %v5845_v42, 0.0 }
 0xde5   : > { %v5973_v43 = vadd.f32 %v10221_v23, %v5972_v53 }
 0xde7   : > { %v6011_v52 = vadd.f32 %v5973_v43, %v9884_v55 }
 0xde9   : > { %v6581_v17 = vpack.c.bf16 %v6011_v52, %v6010_v34  ;;  %v5846_v59 = vpop.f32.mrf.mxu1 }
 0xdea   : > { %v5847_v1 = vadd.f32 %v10099_v3, %v5846_v59 }
 0xdeb   : > { %6582 = vst [vmem:[%s10230_s24] sm:$0xff] %v6581_v17  }
 0xdec   : > { %v5876_v32 = vmax.f32 %v5847_v1, 0.0 }
 0xdee   : > { %v5888_v5 = vpack.c.bf16 %v5876_v32, %v5875_v7 }
 0xdf0   : > { %5984 = vmatmul.bf16.gmra.mxu2 %v5888_v5 }
 0xe17   : > { %v5849_v58 = vpop.f32.mrf.mxu1  ;;  %v5859_v12 = vpop.f32.mrf.mxu3 }
 0xe18   : > { %v5850_v0 = vadd.f32 %v10099_v3, %v5849_v58  ;;  %v5860_v55 = vadd.f32 %v10099_v3, %v5859_v12 }
 0xe1a   : > { %v5877_v24 = vmax.f32 %v5850_v0, 0.0  ;;  %v5881_v39 = vmax.f32 %v5860_v55, 0.0 }
 0xe1f   : > { %v5851_v25 = vpop.f32.mrf.mxu1  ;;  %v5861_v36 = vpop.f32.mrf.mxu3 }
 0xe20   : > { %v5852_v60 = vadd.f32 %v10099_v3, %v5851_v25  ;;  %v5862_v30 = vadd.f32 %v10099_v3, %v5861_v36 }
 0xe22   : > { %v5878_v21 = vmax.f32 %v5852_v60, 0.0  ;;  %v5882_v46 = vmax.f32 %v5862_v30, 0.0 }
 0xe24   : > { %v5889_v10 = vpack.c.bf16 %v5878_v21, %v5877_v24  ;;  %v5891_v48 = vpack.c.bf16 %v5882_v46, %v5881_v39 }
 0xe26   : > { %5989 = vmatmul.bf16.gmra.mxu2 %v5889_v10  ;;  %5999 = vmatmul.bf16.vlgmr.msrb.gmra.mxu3 %v5891_v48 }
 0xe28   : > { %v5975_v33 = vpop.f32.mrf.mxu2 }
 0xe29   : > { %v5976_v47 = vadd.f32 %v10221_v23, %v5975_v33 }
 0xe2a   : > { %v5864_v35 = vpop.f32.mrf.mxu3 }
 0xe2b   : > { %v5865_v51 = vadd.f32 %v10099_v3, %v5864_v35  ;;  %v6012_v13 = vadd.f32 %v5976_v47, %v9929_v31 }
 0xe2c   : > { %v5854_v38 = vpop.f32.mrf.mxu1 }
 0xe2d   : > { %v5855_v49 = vadd.f32 %v10099_v3, %v5854_v38  ;;  %v5883_v16 = vmax.f32 %v5865_v51, 0.0 }
 0xe2f   : > { %v5879_v41 = vmax.f32 %v5855_v49, 0.0 }
 0xe30   : > { %v5977_v50 = vpop.f32.mrf.mxu2 }
 0xe31   : > { %v5978_v40 = vadd.f32 %v10221_v23, %v5977_v50 }
 0xe32   : > { %v5866_v45 = vpop.f32.mrf.mxu3 }
 0xe33   : > { %v5867_v29 = vadd.f32 %v10099_v3, %v5866_v45  ;;  %v6013_v26 = vadd.f32 %v5978_v40, %v9940_v54 }
 0xe34   : > { %v5856_v22 = vpop.f32.mrf.mxu1 }
 0xe35   : > { %v5884_v9 = vmax.f32 %v5867_v29, 0.0  ;;  %v5857_v20 = vadd.f32 %v10099_v3, %v5856_v22  ;;  %v6586_v6 = vpack.c.bf16 %v6013_v26, %v6012_v13 }
 0xe37   : > { %v5892_v56 = vpack.c.bf16 %v5884_v9, %v5883_v16  ;;  %v5880_v61 = vmax.f32 %v5857_v20, 0.0  ;;  %6618 = vst [vmem:[%s10230_s24 + $0x8] sm:$0xff] %v6586_v6  }
 0xe38   : > { %v5980_v8 = vpop.f32.mrf.mxu2 }
 0xe39   : > { %6004 = vmatmul.bf16.gmra.mxu3 %v5892_v56  ;;  %v5890_v4 = vpack.c.bf16 %v5880_v61, %v5879_v41  ;;  %v5981_v31 = vadd.f32 %v10221_v23, %v5980_v8 }
 0xe3b   : > { %5994 = vmatmul.bf16.gmra.mxu2 %v5890_v4  ;;  %v6014_v53 = vadd.f32 %v5981_v31, %v9952_v28 }
 0xe40   : > { %v5982_v18 = vpop.f32.mrf.mxu2 }
 0xe41   : > { %v5983_v54 = vadd.f32 %v10221_v23, %v5982_v18 }
 0xe43   : > { %v6015_v3 = vadd.f32 %v5983_v54, %v9959_v2 }
 0xe45   : > { %v6591_v43 = vpack.c.bf16 %v6015_v3, %v6014_v53 }
 0xe47   : > { %6619 = vst [vmem:[%s10230_s24 + $0x10] sm:$0xff] %v6591_v43  }
 0xe73   : > { %v5985_v34 = vpop.f32.mrf.mxu2 }
 0xe74   : > { %v5986_v52 = vadd.f32 %v10221_v23, %v5985_v34 }
 0xe76   : > { %v6016_v59 = vadd.f32 %v5986_v52, %v9972_v63 }
 0xe7b   : > { %v5987_v42 = vpop.f32.mrf.mxu2 }
 0xe7c   : > { %v5988_v17 = vadd.f32 %v10221_v23, %v5987_v42 }
 0xe7e   : > { %v6017_v1 = vadd.f32 %v5988_v17, %v9989_v44 }
 0xe80   : > { %v6596_v7 = vpack.c.bf16 %v6017_v1, %v6016_v59 }
 0xe82   : > { %6620 = vst [vmem:[%s10230_s24 + $0x18] sm:$0xff] %v6596_v7  }
 0xea9   : > { %v5990_v32 = vpop.f32.mrf.mxu2  ;;  %v6000_v28 = vpop.f32.mrf.mxu3 }
 0xeaa   : > { %v5991_v2 = vadd.f32 %v10221_v23, %v5990_v32  ;;  %v6001_v5 = vadd.f32 %v10221_v23, %v6000_v28 }
 0xeac   : > { %v6018_v63 = vadd.f32 %v5991_v2, %v9996_v37  ;;  %v6022_v44 = vadd.f32 %v6001_v5, %v10014_v19 }
 0xeb1   : > { %v5992_v58 = vpop.f32.mrf.mxu2  ;;  %v6002_v12 = vpop.f32.mrf.mxu3 }
 0xeb2   : > { %v5993_v0 = vadd.f32 %v10221_v23, %v5992_v58  ;;  %v6003_v55 = vadd.f32 %v10221_v23, %v6002_v12 }
 0xeb4   : > { %v6019_v25 = vadd.f32 %v5993_v0, %v10003_v27  ;;  %v6023_v36 = vadd.f32 %v6003_v55, %v10025_v62 }
 0xeb6   : > { %v6601_v60 = vpack.c.bf16 %v6019_v25, %v6018_v63  ;;  %v6611_v30 = vpack.c.bf16 %v6023_v36, %v6022_v44 }
 0xeb8   : > { %6621 = vst [vmem:[%s10230_s24 + $0x20] sm:$0xff] %v6601_v60  }
 0xeb9   : > { %6623 = vst [vmem:[%s10230_s24 + $0x30] sm:$0xff] %v6611_v30  }
 0xebc   : > { %v6005_v24 = vpop.f32.mrf.mxu3 }
 0xebd   : > { %v6006_v21 = vadd.f32 %v10221_v23, %v6005_v24 }
 0xebe   : > { %v5995_v39 = vpop.f32.mrf.mxu2 }
 0xebf   : > { %v5996_v19 = vadd.f32 %v10221_v23, %v5995_v39  ;;  %v6024_v27 = vadd.f32 %v6006_v21, %v10042_v11 }
 0xec1   : > { %v6020_v35 = vadd.f32 %v5996_v19, %v10039_v57 }
 0xec4   : > { %v6007_v46 = vpop.f32.mrf.mxu3 }
 0xec5   : > { %v6008_v37 = vadd.f32 %v10221_v23, %v6007_v46 }
 0xec6   : > { %v5997_v10 = vpop.f32.mrf.mxu2 }
 0xec7   : > { %v6025_v62 = vadd.f32 %v6008_v37, %v10067_v14  ;;  %v5998_v48 = vadd.f32 %v10221_v23, %v5997_v10 }
 0xec9   : > { %v6616_v33 = vpack.c.bf16 %v6025_v62, %v6024_v27  ;;  %v6021_v38 = vadd.f32 %v5998_v48, %v10074_v15 }
 0xecb   : > { %6624 = vst [vmem:[%s10230_s24 + $0x38] sm:$0xff] %v6616_v33   ;;  %v6606_v47 = vpack.c.bf16 %v6021_v38, %v6020_v35 }
 0xecd   : > { %6622 = vst [vmem:[%s10230_s24 + $0x28] sm:$0xff] %v6606_v47  }
 0xece   : > { %7450 = shalt.err (!%p7447_p9)
}
 0xecf   : > { %s7525_s29 = smov 4  }
 0xed0   : > { %6667 = dma.vmem_to_hbm [thread:$0]  (%p7718_p4), %s6072_s25, 1024, %s6074_s15, %s6059_s16, %s7512_s14, %s7512_s14, %s7525_s29  }
 0xed1 PF: > { %s6088_s24 = sand.u32 1, %s7489_s18   ;;  %p10488_p10 = scmp.ge.s32.totalorder %s7501_s21, 2 }
 0xed2   : > { %s6089_s12 = scalar_lea.sflag [#allocation4], %s6088_s24 }
 0xed3   : > { %p6693_p13 = pnand %p10488_p10, %p7722_p6 }
 0xed5   : > { %p6694_p11 = pneg %p6693_p13 }
 0xed7   : > { %7484 = dma.done.wait (%p6694_p11), %s6089_s12, 1024  }
 0xed8   : > { %7486 = vsyncadd (%p6694_p11), %s6089_s12, 4294966272  ;;  %s10489_s22 = sld [smem:[#allocation20_spill]]  ;;  %p31_p0 = scmp.ge.s32.totalorder %s7692_s28, 4  }
 0xed9   : > { %s10490_s18 = smov %s7493_s19  ;;  %s10491_s19 = smov %s7497_s20 }
 0xeda   : > { %s10493_s21 = smov %s7692_s28  ;;  %33 = sbr.rel (!%p31_p0) target bundleno = 18 (0x12), region = 149 }
 0xede   : > { %s10492_s20 = smov %s10489_s22 }
 0xedf   :  { %6095 = vsyncpa [#allocation3], 1 }
 0xee0   :  { %6097 = vsyncpa [#allocation3 + $0x1], 1 }
 0xee1   :  { %6098 = vsyncpa [#allocation6], 1 }
 0xee2   :  { %6099 = vsyncpa [#allocation9], 1 }
 0xee3   :  { %6100 = vsyncpa [#allocation12], 1 }
 0xee4   :  { %6101 = vsyncpa [#allocation4], 1 }
 0xee5   :  { %6103 = vsyncpa [#allocation4 + $0x1], 1 }

</bundles_post_ra>
